<compile_context>
chip_gen: v7x
topology: tpu7x:2x2x1
jax: 0.10.0
libtpu: 0.0.40
codegen_flags: <defaults>
</compile_context>

<pallas_src>
import functools

import jax
import jax.numpy as jnp
from jax import lax
from jax.experimental import pallas as pl
from jax.experimental.pallas import tpu as pltpu


def _round_up(x, m):
    return ((x + m - 1) // m) * m


def _recurrence_kernel(gx_ref, wh_ref, h_out_ref, c_out_ref, h_sc, c_sc,
                       *, t_blk, hp, seq_len, mask_tail):
    """One grid step = t_blk recurrent timesteps.

    gx_ref : (t_blk, BS_P, 2*HP) f32   precomputed x @ W_x + b for this block
    wh_ref : (HP, 2*HP)                fused [forget | input] hidden->gate W
    h_sc/c_sc : (BS_P, HP) f32         recurrent carries (persist across steps)
    """
    tb = pl.program_id(0)

    @pl.when(tb == 0)
    def _():
        h_sc[...] = jnp.zeros_like(h_sc)
        c_sc[...] = jnp.zeros_like(c_sc)

    def make_step(masked):
        def step(tt, carry):
            h, c = carry
            # Single fused gate matmul; bf16 operands, f32 accumulation.
            # wh_ref is re-read each step (VMEM loads are cheap and hidden
            # under the MXU) instead of being pinned in vregs across the
            # fully unrolled loop.
            g = jnp.dot(h.astype(wh_ref.dtype), wh_ref[...],
                        preferred_element_type=jnp.float32) + gx_ref[tt]
            f = jax.nn.sigmoid(g[:, :hp])      # forget gate
            i = jax.nn.sigmoid(g[:, hp:])      # input gate (reused: c_cand, o)
            c_new = f * c + i * i              # c_cand == i (PyTorch reuse)
            h_new = i * jnp.tanh(c_new)        # o == i
            if masked:                         # only on the ragged tail block
                valid = tb * t_blk + tt < seq_len
                h_new = jnp.where(valid, h_new, h)
                c_new = jnp.where(valid, c_new, c)
            return h_new, c_new
        return step

    def run(masked):
        h, c = lax.fori_loop(0, t_blk, make_step(masked),
                             (h_sc[...], c_sc[...]), unroll=True)
        h_sc[...] = h
        c_sc[...] = c

    if mask_tail:
        is_last = tb == pl.num_programs(0) - 1

        @pl.when(jnp.logical_not(is_last))
        def _():
            run(False)            # unmasked fast path on full blocks

        @pl.when(is_last)
        def _():
            run(True)             # masked path only on the tail block
    else:
        run(False)

    # Written every grid step: cheap, and robust vs. last-step-only writeback.
    h_out_ref[...] = h_sc[...]
    c_out_ref[...] = c_sc[...]


def _pick_t_blk(seq_len, bs_p, g_dim, requested):
    if requested is not None:
        return max(1, min(int(requested), seq_len))
    # Latency-bound recurrence: fewer grid steps -> less fixed pipeline
    # overhead.  Take the whole sequence in one grid step when the
    # double-buffered gx stream fits a conservative VMEM share; cap the block
    # so the fully unrolled timestep loop keeps a reasonable code size.
    gx_bytes_per_step = bs_p * g_dim * 4          # f32 gx
    budget = 16 << 20                             # gx share of VMEM
    max_by_vmem = max(1, budget // (2 * gx_bytes_per_step))
    return int(min(seq_len, max_by_vmem, 64))


def rnn_forward(sequence, params, *, t_blk=None, mxu_dtype=jnp.bfloat16):
    """sequence: [bs, seq_len, in_dim] f32 -> (h, c), each [bs, hidden] f32."""
    bs, seq_len, in_dim = sequence.shape
    hidden = params["whf"].shape[1]
    assert seq_len >= 1, "seq_len must be >= 1"

    bs_p = _round_up(max(bs, 8), 8)          # sublane multiple
    hp = _round_up(max(hidden, 128), 128)    # per-gate lane multiple
    g_dim = 2 * hp                           # fused [forget | input] width
    f32 = jnp.float32

    # Fused, zero-padded weights.  Pad rows of W_h are zero, so the junk that
    # accumulates in padded columns of h never reaches real outputs.
    wh = jnp.zeros((hp, g_dim), f32)
    wh = wh.at[:hidden, :hidden].set(params["whf"].astype(f32))
    wh = wh.at[:hidden, hp:hp + hidden].set(params["whi"].astype(f32))
    wh = wh.astype(mxu_dtype)   # bf16 by default: single-pass MXU, half VMEM

    wx = jnp.zeros((in_dim, g_dim), f32)
    wx = wx.at[:, :hidden].set(params["wxf"].astype(f32))
    wx = wx.at[:, hp:hp + hidden].set(params["wxi"].astype(f32))

    b = jnp.zeros((g_dim,), f32)
    b = b.at[:hidden].set(params["bf"].reshape(-1).astype(f32))
    b = b.at[hp:hp + hidden].set(params["bi"].reshape(-1).astype(f32))

    # Hoisted input projection: one seq-parallel matmul, emitted time-major so
    # the kernel streams [t_blk, BS_P, 2*HP] blocks with no transpose copy.
    gx = jnp.einsum("btd,dg->tbg", sequence.astype(f32), wx) + b
    # TODO(synk): for long sequences, cast gx to bf16 (halves the HBM stream —
    # matters most on v5e) or fuse the x-projection into the kernel to avoid
    # materializing gx in HBM entirely.

    t_blk = _pick_t_blk(seq_len, bs_p, g_dim, t_blk)
    t_pad = _round_up(seq_len, t_blk)
    mask_tail = (t_pad != seq_len)
    gx = jnp.pad(gx, ((0, t_pad - seq_len), (0, bs_p - bs), (0, 0)))
    n_blocks = t_pad // t_blk

    # Explicit VMEM cap: above the 16/32 MiB scoped defaults, below every
    # generation's physical VMEM (v7x: 64 MiB per TensorCore).
    vmem_needed = (2 * t_blk * bs_p * g_dim * 4                 # gx x2 bufs
                   + hp * g_dim * jnp.dtype(mxu_dtype).itemsize  # weights x1
                   + 8 * bs_p * hp * 4)                          # carries/outs
    vmem_limit = int(min(max(2 * vmem_needed, 32 << 20), 48 << 20))

    kernel = functools.partial(_recurrence_kernel, t_blk=t_blk, hp=hp,
                               seq_len=seq_len, mask_tail=mask_tail)

    h, c = pl.pallas_call(
        kernel,
        out_shape=(jax.ShapeDtypeStruct((bs_p, hp), f32),
                   jax.ShapeDtypeStruct((bs_p, hp), f32)),
        grid_spec=pltpu.PrefetchScalarGridSpec(
            num_scalar_prefetch=0,
            grid=(n_blocks,),
            in_specs=[
                # One block of t_blk timesteps of the precomputed projection.
                pl.BlockSpec((t_blk, bs_p, g_dim), lambda t: (t, 0, 0)),
                # Grid-invariant fused weights: single-buffered (never
                # re-fetched; halves their VMEM footprint vs. default 2x).
                pl.BlockSpec((hp, g_dim), lambda t: (0, 0),
                             pipeline_mode=pl.Buffered(1)),
            ],
            out_specs=[
                pl.BlockSpec((bs_p, hp), lambda t: (0, 0)),
                pl.BlockSpec((bs_p, hp), lambda t: (0, 0)),
            ],
            scratch_shapes=[
                pltpu.VMEM((bs_p, hp), f32),  # h carry
                pltpu.VMEM((bs_p, hp), f32),  # c carry
            ],
        ),
        compiler_params=pltpu.CompilerParams(
            # Recurrent carry across grid steps -> time axis is sequential.
            dimension_semantics=("arbitrary",),
            vmem_limit_bytes=vmem_limit),
    )(gx, wh)

    # TODO(synk): on v7x with bs_p >= 16, add a leading "parallel" batch grid
    # axis (per-core batch shards, carries sized (B_BLK, hp)) to use the
    # second TensorCore; neutral on v5e/v6e.

    return h[:bs, :hidden], c[:bs, :hidden]


def init_params(key, in_dim, hidden):
    """Deterministic init mimicking nn.Linear (uniform +/- 1/sqrt(fan_in)).

    PyTorch Linear weight is [hidden, in_dim+hidden] applied to cat((h, x)).
    We store it transposed and split: rows [0:hidden] -> W_h, [hidden:] -> W_x.
    """
    fan_in = in_dim + hidden
    bound = 1.0 / jnp.sqrt(fan_in)

    def linear(k):
        kw, kb = jax.random.split(k)
        w_t = jax.random.uniform(kw, (fan_in, hidden), jnp.float32, -bound, bound)
        b = jax.random.uniform(kb, (1, hidden), jnp.float32, -bound, bound)
        return w_t[:hidden, :], w_t[hidden:, :], b

    kf, ki, kc, ko = jax.random.split(key, 4)
    whf, wxf, bf = linear(kf)
    whi, wxi, bi = linear(ki)
    # candidate_gate / output_gate: defined in __init__ but unused in forward.
    _ = linear(kc)
    _ = linear(ko)
    return {"whf": whf, "wxf": wxf, "bf": bf,
            "whi": whi, "wxi": wxi, "bi": bi}


def rnn_reference(sequence, params):
    """Pure-JAX reference matching the PyTorch forward exactly (f32)."""
    bs, seq_len, _ = sequence.shape
    hidden = params["whf"].shape[1]
    h = jnp.zeros((bs, hidden), jnp.float32)
    c = jnp.zeros((bs, hidden), jnp.float32)
    for t in range(seq_len):
        x = sequence[:, t]
        f = jax.nn.sigmoid(h @ params["whf"] + x @ params["wxf"] + params["bf"])
        i = jax.nn.sigmoid(h @ params["whi"] + x @ params["wxi"] + params["bi"])
        c = f * c + i * i
        h = i * jnp.tanh(c)
    return h, c


if __name__ == "__main__":
    bs, seq_len, in_dim, hidden = 2, 30, 16, 32   # seq_len=30 as in the spec

    key = jax.random.PRNGKey(0)
    kp, kx = jax.random.split(key)
    params = init_params(kp, in_dim, hidden)
    sequence = jax.random.normal(kx, (bs, seq_len, in_dim), jnp.float32)

    h_ref, c_ref = rnn_reference(sequence, params)

    # Strict check: f32 MXU path, whole sequence in one grid step.
    h32, c32 = jax.block_until_ready(
        rnn_forward(sequence, params, mxu_dtype=jnp.float32))
    assert jnp.allclose(h32, h_ref, atol=1e-5, rtol=1e-5), "h mismatch (f32)"
    assert jnp.allclose(c32, c_ref, atol=1e-5, rtol=1e-5), "c mismatch (f32)"

    # Default fast path: bf16 MXU operands / f32 accumulation, loose tolerance.
    h, c = jax.block_until_ready(rnn_forward(sequence, params))
    assert jnp.allclose(h, h_ref, atol=2e-2, rtol=2e-2), "h mismatch (bf16)"
    assert jnp.allclose(c, c_ref, atol=2e-2, rtol=2e-2), "c mismatch (bf16)"

    # Exercise the multi-block + masked ragged-tail path (30 % 8 != 0).
    h2, c2 = jax.block_until_ready(rnn_forward(sequence, params, t_blk=8))
    assert jnp.allclose(h2, h_ref, atol=2e-2, rtol=2e-2), "h mismatch (tail)"
    assert jnp.allclose(c2, c_ref, atol=2e-2, rtol=2e-2), "c mismatch (tail)"

    print("KERNEL_OK")
</pallas_src>

<mosaic_0001>
module attributes {stable_mosaic.version = 11 : i64} {
  func.func @_recurrence_kernel(%arg0: i32, %arg1: memref<30x8x256xf32, #tpu.memory_space<vmem>>, %arg2: memref<128x256xf32, #tpu.memory_space<vmem>>, %arg3: memref<8x128xf32, #tpu.memory_space<vmem>>, %arg4: memref<8x128xf32, #tpu.memory_space<vmem>>, %arg5: memref<8x128xf32, #tpu.memory_space<vmem>>, %arg6: memref<8x128xf32, #tpu.memory_space<vmem>>) attributes {dimension_semantics = [#tpu.dimension_semantics<arbitrary>], iteration_bounds = array<i64: 1>, scalar_prefetch = 0 : i64, scratch_operands = 2 : i64, tpu.core_type = #tpu.core_type<tc>, window_params = [{transform_indices = @transform_0, window_bounds = array<i64: 30, 8, 256>}, {pipeline_mode = #tpu.pipeline_mode<synchronous>, transform_indices = @transform_1, window_bounds = array<i64: 128, 256>}, {pipeline_mode = #tpu.pipeline_mode<synchronous>, transform_indices = @transform_2, window_bounds = array<i64: 8, 128>}, {pipeline_mode = #tpu.pipeline_mode<synchronous>, transform_indices = @transform_3, window_bounds = array<i64: 8, 128>}]} {
    %c0_i32 = arith.constant 0 : i32
    %0 = arith.cmpi eq, %arg0, %c0_i32 : i32
    %1 = arith.extui %0 : i1 to i32
    %c0_i32_0 = arith.constant 0 : i32
    %2 = arith.cmpi ne, %1, %c0_i32_0 : i32
    scf.if %2 {
      %cst_226 = arith.constant 0.000000e+00 : f32
      %701 = vector.broadcast %cst_226 : f32 to vector<8x128xf32>
      %c0_227 = arith.constant 0 : index
      %c0_228 = arith.constant 0 : index
      %702 = vector.load %arg5[%c0_227, %c0_228] : memref<8x128xf32, #tpu.memory_space<vmem>>, vector<8x128xf32>
      tpu.vector_store %arg5[%c0_227, %c0_228], %701 {strides = array<i32>} : memref<8x128xf32, #tpu.memory_space<vmem>>, vector<8x128xf32>,
      %cst_229 = arith.constant 0.000000e+00 : f32
      %703 = vector.broadcast %cst_229 : f32 to vector<8x128xf32>
      %c0_230 = arith.constant 0 : index
      %c0_231 = arith.constant 0 : index
      %704 = vector.load %arg6[%c0_230, %c0_231] : memref<8x128xf32, #tpu.memory_space<vmem>>, vector<8x128xf32>
      tpu.vector_store %arg6[%c0_230, %c0_231], %703 {strides = array<i32>} : memref<8x128xf32, #tpu.memory_space<vmem>>, vector<8x128xf32>,
    } else {
    }
    %c0 = arith.constant 0 : index
    %c0_1 = arith.constant 0 : index
    %3 = vector.load %arg5[%c0, %c0_1] : memref<8x128xf32, #tpu.memory_space<vmem>>, vector<8x128xf32>
    %c0_2 = arith.constant 0 : index
    %c0_3 = arith.constant 0 : index
    %4 = vector.load %arg6[%c0_2, %c0_3] : memref<8x128xf32, #tpu.memory_space<vmem>>, vector<8x128xf32>
    %c0_i32_4 = arith.constant 0 : i32
    %c0_5 = arith.constant 0 : index
    %c0_6 = arith.constant 0 : index
    %5 = vector.load %arg2[%c0_5, %c0_6] : memref<128x256xf32, #tpu.memory_space<vmem>>, vector<128x256xf32>
    %cst = arith.constant dense<0.000000e+00> : vector<8x256xf32>
    %6 = tpu.matmul %3, %5, %cst {dimension_numbers = #tpu.dot_dimension_numbers<[1], [0], [0], [1], [0, 0, 1, 1], [], []>} : vector<8x128xf32>, vector<128x256xf32>, vector<8x256xf32> -> vector<8x256xf32>
    %7 = arith.index_cast %c0_i32_4 : i32 to index
    %c0_7 = arith.constant 0 : index
    %c0_8 = arith.constant 0 : index
    %8 = vector.load %arg1[%7, %c0_7, %c0_8] : memref<30x8x256xf32, #tpu.memory_space<vmem>>, vector<1x8x256xf32>
    %9 = vector.shape_cast %8 : vector<1x8x256xf32> to vector<8x256xf32>
    %10 = arith.addf %6, %9 : vector<8x256xf32>
    %11 = vector.extract_strided_slice %10 {offsets = [0, 0], sizes = [8, 128], strides = [1, 1]} : vector<8x256xf32> to vector<8x128xf32>
    %12 = arith.negf %11 : vector<8x128xf32>
    %13 = math.exp %12 : vector<8x128xf32>
    %cst_9 = arith.constant 1.000000e+00 : f32
    %14 = vector.broadcast %cst_9 : f32 to vector<8x128xf32>
    %15 = arith.addf %14, %13 : vector<8x128xf32>
    %16 = arith.divf %14, %15 : vector<8x128xf32>
    %17 = vector.extract_strided_slice %10 {offsets = [0, 128], sizes = [8, 128], strides = [1, 1]} : vector<8x256xf32> to vector<8x128xf32>
    %18 = arith.negf %17 : vector<8x128xf32>
    %19 = math.exp %18 : vector<8x128xf32>
    %cst_10 = arith.constant 1.000000e+00 : f32
    %20 = vector.broadcast %cst_10 : f32 to vector<8x128xf32>
    %21 = arith.addf %20, %19 : vector<8x128xf32>
    %22 = arith.divf %20, %21 : vector<8x128xf32>
    %23 = arith.mulf %16, %4 : vector<8x128xf32>
    %24 = arith.mulf %22, %22 : vector<8x128xf32>
    %25 = arith.addf %23, %24 : vector<8x128xf32>
    %26 = math.tanh %25 : vector<8x128xf32>
    %27 = arith.mulf %22, %26 : vector<8x128xf32>
    %c1_i32 = arith.constant 1 : i32
    %c0_11 = arith.constant 0 : index
    %c0_12 = arith.constant 0 : index
    %28 = vector.load %arg2[%c0_11, %c0_12] : memref<128x256xf32, #tpu.memory_space<vmem>>, vector<128x256xf32>
    %cst_13 = arith.constant dense<0.000000e+00> : vector<8x256xf32>
    %29 = tpu.matmul %27, %28, %cst_13 {dimension_numbers = #tpu.dot_dimension_numbers<[1], [0], [0], [1], [0, 0, 1, 1], [], []>} : vector<8x128xf32>, vector<128x256xf32>, vector<8x256xf32> -> vector<8x256xf32>
    %30 = arith.index_cast %c1_i32 : i32 to index
    %c0_14 = arith.constant 0 : index
    %c0_15 = arith.constant 0 : index
    %31 = vector.load %arg1[%30, %c0_14, %c0_15] : memref<30x8x256xf32, #tpu.memory_space<vmem>>, vector<1x8x256xf32>
    %32 = vector.shape_cast %31 : vector<1x8x256xf32> to vector<8x256xf32>
    %33 = arith.addf %29, %32 : vector<8x256xf32>
    %34 = vector.extract_strided_slice %33 {offsets = [0, 0], sizes = [8, 128], strides = [1, 1]} : vector<8x256xf32> to vector<8x128xf32>
    %35 = arith.negf %34 : vector<8x128xf32>
    %36 = math.exp %35 : vector<8x128xf32>
    %cst_16 = arith.constant 1.000000e+00 : f32
    %37 = vector.broadcast %cst_16 : f32 to vector<8x128xf32>
    %38 = arith.addf %37, %36 : vector<8x128xf32>
    %39 = arith.divf %37, %38 : vector<8x128xf32>
    %40 = vector.extract_strided_slice %33 {offsets = [0, 128], sizes = [8, 128], strides = [1, 1]} : vector<8x256xf32> to vector<8x128xf32>
    %41 = arith.negf %40 : vector<8x128xf32>
    %42 = math.exp %41 : vector<8x128xf32>
    %cst_17 = arith.constant 1.000000e+00 : f32
    %43 = vector.broadcast %cst_17 : f32 to vector<8x128xf32>
    %44 = arith.addf %43, %42 : vector<8x128xf32>
    %45 = arith.divf %43, %44 : vector<8x128xf32>
    %46 = arith.mulf %39, %25 : vector<8x128xf32>
    %47 = arith.mulf %45, %45 : vector<8x128xf32>
    %48 = arith.addf %46, %47 : vector<8x128xf32>
    %49 = math.tanh %48 : vector<8x128xf32>
    %50 = arith.mulf %45, %49 : vector<8x128xf32>
    %c2_i32 = arith.constant 2 : i32
    %c0_18 = arith.constant 0 : index
    %c0_19 = arith.constant 0 : index
    %51 = vector.load %arg2[%c0_18, %c0_19] : memref<128x256xf32, #tpu.memory_space<vmem>>, vector<128x256xf32>
    %cst_20 = arith.constant dense<0.000000e+00> : vector<8x256xf32>
    %52 = tpu.matmul %50, %51, %cst_20 {dimension_numbers = #tpu.dot_dimension_numbers<[1], [0], [0], [1], [0, 0, 1, 1], [], []>} : vector<8x128xf32>, vector<128x256xf32>, vector<8x256xf32> -> vector<8x256xf32>
    %53 = arith.index_cast %c2_i32 : i32 to index
    %c0_21 = arith.constant 0 : index
    %c0_22 = arith.constant 0 : index
    %54 = vector.load %arg1[%53, %c0_21, %c0_22] : memref<30x8x256xf32, #tpu.memory_space<vmem>>, vector<1x8x256xf32>
    %55 = vector.shape_cast %54 : vector<1x8x256xf32> to vector<8x256xf32>
    %56 = arith.addf %52, %55 : vector<8x256xf32>
    %57 = vector.extract_strided_slice %56 {offsets = [0, 0], sizes = [8, 128], strides = [1, 1]} : vector<8x256xf32> to vector<8x128xf32>
    %58 = arith.negf %57 : vector<8x128xf32>
    %59 = math.exp %58 : vector<8x128xf32>
    %cst_23 = arith.constant 1.000000e+00 : f32
    %60 = vector.broadcast %cst_23 : f32 to vector<8x128xf32>
    %61 = arith.addf %60, %59 : vector<8x128xf32>
    %62 = arith.divf %60, %61 : vector<8x128xf32>
    %63 = vector.extract_strided_slice %56 {offsets = [0, 128], sizes = [8, 128], strides = [1, 1]} : vector<8x256xf32> to vector<8x128xf32>
    %64 = arith.negf %63 : vector<8x128xf32>
    %65 = math.exp %64 : vector<8x128xf32>
    %cst_24 = arith.constant 1.000000e+00 : f32
    %66 = vector.broadcast %cst_24 : f32 to vector<8x128xf32>
    %67 = arith.addf %66, %65 : vector<8x128xf32>
    %68 = arith.divf %66, %67 : vector<8x128xf32>
    %69 = arith.mulf %62, %48 : vector<8x128xf32>
    %70 = arith.mulf %68, %68 : vector<8x128xf32>
    %71 = arith.addf %69, %70 : vector<8x128xf32>
    %72 = math.tanh %71 : vector<8x128xf32>
    %73 = arith.mulf %68, %72 : vector<8x128xf32>
    %c3_i32 = arith.constant 3 : i32
    %c0_25 = arith.constant 0 : index
    %c0_26 = arith.constant 0 : index
    %74 = vector.load %arg2[%c0_25, %c0_26] : memref<128x256xf32, #tpu.memory_space<vmem>>, vector<128x256xf32>
    %cst_27 = arith.constant dense<0.000000e+00> : vector<8x256xf32>
    %75 = tpu.matmul %73, %74, %cst_27 {dimension_numbers = #tpu.dot_dimension_numbers<[1], [0], [0], [1], [0, 0, 1, 1], [], []>} : vector<8x128xf32>, vector<128x256xf32>, vector<8x256xf32> -> vector<8x256xf32>
    %76 = arith.index_cast %c3_i32 : i32 to index
    %c0_28 = arith.constant 0 : index
    %c0_29 = arith.constant 0 : index
    %77 = vector.load %arg1[%76, %c0_28, %c0_29] : memref<30x8x256xf32, #tpu.memory_space<vmem>>, vector<1x8x256xf32>
    %78 = vector.shape_cast %77 : vector<1x8x256xf32> to vector<8x256xf32>
    %79 = arith.addf %75, %78 : vector<8x256xf32>
    %80 = vector.extract_strided_slice %79 {offsets = [0, 0], sizes = [8, 128], strides = [1, 1]} : vector<8x256xf32> to vector<8x128xf32>
    %81 = arith.negf %80 : vector<8x128xf32>
    %82 = math.exp %81 : vector<8x128xf32>
    %cst_30 = arith.constant 1.000000e+00 : f32
    %83 = vector.broadcast %cst_30 : f32 to vector<8x128xf32>
    %84 = arith.addf %83, %82 : vector<8x128xf32>
    %85 = arith.divf %83, %84 : vector<8x128xf32>
    %86 = vector.extract_strided_slice %79 {offsets = [0, 128], sizes = [8, 128], strides = [1, 1]} : vector<8x256xf32> to vector<8x128xf32>
    %87 = arith.negf %86 : vector<8x128xf32>
    %88 = math.exp %87 : vector<8x128xf32>
    %cst_31 = arith.constant 1.000000e+00 : f32
    %89 = vector.broadcast %cst_31 : f32 to vector<8x128xf32>
    %90 = arith.addf %89, %88 : vector<8x128xf32>
    %91 = arith.divf %89, %90 : vector<8x128xf32>
    %92 = arith.mulf %85, %71 : vector<8x128xf32>
    %93 = arith.mulf %91, %91 : vector<8x128xf32>
    %94 = arith.addf %92, %93 : vector<8x128xf32>
    %95 = math.tanh %94 : vector<8x128xf32>
    %96 = arith.mulf %91, %95 : vector<8x128xf32>
    %c4_i32 = arith.constant 4 : i32
    %c0_32 = arith.constant 0 : index
    %c0_33 = arith.constant 0 : index
    %97 = vector.load %arg2[%c0_32, %c0_33] : memref<128x256xf32, #tpu.memory_space<vmem>>, vector<128x256xf32>
    %cst_34 = arith.constant dense<0.000000e+00> : vector<8x256xf32>
    %98 = tpu.matmul %96, %97, %cst_34 {dimension_numbers = #tpu.dot_dimension_numbers<[1], [0], [0], [1], [0, 0, 1, 1], [], []>} : vector<8x128xf32>, vector<128x256xf32>, vector<8x256xf32> -> vector<8x256xf32>
    %99 = arith.index_cast %c4_i32 : i32 to index
    %c0_35 = arith.constant 0 : index
    %c0_36 = arith.constant 0 : index
    %100 = vector.load %arg1[%99, %c0_35, %c0_36] : memref<30x8x256xf32, #tpu.memory_space<vmem>>, vector<1x8x256xf32>
    %101 = vector.shape_cast %100 : vector<1x8x256xf32> to vector<8x256xf32>
    %102 = arith.addf %98, %101 : vector<8x256xf32>
    %103 = vector.extract_strided_slice %102 {offsets = [0, 0], sizes = [8, 128], strides = [1, 1]} : vector<8x256xf32> to vector<8x128xf32>
    %104 = arith.negf %103 : vector<8x128xf32>
    %105 = math.exp %104 : vector<8x128xf32>
    %cst_37 = arith.constant 1.000000e+00 : f32
    %106 = vector.broadcast %cst_37 : f32 to vector<8x128xf32>
    %107 = arith.addf %106, %105 : vector<8x128xf32>
    %108 = arith.divf %106, %107 : vector<8x128xf32>
    %109 = vector.extract_strided_slice %102 {offsets = [0, 128], sizes = [8, 128], strides = [1, 1]} : vector<8x256xf32> to vector<8x128xf32>
    %110 = arith.negf %109 : vector<8x128xf32>
    %111 = math.exp %110 : vector<8x128xf32>
    %cst_38 = arith.constant 1.000000e+00 : f32
    %112 = vector.broadcast %cst_38 : f32 to vector<8x128xf32>
    %113 = arith.addf %112, %111 : vector<8x128xf32>
    %114 = arith.divf %112, %113 : vector<8x128xf32>
    %115 = arith.mulf %108, %94 : vector<8x128xf32>
    %116 = arith.mulf %114, %114 : vector<8x128xf32>
    %117 = arith.addf %115, %116 : vector<8x128xf32>
    %118 = math.tanh %117 : vector<8x128xf32>
    %119 = arith.mulf %114, %118 : vector<8x128xf32>
    %c5_i32 = arith.constant 5 : i32
    %c0_39 = arith.constant 0 : index
    %c0_40 = arith.constant 0 : index
    %120 = vector.load %arg2[%c0_39, %c0_40] : memref<128x256xf32, #tpu.memory_space<vmem>>, vector<128x256xf32>
    %cst_41 = arith.constant dense<0.000000e+00> : vector<8x256xf32>
    %121 = tpu.matmul %119, %120, %cst_41 {dimension_numbers = #tpu.dot_dimension_numbers<[1], [0], [0], [1], [0, 0, 1, 1], [], []>} : vector<8x128xf32>, vector<128x256xf32>, vector<8x256xf32> -> vector<8x256xf32>
    %122 = arith.index_cast %c5_i32 : i32 to index
    %c0_42 = arith.constant 0 : index
    %c0_43 = arith.constant 0 : index
    %123 = vector.load %arg1[%122, %c0_42, %c0_43] : memref<30x8x256xf32, #tpu.memory_space<vmem>>, vector<1x8x256xf32>
    %124 = vector.shape_cast %123 : vector<1x8x256xf32> to vector<8x256xf32>
    %125 = arith.addf %121, %124 : vector<8x256xf32>
    %126 = vector.extract_strided_slice %125 {offsets = [0, 0], sizes = [8, 128], strides = [1, 1]} : vector<8x256xf32> to vector<8x128xf32>
    %127 = arith.negf %126 : vector<8x128xf32>
    %128 = math.exp %127 : vector<8x128xf32>
    %cst_44 = arith.constant 1.000000e+00 : f32
    %129 = vector.broadcast %cst_44 : f32 to vector<8x128xf32>
    %130 = arith.addf %129, %128 : vector<8x128xf32>
    %131 = arith.divf %129, %130 : vector<8x128xf32>
    %132 = vector.extract_strided_slice %125 {offsets = [0, 128], sizes = [8, 128], strides = [1, 1]} : vector<8x256xf32> to vector<8x128xf32>
    %133 = arith.negf %132 : vector<8x128xf32>
    %134 = math.exp %133 : vector<8x128xf32>
    %cst_45 = arith.constant 1.000000e+00 : f32
    %135 = vector.broadcast %cst_45 : f32 to vector<8x128xf32>
    %136 = arith.addf %135, %134 : vector<8x128xf32>
    %137 = arith.divf %135, %136 : vector<8x128xf32>
    %138 = arith.mulf %131, %117 : vector<8x128xf32>
    %139 = arith.mulf %137, %137 : vector<8x128xf32>
    %140 = arith.addf %138, %139 : vector<8x128xf32>
    %141 = math.tanh %140 : vector<8x128xf32>
    %142 = arith.mulf %137, %141 : vector<8x128xf32>
    %c6_i32 = arith.constant 6 : i32
    %c0_46 = arith.constant 0 : index
    %c0_47 = arith.constant 0 : index
    %143 = vector.load %arg2[%c0_46, %c0_47] : memref<128x256xf32, #tpu.memory_space<vmem>>, vector<128x256xf32>
    %cst_48 = arith.constant dense<0.000000e+00> : vector<8x256xf32>
    %144 = tpu.matmul %142, %143, %cst_48 {dimension_numbers = #tpu.dot_dimension_numbers<[1], [0], [0], [1], [0, 0, 1, 1], [], []>} : vector<8x128xf32>, vector<128x256xf32>, vector<8x256xf32> -> vector<8x256xf32>
    %145 = arith.index_cast %c6_i32 : i32 to index
    %c0_49 = arith.constant 0 : index
    %c0_50 = arith.constant 0 : index
    %146 = vector.load %arg1[%145, %c0_49, %c0_50] : memref<30x8x256xf32, #tpu.memory_space<vmem>>, vector<1x8x256xf32>
    %147 = vector.shape_cast %146 : vector<1x8x256xf32> to vector<8x256xf32>
    %148 = arith.addf %144, %147 : vector<8x256xf32>
    %149 = vector.extract_strided_slice %148 {offsets = [0, 0], sizes = [8, 128], strides = [1, 1]} : vector<8x256xf32> to vector<8x128xf32>
    %150 = arith.negf %149 : vector<8x128xf32>
    %151 = math.exp %150 : vector<8x128xf32>
    %cst_51 = arith.constant 1.000000e+00 : f32
    %152 = vector.broadcast %cst_51 : f32 to vector<8x128xf32>
    %153 = arith.addf %152, %151 : vector<8x128xf32>
    %154 = arith.divf %152, %153 : vector<8x128xf32>
    %155 = vector.extract_strided_slice %148 {offsets = [0, 128], sizes = [8, 128], strides = [1, 1]} : vector<8x256xf32> to vector<8x128xf32>
    %156 = arith.negf %155 : vector<8x128xf32>
    %157 = math.exp %156 : vector<8x128xf32>
    %cst_52 = arith.constant 1.000000e+00 : f32
    %158 = vector.broadcast %cst_52 : f32 to vector<8x128xf32>
    %159 = arith.addf %158, %157 : vector<8x128xf32>
    %160 = arith.divf %158, %159 : vector<8x128xf32>
    %161 = arith.mulf %154, %140 : vector<8x128xf32>
    %162 = arith.mulf %160, %160 : vector<8x128xf32>
    %163 = arith.addf %161, %162 : vector<8x128xf32>
    %164 = math.tanh %163 : vector<8x128xf32>
    %165 = arith.mulf %160, %164 : vector<8x128xf32>
    %c7_i32 = arith.constant 7 : i32
    %c0_53 = arith.constant 0 : index
    %c0_54 = arith.constant 0 : index
    %166 = vector.load %arg2[%c0_53, %c0_54] : memref<128x256xf32, #tpu.memory_space<vmem>>, vector<128x256xf32>
    %cst_55 = arith.constant dense<0.000000e+00> : vector<8x256xf32>
    %167 = tpu.matmul %165, %166, %cst_55 {dimension_numbers = #tpu.dot_dimension_numbers<[1], [0], [0], [1], [0, 0, 1, 1], [], []>} : vector<8x128xf32>, vector<128x256xf32>, vector<8x256xf32> -> vector<8x256xf32>
    %168 = arith.index_cast %c7_i32 : i32 to index
    %c0_56 = arith.constant 0 : index
    %c0_57 = arith.constant 0 : index
    %169 = vector.load %arg1[%168, %c0_56, %c0_57] : memref<30x8x256xf32, #tpu.memory_space<vmem>>, vector<1x8x256xf32>
    %170 = vector.shape_cast %169 : vector<1x8x256xf32> to vector<8x256xf32>
    %171 = arith.addf %167, %170 : vector<8x256xf32>
    %172 = vector.extract_strided_slice %171 {offsets = [0, 0], sizes = [8, 128], strides = [1, 1]} : vector<8x256xf32> to vector<8x128xf32>
    %173 = arith.negf %172 : vector<8x128xf32>
    %174 = math.exp %173 : vector<8x128xf32>
    %cst_58 = arith.constant 1.000000e+00 : f32
    %175 = vector.broadcast %cst_58 : f32 to vector<8x128xf32>
    %176 = arith.addf %175, %174 : vector<8x128xf32>
    %177 = arith.divf %175, %176 : vector<8x128xf32>
    %178 = vector.extract_strided_slice %171 {offsets = [0, 128], sizes = [8, 128], strides = [1, 1]} : vector<8x256xf32> to vector<8x128xf32>
    %179 = arith.negf %178 : vector<8x128xf32>
    %180 = math.exp %179 : vector<8x128xf32>
    %cst_59 = arith.constant 1.000000e+00 : f32
    %181 = vector.broadcast %cst_59 : f32 to vector<8x128xf32>
    %182 = arith.addf %181, %180 : vector<8x128xf32>
    %183 = arith.divf %181, %182 : vector<8x128xf32>
    %184 = arith.mulf %177, %163 : vector<8x128xf32>
    %185 = arith.mulf %183, %183 : vector<8x128xf32>
    %186 = arith.addf %184, %185 : vector<8x128xf32>
    %187 = math.tanh %186 : vector<8x128xf32>
    %188 = arith.mulf %183, %187 : vector<8x128xf32>
    %c8_i32 = arith.constant 8 : i32
    %c0_60 = arith.constant 0 : index
    %c0_61 = arith.constant 0 : index
    %189 = vector.load %arg2[%c0_60, %c0_61] : memref<128x256xf32, #tpu.memory_space<vmem>>, vector<128x256xf32>
    %cst_62 = arith.constant dense<0.000000e+00> : vector<8x256xf32>
    %190 = tpu.matmul %188, %189, %cst_62 {dimension_numbers = #tpu.dot_dimension_numbers<[1], [0], [0], [1], [0, 0, 1, 1], [], []>} : vector<8x128xf32>, vector<128x256xf32>, vector<8x256xf32> -> vector<8x256xf32>
    %191 = arith.index_cast %c8_i32 : i32 to index
    %c0_63 = arith.constant 0 : index
    %c0_64 = arith.constant 0 : index
    %192 = vector.load %arg1[%191, %c0_63, %c0_64] : memref<30x8x256xf32, #tpu.memory_space<vmem>>, vector<1x8x256xf32>
    %193 = vector.shape_cast %192 : vector<1x8x256xf32> to vector<8x256xf32>
    %194 = arith.addf %190, %193 : vector<8x256xf32>
    %195 = vector.extract_strided_slice %194 {offsets = [0, 0], sizes = [8, 128], strides = [1, 1]} : vector<8x256xf32> to vector<8x128xf32>
    %196 = arith.negf %195 : vector<8x128xf32>
    %197 = math.exp %196 : vector<8x128xf32>
    %cst_65 = arith.constant 1.000000e+00 : f32
    %198 = vector.broadcast %cst_65 : f32 to vector<8x128xf32>
    %199 = arith.addf %198, %197 : vector<8x128xf32>
    %200 = arith.divf %198, %199 : vector<8x128xf32>
    %201 = vector.extract_strided_slice %194 {offsets = [0, 128], sizes = [8, 128], strides = [1, 1]} : vector<8x256xf32> to vector<8x128xf32>
    %202 = arith.negf %201 : vector<8x128xf32>
    %203 = math.exp %202 : vector<8x128xf32>
    %cst_66 = arith.constant 1.000000e+00 : f32
    %204 = vector.broadcast %cst_66 : f32 to vector<8x128xf32>
    %205 = arith.addf %204, %203 : vector<8x128xf32>
    %206 = arith.divf %204, %205 : vector<8x128xf32>
    %207 = arith.mulf %200, %186 : vector<8x128xf32>
    %208 = arith.mulf %206, %206 : vector<8x128xf32>
    %209 = arith.addf %207, %208 : vector<8x128xf32>
    %210 = math.tanh %209 : vector<8x128xf32>
    %211 = arith.mulf %206, %210 : vector<8x128xf32>
    %c9_i32 = arith.constant 9 : i32
    %c0_67 = arith.constant 0 : index
    %c0_68 = arith.constant 0 : index
    %212 = vector.load %arg2[%c0_67, %c0_68] : memref<128x256xf32, #tpu.memory_space<vmem>>, vector<128x256xf32>
    %cst_69 = arith.constant dense<0.000000e+00> : vector<8x256xf32>
    %213 = tpu.matmul %211, %212, %cst_69 {dimension_numbers = #tpu.dot_dimension_numbers<[1], [0], [0], [1], [0, 0, 1, 1], [], []>} : vector<8x128xf32>, vector<128x256xf32>, vector<8x256xf32> -> vector<8x256xf32>
    %214 = arith.index_cast %c9_i32 : i32 to index
    %c0_70 = arith.constant 0 : index
    %c0_71 = arith.constant 0 : index
    %215 = vector.load %arg1[%214, %c0_70, %c0_71] : memref<30x8x256xf32, #tpu.memory_space<vmem>>, vector<1x8x256xf32>
    %216 = vector.shape_cast %215 : vector<1x8x256xf32> to vector<8x256xf32>
    %217 = arith.addf %213, %216 : vector<8x256xf32>
    %218 = vector.extract_strided_slice %217 {offsets = [0, 0], sizes = [8, 128], strides = [1, 1]} : vector<8x256xf32> to vector<8x128xf32>
    %219 = arith.negf %218 : vector<8x128xf32>
    %220 = math.exp %219 : vector<8x128xf32>
    %cst_72 = arith.constant 1.000000e+00 : f32
    %221 = vector.broadcast %cst_72 : f32 to vector<8x128xf32>
    %222 = arith.addf %221, %220 : vector<8x128xf32>
    %223 = arith.divf %221, %222 : vector<8x128xf32>
    %224 = vector.extract_strided_slice %217 {offsets = [0, 128], sizes = [8, 128], strides = [1, 1]} : vector<8x256xf32> to vector<8x128xf32>
    %225 = arith.negf %224 : vector<8x128xf32>
    %226 = math.exp %225 : vector<8x128xf32>
    %cst_73 = arith.constant 1.000000e+00 : f32
    %227 = vector.broadcast %cst_73 : f32 to vector<8x128xf32>
    %228 = arith.addf %227, %226 : vector<8x128xf32>
    %229 = arith.divf %227, %228 : vector<8x128xf32>
    %230 = arith.mulf %223, %209 : vector<8x128xf32>
    %231 = arith.mulf %229, %229 : vector<8x128xf32>
    %232 = arith.addf %230, %231 : vector<8x128xf32>
    %233 = math.tanh %232 : vector<8x128xf32>
    %234 = arith.mulf %229, %233 : vector<8x128xf32>
    %c10_i32 = arith.constant 10 : i32
    %c0_74 = arith.constant 0 : index
    %c0_75 = arith.constant 0 : index
    %235 = vector.load %arg2[%c0_74, %c0_75] : memref<128x256xf32, #tpu.memory_space<vmem>>, vector<128x256xf32>
    %cst_76 = arith.constant dense<0.000000e+00> : vector<8x256xf32>
    %236 = tpu.matmul %234, %235, %cst_76 {dimension_numbers = #tpu.dot_dimension_numbers<[1], [0], [0], [1], [0, 0, 1, 1], [], []>} : vector<8x128xf32>, vector<128x256xf32>, vector<8x256xf32> -> vector<8x256xf32>
    %237 = arith.index_cast %c10_i32 : i32 to index
    %c0_77 = arith.constant 0 : index
    %c0_78 = arith.constant 0 : index
    %238 = vector.load %arg1[%237, %c0_77, %c0_78] : memref<30x8x256xf32, #tpu.memory_space<vmem>>, vector<1x8x256xf32>
    %239 = vector.shape_cast %238 : vector<1x8x256xf32> to vector<8x256xf32>
    %240 = arith.addf %236, %239 : vector<8x256xf32>
    %241 = vector.extract_strided_slice %240 {offsets = [0, 0], sizes = [8, 128], strides = [1, 1]} : vector<8x256xf32> to vector<8x128xf32>
    %242 = arith.negf %241 : vector<8x128xf32>
    %243 = math.exp %242 : vector<8x128xf32>
    %cst_79 = arith.constant 1.000000e+00 : f32
    %244 = vector.broadcast %cst_79 : f32 to vector<8x128xf32>
    %245 = arith.addf %244, %243 : vector<8x128xf32>
    %246 = arith.divf %244, %245 : vector<8x128xf32>
    %247 = vector.extract_strided_slice %240 {offsets = [0, 128], sizes = [8, 128], strides = [1, 1]} : vector<8x256xf32> to vector<8x128xf32>
    %248 = arith.negf %247 : vector<8x128xf32>
    %249 = math.exp %248 : vector<8x128xf32>
    %cst_80 = arith.constant 1.000000e+00 : f32
    %250 = vector.broadcast %cst_80 : f32 to vector<8x128xf32>
    %251 = arith.addf %250, %249 : vector<8x128xf32>
    %252 = arith.divf %250, %251 : vector<8x128xf32>
    %253 = arith.mulf %246, %232 : vector<8x128xf32>
    %254 = arith.mulf %252, %252 : vector<8x128xf32>
    %255 = arith.addf %253, %254 : vector<8x128xf32>
    %256 = math.tanh %255 : vector<8x128xf32>
    %257 = arith.mulf %252, %256 : vector<8x128xf32>
    %c11_i32 = arith.constant 11 : i32
    %c0_81 = arith.constant 0 : index
    %c0_82 = arith.constant 0 : index
    %258 = vector.load %arg2[%c0_81, %c0_82] : memref<128x256xf32, #tpu.memory_space<vmem>>, vector<128x256xf32>
    %cst_83 = arith.constant dense<0.000000e+00> : vector<8x256xf32>
    %259 = tpu.matmul %257, %258, %cst_83 {dimension_numbers = #tpu.dot_dimension_numbers<[1], [0], [0], [1], [0, 0, 1, 1], [], []>} : vector<8x128xf32>, vector<128x256xf32>, vector<8x256xf32> -> vector<8x256xf32>
    %260 = arith.index_cast %c11_i32 : i32 to index
    %c0_84 = arith.constant 0 : index
    %c0_85 = arith.constant 0 : index
    %261 = vector.load %arg1[%260, %c0_84, %c0_85] : memref<30x8x256xf32, #tpu.memory_space<vmem>>, vector<1x8x256xf32>
    %262 = vector.shape_cast %261 : vector<1x8x256xf32> to vector<8x256xf32>
    %263 = arith.addf %259, %262 : vector<8x256xf32>
    %264 = vector.extract_strided_slice %263 {offsets = [0, 0], sizes = [8, 128], strides = [1, 1]} : vector<8x256xf32> to vector<8x128xf32>
    %265 = arith.negf %264 : vector<8x128xf32>
    %266 = math.exp %265 : vector<8x128xf32>
    %cst_86 = arith.constant 1.000000e+00 : f32
    %267 = vector.broadcast %cst_86 : f32 to vector<8x128xf32>
    %268 = arith.addf %267, %266 : vector<8x128xf32>
    %269 = arith.divf %267, %268 : vector<8x128xf32>
    %270 = vector.extract_strided_slice %263 {offsets = [0, 128], sizes = [8, 128], strides = [1, 1]} : vector<8x256xf32> to vector<8x128xf32>
    %271 = arith.negf %270 : vector<8x128xf32>
    %272 = math.exp %271 : vector<8x128xf32>
    %cst_87 = arith.constant 1.000000e+00 : f32
    %273 = vector.broadcast %cst_87 : f32 to vector<8x128xf32>
    %274 = arith.addf %273, %272 : vector<8x128xf32>
    %275 = arith.divf %273, %274 : vector<8x128xf32>
    %276 = arith.mulf %269, %255 : vector<8x128xf32>
    %277 = arith.mulf %275, %275 : vector<8x128xf32>
    %278 = arith.addf %276, %277 : vector<8x128xf32>
    %279 = math.tanh %278 : vector<8x128xf32>
    %280 = arith.mulf %275, %279 : vector<8x128xf32>
    %c12_i32 = arith.constant 12 : i32
    %c0_88 = arith.constant 0 : index
    %c0_89 = arith.constant 0 : index
    %281 = vector.load %arg2[%c0_88, %c0_89] : memref<128x256xf32, #tpu.memory_space<vmem>>, vector<128x256xf32>
    %cst_90 = arith.constant dense<0.000000e+00> : vector<8x256xf32>
    %282 = tpu.matmul %280, %281, %cst_90 {dimension_numbers = #tpu.dot_dimension_numbers<[1], [0], [0], [1], [0, 0, 1, 1], [], []>} : vector<8x128xf32>, vector<128x256xf32>, vector<8x256xf32> -> vector<8x256xf32>
    %283 = arith.index_cast %c12_i32 : i32 to index
    %c0_91 = arith.constant 0 : index
    %c0_92 = arith.constant 0 : index
    %284 = vector.load %arg1[%283, %c0_91, %c0_92] : memref<30x8x256xf32, #tpu.memory_space<vmem>>, vector<1x8x256xf32>
    %285 = vector.shape_cast %284 : vector<1x8x256xf32> to vector<8x256xf32>
    %286 = arith.addf %282, %285 : vector<8x256xf32>
    %287 = vector.extract_strided_slice %286 {offsets = [0, 0], sizes = [8, 128], strides = [1, 1]} : vector<8x256xf32> to vector<8x128xf32>
    %288 = arith.negf %287 : vector<8x128xf32>
    %289 = math.exp %288 : vector<8x128xf32>
    %cst_93 = arith.constant 1.000000e+00 : f32
    %290 = vector.broadcast %cst_93 : f32 to vector<8x128xf32>
    %291 = arith.addf %290, %289 : vector<8x128xf32>
    %292 = arith.divf %290, %291 : vector<8x128xf32>
    %293 = vector.extract_strided_slice %286 {offsets = [0, 128], sizes = [8, 128], strides = [1, 1]} : vector<8x256xf32> to vector<8x128xf32>
    %294 = arith.negf %293 : vector<8x128xf32>
    %295 = math.exp %294 : vector<8x128xf32>
    %cst_94 = arith.constant 1.000000e+00 : f32
    %296 = vector.broadcast %cst_94 : f32 to vector<8x128xf32>
    %297 = arith.addf %296, %295 : vector<8x128xf32>
    %298 = arith.divf %296, %297 : vector<8x128xf32>
    %299 = arith.mulf %292, %278 : vector<8x128xf32>
    %300 = arith.mulf %298, %298 : vector<8x128xf32>
    %301 = arith.addf %299, %300 : vector<8x128xf32>
    %302 = math.tanh %301 : vector<8x128xf32>
    %303 = arith.mulf %298, %302 : vector<8x128xf32>
    %c13_i32 = arith.constant 13 : i32
    %c0_95 = arith.constant 0 : index
    %c0_96 = arith.constant 0 : index
    %304 = vector.load %arg2[%c0_95, %c0_96] : memref<128x256xf32, #tpu.memory_space<vmem>>, vector<128x256xf32>
    %cst_97 = arith.constant dense<0.000000e+00> : vector<8x256xf32>
    %305 = tpu.matmul %303, %304, %cst_97 {dimension_numbers = #tpu.dot_dimension_numbers<[1], [0], [0], [1], [0, 0, 1, 1], [], []>} : vector<8x128xf32>, vector<128x256xf32>, vector<8x256xf32> -> vector<8x256xf32>
    %306 = arith.index_cast %c13_i32 : i32 to index
    %c0_98 = arith.constant 0 : index
    %c0_99 = arith.constant 0 : index
    %307 = vector.load %arg1[%306, %c0_98, %c0_99] : memref<30x8x256xf32, #tpu.memory_space<vmem>>, vector<1x8x256xf32>
    %308 = vector.shape_cast %307 : vector<1x8x256xf32> to vector<8x256xf32>
    %309 = arith.addf %305, %308 : vector<8x256xf32>
    %310 = vector.extract_strided_slice %309 {offsets = [0, 0], sizes = [8, 128], strides = [1, 1]} : vector<8x256xf32> to vector<8x128xf32>
    %311 = arith.negf %310 : vector<8x128xf32>
    %312 = math.exp %311 : vector<8x128xf32>
    %cst_100 = arith.constant 1.000000e+00 : f32
    %313 = vector.broadcast %cst_100 : f32 to vector<8x128xf32>
    %314 = arith.addf %313, %312 : vector<8x128xf32>
    %315 = arith.divf %313, %314 : vector<8x128xf32>
    %316 = vector.extract_strided_slice %309 {offsets = [0, 128], sizes = [8, 128], strides = [1, 1]} : vector<8x256xf32> to vector<8x128xf32>
    %317 = arith.negf %316 : vector<8x128xf32>
    %318 = math.exp %317 : vector<8x128xf32>
    %cst_101 = arith.constant 1.000000e+00 : f32
    %319 = vector.broadcast %cst_101 : f32 to vector<8x128xf32>
    %320 = arith.addf %319, %318 : vector<8x128xf32>
    %321 = arith.divf %319, %320 : vector<8x128xf32>
    %322 = arith.mulf %315, %301 : vector<8x128xf32>
    %323 = arith.mulf %321, %321 : vector<8x128xf32>
    %324 = arith.addf %322, %323 : vector<8x128xf32>
    %325 = math.tanh %324 : vector<8x128xf32>
    %326 = arith.mulf %321, %325 : vector<8x128xf32>
    %c14_i32 = arith.constant 14 : i32
    %c0_102 = arith.constant 0 : index
    %c0_103 = arith.constant 0 : index
    %327 = vector.load %arg2[%c0_102, %c0_103] : memref<128x256xf32, #tpu.memory_space<vmem>>, vector<128x256xf32>
    %cst_104 = arith.constant dense<0.000000e+00> : vector<8x256xf32>
    %328 = tpu.matmul %326, %327, %cst_104 {dimension_numbers = #tpu.dot_dimension_numbers<[1], [0], [0], [1], [0, 0, 1, 1], [], []>} : vector<8x128xf32>, vector<128x256xf32>, vector<8x256xf32> -> vector<8x256xf32>
    %329 = arith.index_cast %c14_i32 : i32 to index
    %c0_105 = arith.constant 0 : index
    %c0_106 = arith.constant 0 : index
    %330 = vector.load %arg1[%329, %c0_105, %c0_106] : memref<30x8x256xf32, #tpu.memory_space<vmem>>, vector<1x8x256xf32>
    %331 = vector.shape_cast %330 : vector<1x8x256xf32> to vector<8x256xf32>
    %332 = arith.addf %328, %331 : vector<8x256xf32>
    %333 = vector.extract_strided_slice %332 {offsets = [0, 0], sizes = [8, 128], strides = [1, 1]} : vector<8x256xf32> to vector<8x128xf32>
    %334 = arith.negf %333 : vector<8x128xf32>
    %335 = math.exp %334 : vector<8x128xf32>
    %cst_107 = arith.constant 1.000000e+00 : f32
    %336 = vector.broadcast %cst_107 : f32 to vector<8x128xf32>
    %337 = arith.addf %336, %335 : vector<8x128xf32>
    %338 = arith.divf %336, %337 : vector<8x128xf32>
    %339 = vector.extract_strided_slice %332 {offsets = [0, 128], sizes = [8, 128], strides = [1, 1]} : vector<8x256xf32> to vector<8x128xf32>
    %340 = arith.negf %339 : vector<8x128xf32>
    %341 = math.exp %340 : vector<8x128xf32>
    %cst_108 = arith.constant 1.000000e+00 : f32
    %342 = vector.broadcast %cst_108 : f32 to vector<8x128xf32>
    %343 = arith.addf %342, %341 : vector<8x128xf32>
    %344 = arith.divf %342, %343 : vector<8x128xf32>
    %345 = arith.mulf %338, %324 : vector<8x128xf32>
    %346 = arith.mulf %344, %344 : vector<8x128xf32>
    %347 = arith.addf %345, %346 : vector<8x128xf32>
    %348 = math.tanh %347 : vector<8x128xf32>
    %349 = arith.mulf %344, %348 : vector<8x128xf32>
    %c15_i32 = arith.constant 15 : i32
    %c0_109 = arith.constant 0 : index
    %c0_110 = arith.constant 0 : index
    %350 = vector.load %arg2[%c0_109, %c0_110] : memref<128x256xf32, #tpu.memory_space<vmem>>, vector<128x256xf32>
    %cst_111 = arith.constant dense<0.000000e+00> : vector<8x256xf32>
    %351 = tpu.matmul %349, %350, %cst_111 {dimension_numbers = #tpu.dot_dimension_numbers<[1], [0], [0], [1], [0, 0, 1, 1], [], []>} : vector<8x128xf32>, vector<128x256xf32>, vector<8x256xf32> -> vector<8x256xf32>
    %352 = arith.index_cast %c15_i32 : i32 to index
    %c0_112 = arith.constant 0 : index
    %c0_113 = arith.constant 0 : index
    %353 = vector.load %arg1[%352, %c0_112, %c0_113] : memref<30x8x256xf32, #tpu.memory_space<vmem>>, vector<1x8x256xf32>
    %354 = vector.shape_cast %353 : vector<1x8x256xf32> to vector<8x256xf32>
    %355 = arith.addf %351, %354 : vector<8x256xf32>
    %356 = vector.extract_strided_slice %355 {offsets = [0, 0], sizes = [8, 128], strides = [1, 1]} : vector<8x256xf32> to vector<8x128xf32>
    %357 = arith.negf %356 : vector<8x128xf32>
    %358 = math.exp %357 : vector<8x128xf32>
    %cst_114 = arith.constant 1.000000e+00 : f32
    %359 = vector.broadcast %cst_114 : f32 to vector<8x128xf32>
    %360 = arith.addf %359, %358 : vector<8x128xf32>
    %361 = arith.divf %359, %360 : vector<8x128xf32>
    %362 = vector.extract_strided_slice %355 {offsets = [0, 128], sizes = [8, 128], strides = [1, 1]} : vector<8x256xf32> to vector<8x128xf32>
    %363 = arith.negf %362 : vector<8x128xf32>
    %364 = math.exp %363 : vector<8x128xf32>
    %cst_115 = arith.constant 1.000000e+00 : f32
    %365 = vector.broadcast %cst_115 : f32 to vector<8x128xf32>
    %366 = arith.addf %365, %364 : vector<8x128xf32>
    %367 = arith.divf %365, %366 : vector<8x128xf32>
    %368 = arith.mulf %361, %347 : vector<8x128xf32>
    %369 = arith.mulf %367, %367 : vector<8x128xf32>
    %370 = arith.addf %368, %369 : vector<8x128xf32>
    %371 = math.tanh %370 : vector<8x128xf32>
    %372 = arith.mulf %367, %371 : vector<8x128xf32>
    %c16_i32 = arith.constant 16 : i32
    %c0_116 = arith.constant 0 : index
    %c0_117 = arith.constant 0 : index
    %373 = vector.load %arg2[%c0_116, %c0_117] : memref<128x256xf32, #tpu.memory_space<vmem>>, vector<128x256xf32>
    %cst_118 = arith.constant dense<0.000000e+00> : vector<8x256xf32>
    %374 = tpu.matmul %372, %373, %cst_118 {dimension_numbers = #tpu.dot_dimension_numbers<[1], [0], [0], [1], [0, 0, 1, 1], [], []>} : vector<8x128xf32>, vector<128x256xf32>, vector<8x256xf32> -> vector<8x256xf32>
    %375 = arith.index_cast %c16_i32 : i32 to index
    %c0_119 = arith.constant 0 : index
    %c0_120 = arith.constant 0 : index
    %376 = vector.load %arg1[%375, %c0_119, %c0_120] : memref<30x8x256xf32, #tpu.memory_space<vmem>>, vector<1x8x256xf32>
    %377 = vector.shape_cast %376 : vector<1x8x256xf32> to vector<8x256xf32>
    %378 = arith.addf %374, %377 : vector<8x256xf32>
    %379 = vector.extract_strided_slice %378 {offsets = [0, 0], sizes = [8, 128], strides = [1, 1]} : vector<8x256xf32> to vector<8x128xf32>
    %380 = arith.negf %379 : vector<8x128xf32>
    %381 = math.exp %380 : vector<8x128xf32>
    %cst_121 = arith.constant 1.000000e+00 : f32
    %382 = vector.broadcast %cst_121 : f32 to vector<8x128xf32>
    %383 = arith.addf %382, %381 : vector<8x128xf32>
    %384 = arith.divf %382, %383 : vector<8x128xf32>
    %385 = vector.extract_strided_slice %378 {offsets = [0, 128], sizes = [8, 128], strides = [1, 1]} : vector<8x256xf32> to vector<8x128xf32>
    %386 = arith.negf %385 : vector<8x128xf32>
    %387 = math.exp %386 : vector<8x128xf32>
    %cst_122 = arith.constant 1.000000e+00 : f32
    %388 = vector.broadcast %cst_122 : f32 to vector<8x128xf32>
    %389 = arith.addf %388, %387 : vector<8x128xf32>
    %390 = arith.divf %388, %389 : vector<8x128xf32>
    %391 = arith.mulf %384, %370 : vector<8x128xf32>
    %392 = arith.mulf %390, %390 : vector<8x128xf32>
    %393 = arith.addf %391, %392 : vector<8x128xf32>
    %394 = math.tanh %393 : vector<8x128xf32>
    %395 = arith.mulf %390, %394 : vector<8x128xf32>
    %c17_i32 = arith.constant 17 : i32
    %c0_123 = arith.constant 0 : index
    %c0_124 = arith.constant 0 : index
    %396 = vector.load %arg2[%c0_123, %c0_124] : memref<128x256xf32, #tpu.memory_space<vmem>>, vector<128x256xf32>
    %cst_125 = arith.constant dense<0.000000e+00> : vector<8x256xf32>
    %397 = tpu.matmul %395, %396, %cst_125 {dimension_numbers = #tpu.dot_dimension_numbers<[1], [0], [0], [1], [0, 0, 1, 1], [], []>} : vector<8x128xf32>, vector<128x256xf32>, vector<8x256xf32> -> vector<8x256xf32>
    %398 = arith.index_cast %c17_i32 : i32 to index
    %c0_126 = arith.constant 0 : index
    %c0_127 = arith.constant 0 : index
    %399 = vector.load %arg1[%398, %c0_126, %c0_127] : memref<30x8x256xf32, #tpu.memory_space<vmem>>, vector<1x8x256xf32>
    %400 = vector.shape_cast %399 : vector<1x8x256xf32> to vector<8x256xf32>
    %401 = arith.addf %397, %400 : vector<8x256xf32>
    %402 = vector.extract_strided_slice %401 {offsets = [0, 0], sizes = [8, 128], strides = [1, 1]} : vector<8x256xf32> to vector<8x128xf32>
    %403 = arith.negf %402 : vector<8x128xf32>
    %404 = math.exp %403 : vector<8x128xf32>
    %cst_128 = arith.constant 1.000000e+00 : f32
    %405 = vector.broadcast %cst_128 : f32 to vector<8x128xf32>
    %406 = arith.addf %405, %404 : vector<8x128xf32>
    %407 = arith.divf %405, %406 : vector<8x128xf32>
    %408 = vector.extract_strided_slice %401 {offsets = [0, 128], sizes = [8, 128], strides = [1, 1]} : vector<8x256xf32> to vector<8x128xf32>
    %409 = arith.negf %408 : vector<8x128xf32>
    %410 = math.exp %409 : vector<8x128xf32>
    %cst_129 = arith.constant 1.000000e+00 : f32
    %411 = vector.broadcast %cst_129 : f32 to vector<8x128xf32>
    %412 = arith.addf %411, %410 : vector<8x128xf32>
    %413 = arith.divf %411, %412 : vector<8x128xf32>
    %414 = arith.mulf %407, %393 : vector<8x128xf32>
    %415 = arith.mulf %413, %413 : vector<8x128xf32>
    %416 = arith.addf %414, %415 : vector<8x128xf32>
    %417 = math.tanh %416 : vector<8x128xf32>
    %418 = arith.mulf %413, %417 : vector<8x128xf32>
    %c18_i32 = arith.constant 18 : i32
    %c0_130 = arith.constant 0 : index
    %c0_131 = arith.constant 0 : index
    %419 = vector.load %arg2[%c0_130, %c0_131] : memref<128x256xf32, #tpu.memory_space<vmem>>, vector<128x256xf32>
    %cst_132 = arith.constant dense<0.000000e+00> : vector<8x256xf32>
    %420 = tpu.matmul %418, %419, %cst_132 {dimension_numbers = #tpu.dot_dimension_numbers<[1], [0], [0], [1], [0, 0, 1, 1], [], []>} : vector<8x128xf32>, vector<128x256xf32>, vector<8x256xf32> -> vector<8x256xf32>
    %421 = arith.index_cast %c18_i32 : i32 to index
    %c0_133 = arith.constant 0 : index
    %c0_134 = arith.constant 0 : index
    %422 = vector.load %arg1[%421, %c0_133, %c0_134] : memref<30x8x256xf32, #tpu.memory_space<vmem>>, vector<1x8x256xf32>
    %423 = vector.shape_cast %422 : vector<1x8x256xf32> to vector<8x256xf32>
    %424 = arith.addf %420, %423 : vector<8x256xf32>
    %425 = vector.extract_strided_slice %424 {offsets = [0, 0], sizes = [8, 128], strides = [1, 1]} : vector<8x256xf32> to vector<8x128xf32>
    %426 = arith.negf %425 : vector<8x128xf32>
    %427 = math.exp %426 : vector<8x128xf32>
    %cst_135 = arith.constant 1.000000e+00 : f32
    %428 = vector.broadcast %cst_135 : f32 to vector<8x128xf32>
    %429 = arith.addf %428, %427 : vector<8x128xf32>
    %430 = arith.divf %428, %429 : vector<8x128xf32>
    %431 = vector.extract_strided_slice %424 {offsets = [0, 128], sizes = [8, 128], strides = [1, 1]} : vector<8x256xf32> to vector<8x128xf32>
    %432 = arith.negf %431 : vector<8x128xf32>
    %433 = math.exp %432 : vector<8x128xf32>
    %cst_136 = arith.constant 1.000000e+00 : f32
    %434 = vector.broadcast %cst_136 : f32 to vector<8x128xf32>
    %435 = arith.addf %434, %433 : vector<8x128xf32>
    %436 = arith.divf %434, %435 : vector<8x128xf32>
    %437 = arith.mulf %430, %416 : vector<8x128xf32>
    %438 = arith.mulf %436, %436 : vector<8x128xf32>
    %439 = arith.addf %437, %438 : vector<8x128xf32>
    %440 = math.tanh %439 : vector<8x128xf32>
    %441 = arith.mulf %436, %440 : vector<8x128xf32>
    %c19_i32 = arith.constant 19 : i32
    %c0_137 = arith.constant 0 : index
    %c0_138 = arith.constant 0 : index
    %442 = vector.load %arg2[%c0_137, %c0_138] : memref<128x256xf32, #tpu.memory_space<vmem>>, vector<128x256xf32>
    %cst_139 = arith.constant dense<0.000000e+00> : vector<8x256xf32>
    %443 = tpu.matmul %441, %442, %cst_139 {dimension_numbers = #tpu.dot_dimension_numbers<[1], [0], [0], [1], [0, 0, 1, 1], [], []>} : vector<8x128xf32>, vector<128x256xf32>, vector<8x256xf32> -> vector<8x256xf32>
    %444 = arith.index_cast %c19_i32 : i32 to index
    %c0_140 = arith.constant 0 : index
    %c0_141 = arith.constant 0 : index
    %445 = vector.load %arg1[%444, %c0_140, %c0_141] : memref<30x8x256xf32, #tpu.memory_space<vmem>>, vector<1x8x256xf32>
    %446 = vector.shape_cast %445 : vector<1x8x256xf32> to vector<8x256xf32>
    %447 = arith.addf %443, %446 : vector<8x256xf32>
    %448 = vector.extract_strided_slice %447 {offsets = [0, 0], sizes = [8, 128], strides = [1, 1]} : vector<8x256xf32> to vector<8x128xf32>
    %449 = arith.negf %448 : vector<8x128xf32>
    %450 = math.exp %449 : vector<8x128xf32>
    %cst_142 = arith.constant 1.000000e+00 : f32
    %451 = vector.broadcast %cst_142 : f32 to vector<8x128xf32>
    %452 = arith.addf %451, %450 : vector<8x128xf32>
    %453 = arith.divf %451, %452 : vector<8x128xf32>
    %454 = vector.extract_strided_slice %447 {offsets = [0, 128], sizes = [8, 128], strides = [1, 1]} : vector<8x256xf32> to vector<8x128xf32>
    %455 = arith.negf %454 : vector<8x128xf32>
    %456 = math.exp %455 : vector<8x128xf32>
    %cst_143 = arith.constant 1.000000e+00 : f32
    %457 = vector.broadcast %cst_143 : f32 to vector<8x128xf32>
    %458 = arith.addf %457, %456 : vector<8x128xf32>
    %459 = arith.divf %457, %458 : vector<8x128xf32>
    %460 = arith.mulf %453, %439 : vector<8x128xf32>
    %461 = arith.mulf %459, %459 : vector<8x128xf32>
    %462 = arith.addf %460, %461 : vector<8x128xf32>
    %463 = math.tanh %462 : vector<8x128xf32>
    %464 = arith.mulf %459, %463 : vector<8x128xf32>
    %c20_i32 = arith.constant 20 : i32
    %c0_144 = arith.constant 0 : index
    %c0_145 = arith.constant 0 : index
    %465 = vector.load %arg2[%c0_144, %c0_145] : memref<128x256xf32, #tpu.memory_space<vmem>>, vector<128x256xf32>
    %cst_146 = arith.constant dense<0.000000e+00> : vector<8x256xf32>
    %466 = tpu.matmul %464, %465, %cst_146 {dimension_numbers = #tpu.dot_dimension_numbers<[1], [0], [0], [1], [0, 0, 1, 1], [], []>} : vector<8x128xf32>, vector<128x256xf32>, vector<8x256xf32> -> vector<8x256xf32>
    %467 = arith.index_cast %c20_i32 : i32 to index
    %c0_147 = arith.constant 0 : index
    %c0_148 = arith.constant 0 : index
    %468 = vector.load %arg1[%467, %c0_147, %c0_148] : memref<30x8x256xf32, #tpu.memory_space<vmem>>, vector<1x8x256xf32>
    %469 = vector.shape_cast %468 : vector<1x8x256xf32> to vector<8x256xf32>
    %470 = arith.addf %466, %469 : vector<8x256xf32>
    %471 = vector.extract_strided_slice %470 {offsets = [0, 0], sizes = [8, 128], strides = [1, 1]} : vector<8x256xf32> to vector<8x128xf32>
    %472 = arith.negf %471 : vector<8x128xf32>
    %473 = math.exp %472 : vector<8x128xf32>
    %cst_149 = arith.constant 1.000000e+00 : f32
    %474 = vector.broadcast %cst_149 : f32 to vector<8x128xf32>
    %475 = arith.addf %474, %473 : vector<8x128xf32>
    %476 = arith.divf %474, %475 : vector<8x128xf32>
    %477 = vector.extract_strided_slice %470 {offsets = [0, 128], sizes = [8, 128], strides = [1, 1]} : vector<8x256xf32> to vector<8x128xf32>
    %478 = arith.negf %477 : vector<8x128xf32>
    %479 = math.exp %478 : vector<8x128xf32>
    %cst_150 = arith.constant 1.000000e+00 : f32
    %480 = vector.broadcast %cst_150 : f32 to vector<8x128xf32>
    %481 = arith.addf %480, %479 : vector<8x128xf32>
    %482 = arith.divf %480, %481 : vector<8x128xf32>
    %483 = arith.mulf %476, %462 : vector<8x128xf32>
    %484 = arith.mulf %482, %482 : vector<8x128xf32>
    %485 = arith.addf %483, %484 : vector<8x128xf32>
    %486 = math.tanh %485 : vector<8x128xf32>
    %487 = arith.mulf %482, %486 : vector<8x128xf32>
    %c21_i32 = arith.constant 21 : i32
    %c0_151 = arith.constant 0 : index
    %c0_152 = arith.constant 0 : index
    %488 = vector.load %arg2[%c0_151, %c0_152] : memref<128x256xf32, #tpu.memory_space<vmem>>, vector<128x256xf32>
    %cst_153 = arith.constant dense<0.000000e+00> : vector<8x256xf32>
    %489 = tpu.matmul %487, %488, %cst_153 {dimension_numbers = #tpu.dot_dimension_numbers<[1], [0], [0], [1], [0, 0, 1, 1], [], []>} : vector<8x128xf32>, vector<128x256xf32>, vector<8x256xf32> -> vector<8x256xf32>
    %490 = arith.index_cast %c21_i32 : i32 to index
    %c0_154 = arith.constant 0 : index
    %c0_155 = arith.constant 0 : index
    %491 = vector.load %arg1[%490, %c0_154, %c0_155] : memref<30x8x256xf32, #tpu.memory_space<vmem>>, vector<1x8x256xf32>
    %492 = vector.shape_cast %491 : vector<1x8x256xf32> to vector<8x256xf32>
    %493 = arith.addf %489, %492 : vector<8x256xf32>
    %494 = vector.extract_strided_slice %493 {offsets = [0, 0], sizes = [8, 128], strides = [1, 1]} : vector<8x256xf32> to vector<8x128xf32>
    %495 = arith.negf %494 : vector<8x128xf32>
    %496 = math.exp %495 : vector<8x128xf32>
    %cst_156 = arith.constant 1.000000e+00 : f32
    %497 = vector.broadcast %cst_156 : f32 to vector<8x128xf32>
    %498 = arith.addf %497, %496 : vector<8x128xf32>
    %499 = arith.divf %497, %498 : vector<8x128xf32>
    %500 = vector.extract_strided_slice %493 {offsets = [0, 128], sizes = [8, 128], strides = [1, 1]} : vector<8x256xf32> to vector<8x128xf32>
    %501 = arith.negf %500 : vector<8x128xf32>
    %502 = math.exp %501 : vector<8x128xf32>
    %cst_157 = arith.constant 1.000000e+00 : f32
    %503 = vector.broadcast %cst_157 : f32 to vector<8x128xf32>
    %504 = arith.addf %503, %502 : vector<8x128xf32>
    %505 = arith.divf %503, %504 : vector<8x128xf32>
    %506 = arith.mulf %499, %485 : vector<8x128xf32>
    %507 = arith.mulf %505, %505 : vector<8x128xf32>
    %508 = arith.addf %506, %507 : vector<8x128xf32>
    %509 = math.tanh %508 : vector<8x128xf32>
    %510 = arith.mulf %505, %509 : vector<8x128xf32>
    %c22_i32 = arith.constant 22 : i32
    %c0_158 = arith.constant 0 : index
    %c0_159 = arith.constant 0 : index
    %511 = vector.load %arg2[%c0_158, %c0_159] : memref<128x256xf32, #tpu.memory_space<vmem>>, vector<128x256xf32>
    %cst_160 = arith.constant dense<0.000000e+00> : vector<8x256xf32>
    %512 = tpu.matmul %510, %511, %cst_160 {dimension_numbers = #tpu.dot_dimension_numbers<[1], [0], [0], [1], [0, 0, 1, 1], [], []>} : vector<8x128xf32>, vector<128x256xf32>, vector<8x256xf32> -> vector<8x256xf32>
    %513 = arith.index_cast %c22_i32 : i32 to index
    %c0_161 = arith.constant 0 : index
    %c0_162 = arith.constant 0 : index
    %514 = vector.load %arg1[%513, %c0_161, %c0_162] : memref<30x8x256xf32, #tpu.memory_space<vmem>>, vector<1x8x256xf32>
    %515 = vector.shape_cast %514 : vector<1x8x256xf32> to vector<8x256xf32>
    %516 = arith.addf %512, %515 : vector<8x256xf32>
    %517 = vector.extract_strided_slice %516 {offsets = [0, 0], sizes = [8, 128], strides = [1, 1]} : vector<8x256xf32> to vector<8x128xf32>
    %518 = arith.negf %517 : vector<8x128xf32>
    %519 = math.exp %518 : vector<8x128xf32>
    %cst_163 = arith.constant 1.000000e+00 : f32
    %520 = vector.broadcast %cst_163 : f32 to vector<8x128xf32>
    %521 = arith.addf %520, %519 : vector<8x128xf32>
    %522 = arith.divf %520, %521 : vector<8x128xf32>
    %523 = vector.extract_strided_slice %516 {offsets = [0, 128], sizes = [8, 128], strides = [1, 1]} : vector<8x256xf32> to vector<8x128xf32>
    %524 = arith.negf %523 : vector<8x128xf32>
    %525 = math.exp %524 : vector<8x128xf32>
    %cst_164 = arith.constant 1.000000e+00 : f32
    %526 = vector.broadcast %cst_164 : f32 to vector<8x128xf32>
    %527 = arith.addf %526, %525 : vector<8x128xf32>
    %528 = arith.divf %526, %527 : vector<8x128xf32>
    %529 = arith.mulf %522, %508 : vector<8x128xf32>
    %530 = arith.mulf %528, %528 : vector<8x128xf32>
    %531 = arith.addf %529, %530 : vector<8x128xf32>
    %532 = math.tanh %531 : vector<8x128xf32>
    %533 = arith.mulf %528, %532 : vector<8x128xf32>
    %c23_i32 = arith.constant 23 : i32
    %c0_165 = arith.constant 0 : index
    %c0_166 = arith.constant 0 : index
    %534 = vector.load %arg2[%c0_165, %c0_166] : memref<128x256xf32, #tpu.memory_space<vmem>>, vector<128x256xf32>
    %cst_167 = arith.constant dense<0.000000e+00> : vector<8x256xf32>
    %535 = tpu.matmul %533, %534, %cst_167 {dimension_numbers = #tpu.dot_dimension_numbers<[1], [0], [0], [1], [0, 0, 1, 1], [], []>} : vector<8x128xf32>, vector<128x256xf32>, vector<8x256xf32> -> vector<8x256xf32>
    %536 = arith.index_cast %c23_i32 : i32 to index
    %c0_168 = arith.constant 0 : index
    %c0_169 = arith.constant 0 : index
    %537 = vector.load %arg1[%536, %c0_168, %c0_169] : memref<30x8x256xf32, #tpu.memory_space<vmem>>, vector<1x8x256xf32>
    %538 = vector.shape_cast %537 : vector<1x8x256xf32> to vector<8x256xf32>
    %539 = arith.addf %535, %538 : vector<8x256xf32>
    %540 = vector.extract_strided_slice %539 {offsets = [0, 0], sizes = [8, 128], strides = [1, 1]} : vector<8x256xf32> to vector<8x128xf32>
    %541 = arith.negf %540 : vector<8x128xf32>
    %542 = math.exp %541 : vector<8x128xf32>
    %cst_170 = arith.constant 1.000000e+00 : f32
    %543 = vector.broadcast %cst_170 : f32 to vector<8x128xf32>
    %544 = arith.addf %543, %542 : vector<8x128xf32>
    %545 = arith.divf %543, %544 : vector<8x128xf32>
    %546 = vector.extract_strided_slice %539 {offsets = [0, 128], sizes = [8, 128], strides = [1, 1]} : vector<8x256xf32> to vector<8x128xf32>
    %547 = arith.negf %546 : vector<8x128xf32>
    %548 = math.exp %547 : vector<8x128xf32>
    %cst_171 = arith.constant 1.000000e+00 : f32
    %549 = vector.broadcast %cst_171 : f32 to vector<8x128xf32>
    %550 = arith.addf %549, %548 : vector<8x128xf32>
    %551 = arith.divf %549, %550 : vector<8x128xf32>
    %552 = arith.mulf %545, %531 : vector<8x128xf32>
    %553 = arith.mulf %551, %551 : vector<8x128xf32>
    %554 = arith.addf %552, %553 : vector<8x128xf32>
    %555 = math.tanh %554 : vector<8x128xf32>
    %556 = arith.mulf %551, %555 : vector<8x128xf32>
    %c24_i32 = arith.constant 24 : i32
    %c0_172 = arith.constant 0 : index
    %c0_173 = arith.constant 0 : index
    %557 = vector.load %arg2[%c0_172, %c0_173] : memref<128x256xf32, #tpu.memory_space<vmem>>, vector<128x256xf32>
    %cst_174 = arith.constant dense<0.000000e+00> : vector<8x256xf32>
    %558 = tpu.matmul %556, %557, %cst_174 {dimension_numbers = #tpu.dot_dimension_numbers<[1], [0], [0], [1], [0, 0, 1, 1], [], []>} : vector<8x128xf32>, vector<128x256xf32>, vector<8x256xf32> -> vector<8x256xf32>
    %559 = arith.index_cast %c24_i32 : i32 to index
    %c0_175 = arith.constant 0 : index
    %c0_176 = arith.constant 0 : index
    %560 = vector.load %arg1[%559, %c0_175, %c0_176] : memref<30x8x256xf32, #tpu.memory_space<vmem>>, vector<1x8x256xf32>
    %561 = vector.shape_cast %560 : vector<1x8x256xf32> to vector<8x256xf32>
    %562 = arith.addf %558, %561 : vector<8x256xf32>
    %563 = vector.extract_strided_slice %562 {offsets = [0, 0], sizes = [8, 128], strides = [1, 1]} : vector<8x256xf32> to vector<8x128xf32>
    %564 = arith.negf %563 : vector<8x128xf32>
    %565 = math.exp %564 : vector<8x128xf32>
    %cst_177 = arith.constant 1.000000e+00 : f32
    %566 = vector.broadcast %cst_177 : f32 to vector<8x128xf32>
    %567 = arith.addf %566, %565 : vector<8x128xf32>
    %568 = arith.divf %566, %567 : vector<8x128xf32>
    %569 = vector.extract_strided_slice %562 {offsets = [0, 128], sizes = [8, 128], strides = [1, 1]} : vector<8x256xf32> to vector<8x128xf32>
    %570 = arith.negf %569 : vector<8x128xf32>
    %571 = math.exp %570 : vector<8x128xf32>
    %cst_178 = arith.constant 1.000000e+00 : f32
    %572 = vector.broadcast %cst_178 : f32 to vector<8x128xf32>
    %573 = arith.addf %572, %571 : vector<8x128xf32>
    %574 = arith.divf %572, %573 : vector<8x128xf32>
    %575 = arith.mulf %568, %554 : vector<8x128xf32>
    %576 = arith.mulf %574, %574 : vector<8x128xf32>
    %577 = arith.addf %575, %576 : vector<8x128xf32>
    %578 = math.tanh %577 : vector<8x128xf32>
    %579 = arith.mulf %574, %578 : vector<8x128xf32>
    %c25_i32 = arith.constant 25 : i32
    %c0_179 = arith.constant 0 : index
    %c0_180 = arith.constant 0 : index
    %580 = vector.load %arg2[%c0_179, %c0_180] : memref<128x256xf32, #tpu.memory_space<vmem>>, vector<128x256xf32>
    %cst_181 = arith.constant dense<0.000000e+00> : vector<8x256xf32>
    %581 = tpu.matmul %579, %580, %cst_181 {dimension_numbers = #tpu.dot_dimension_numbers<[1], [0], [0], [1], [0, 0, 1, 1], [], []>} : vector<8x128xf32>, vector<128x256xf32>, vector<8x256xf32> -> vector<8x256xf32>
    %582 = arith.index_cast %c25_i32 : i32 to index
    %c0_182 = arith.constant 0 : index
    %c0_183 = arith.constant 0 : index
    %583 = vector.load %arg1[%582, %c0_182, %c0_183] : memref<30x8x256xf32, #tpu.memory_space<vmem>>, vector<1x8x256xf32>
    %584 = vector.shape_cast %583 : vector<1x8x256xf32> to vector<8x256xf32>
    %585 = arith.addf %581, %584 : vector<8x256xf32>
    %586 = vector.extract_strided_slice %585 {offsets = [0, 0], sizes = [8, 128], strides = [1, 1]} : vector<8x256xf32> to vector<8x128xf32>
    %587 = arith.negf %586 : vector<8x128xf32>
    %588 = math.exp %587 : vector<8x128xf32>
    %cst_184 = arith.constant 1.000000e+00 : f32
    %589 = vector.broadcast %cst_184 : f32 to vector<8x128xf32>
    %590 = arith.addf %589, %588 : vector<8x128xf32>
    %591 = arith.divf %589, %590 : vector<8x128xf32>
    %592 = vector.extract_strided_slice %585 {offsets = [0, 128], sizes = [8, 128], strides = [1, 1]} : vector<8x256xf32> to vector<8x128xf32>
    %593 = arith.negf %592 : vector<8x128xf32>
    %594 = math.exp %593 : vector<8x128xf32>
    %cst_185 = arith.constant 1.000000e+00 : f32
    %595 = vector.broadcast %cst_185 : f32 to vector<8x128xf32>
    %596 = arith.addf %595, %594 : vector<8x128xf32>
    %597 = arith.divf %595, %596 : vector<8x128xf32>
    %598 = arith.mulf %591, %577 : vector<8x128xf32>
    %599 = arith.mulf %597, %597 : vector<8x128xf32>
    %600 = arith.addf %598, %599 : vector<8x128xf32>
    %601 = math.tanh %600 : vector<8x128xf32>
    %602 = arith.mulf %597, %601 : vector<8x128xf32>
    %c26_i32 = arith.constant 26 : i32
    %c0_186 = arith.constant 0 : index
    %c0_187 = arith.constant 0 : index
    %603 = vector.load %arg2[%c0_186, %c0_187] : memref<128x256xf32, #tpu.memory_space<vmem>>, vector<128x256xf32>
    %cst_188 = arith.constant dense<0.000000e+00> : vector<8x256xf32>
    %604 = tpu.matmul %602, %603, %cst_188 {dimension_numbers = #tpu.dot_dimension_numbers<[1], [0], [0], [1], [0, 0, 1, 1], [], []>} : vector<8x128xf32>, vector<128x256xf32>, vector<8x256xf32> -> vector<8x256xf32>
    %605 = arith.index_cast %c26_i32 : i32 to index
    %c0_189 = arith.constant 0 : index
    %c0_190 = arith.constant 0 : index
    %606 = vector.load %arg1[%605, %c0_189, %c0_190] : memref<30x8x256xf32, #tpu.memory_space<vmem>>, vector<1x8x256xf32>
    %607 = vector.shape_cast %606 : vector<1x8x256xf32> to vector<8x256xf32>
    %608 = arith.addf %604, %607 : vector<8x256xf32>
    %609 = vector.extract_strided_slice %608 {offsets = [0, 0], sizes = [8, 128], strides = [1, 1]} : vector<8x256xf32> to vector<8x128xf32>
    %610 = arith.negf %609 : vector<8x128xf32>
    %611 = math.exp %610 : vector<8x128xf32>
    %cst_191 = arith.constant 1.000000e+00 : f32
    %612 = vector.broadcast %cst_191 : f32 to vector<8x128xf32>
    %613 = arith.addf %612, %611 : vector<8x128xf32>
    %614 = arith.divf %612, %613 : vector<8x128xf32>
    %615 = vector.extract_strided_slice %608 {offsets = [0, 128], sizes = [8, 128], strides = [1, 1]} : vector<8x256xf32> to vector<8x128xf32>
    %616 = arith.negf %615 : vector<8x128xf32>
    %617 = math.exp %616 : vector<8x128xf32>
    %cst_192 = arith.constant 1.000000e+00 : f32
    %618 = vector.broadcast %cst_192 : f32 to vector<8x128xf32>
    %619 = arith.addf %618, %617 : vector<8x128xf32>
    %620 = arith.divf %618, %619 : vector<8x128xf32>
    %621 = arith.mulf %614, %600 : vector<8x128xf32>
    %622 = arith.mulf %620, %620 : vector<8x128xf32>
    %623 = arith.addf %621, %622 : vector<8x128xf32>
    %624 = math.tanh %623 : vector<8x128xf32>
    %625 = arith.mulf %620, %624 : vector<8x128xf32>
    %c27_i32 = arith.constant 27 : i32
    %c0_193 = arith.constant 0 : index
    %c0_194 = arith.constant 0 : index
    %626 = vector.load %arg2[%c0_193, %c0_194] : memref<128x256xf32, #tpu.memory_space<vmem>>, vector<128x256xf32>
    %cst_195 = arith.constant dense<0.000000e+00> : vector<8x256xf32>
    %627 = tpu.matmul %625, %626, %cst_195 {dimension_numbers = #tpu.dot_dimension_numbers<[1], [0], [0], [1], [0, 0, 1, 1], [], []>} : vector<8x128xf32>, vector<128x256xf32>, vector<8x256xf32> -> vector<8x256xf32>
    %628 = arith.index_cast %c27_i32 : i32 to index
    %c0_196 = arith.constant 0 : index
    %c0_197 = arith.constant 0 : index
    %629 = vector.load %arg1[%628, %c0_196, %c0_197] : memref<30x8x256xf32, #tpu.memory_space<vmem>>, vector<1x8x256xf32>
    %630 = vector.shape_cast %629 : vector<1x8x256xf32> to vector<8x256xf32>
    %631 = arith.addf %627, %630 : vector<8x256xf32>
    %632 = vector.extract_strided_slice %631 {offsets = [0, 0], sizes = [8, 128], strides = [1, 1]} : vector<8x256xf32> to vector<8x128xf32>
    %633 = arith.negf %632 : vector<8x128xf32>
    %634 = math.exp %633 : vector<8x128xf32>
    %cst_198 = arith.constant 1.000000e+00 : f32
    %635 = vector.broadcast %cst_198 : f32 to vector<8x128xf32>
    %636 = arith.addf %635, %634 : vector<8x128xf32>
    %637 = arith.divf %635, %636 : vector<8x128xf32>
    %638 = vector.extract_strided_slice %631 {offsets = [0, 128], sizes = [8, 128], strides = [1, 1]} : vector<8x256xf32> to vector<8x128xf32>
    %639 = arith.negf %638 : vector<8x128xf32>
    %640 = math.exp %639 : vector<8x128xf32>
    %cst_199 = arith.constant 1.000000e+00 : f32
    %641 = vector.broadcast %cst_199 : f32 to vector<8x128xf32>
    %642 = arith.addf %641, %640 : vector<8x128xf32>
    %643 = arith.divf %641, %642 : vector<8x128xf32>
    %644 = arith.mulf %637, %623 : vector<8x128xf32>
    %645 = arith.mulf %643, %643 : vector<8x128xf32>
    %646 = arith.addf %644, %645 : vector<8x128xf32>
    %647 = math.tanh %646 : vector<8x128xf32>
    %648 = arith.mulf %643, %647 : vector<8x128xf32>
    %c28_i32 = arith.constant 28 : i32
    %c0_200 = arith.constant 0 : index
    %c0_201 = arith.constant 0 : index
    %649 = vector.load %arg2[%c0_200, %c0_201] : memref<128x256xf32, #tpu.memory_space<vmem>>, vector<128x256xf32>
    %cst_202 = arith.constant dense<0.000000e+00> : vector<8x256xf32>
    %650 = tpu.matmul %648, %649, %cst_202 {dimension_numbers = #tpu.dot_dimension_numbers<[1], [0], [0], [1], [0, 0, 1, 1], [], []>} : vector<8x128xf32>, vector<128x256xf32>, vector<8x256xf32> -> vector<8x256xf32>
    %651 = arith.index_cast %c28_i32 : i32 to index
    %c0_203 = arith.constant 0 : index
    %c0_204 = arith.constant 0 : index
    %652 = vector.load %arg1[%651, %c0_203, %c0_204] : memref<30x8x256xf32, #tpu.memory_space<vmem>>, vector<1x8x256xf32>
    %653 = vector.shape_cast %652 : vector<1x8x256xf32> to vector<8x256xf32>
    %654 = arith.addf %650, %653 : vector<8x256xf32>
    %655 = vector.extract_strided_slice %654 {offsets = [0, 0], sizes = [8, 128], strides = [1, 1]} : vector<8x256xf32> to vector<8x128xf32>
    %656 = arith.negf %655 : vector<8x128xf32>
    %657 = math.exp %656 : vector<8x128xf32>
    %cst_205 = arith.constant 1.000000e+00 : f32
    %658 = vector.broadcast %cst_205 : f32 to vector<8x128xf32>
    %659 = arith.addf %658, %657 : vector<8x128xf32>
    %660 = arith.divf %658, %659 : vector<8x128xf32>
    %661 = vector.extract_strided_slice %654 {offsets = [0, 128], sizes = [8, 128], strides = [1, 1]} : vector<8x256xf32> to vector<8x128xf32>
    %662 = arith.negf %661 : vector<8x128xf32>
    %663 = math.exp %662 : vector<8x128xf32>
    %cst_206 = arith.constant 1.000000e+00 : f32
    %664 = vector.broadcast %cst_206 : f32 to vector<8x128xf32>
    %665 = arith.addf %664, %663 : vector<8x128xf32>
    %666 = arith.divf %664, %665 : vector<8x128xf32>
    %667 = arith.mulf %660, %646 : vector<8x128xf32>
    %668 = arith.mulf %666, %666 : vector<8x128xf32>
    %669 = arith.addf %667, %668 : vector<8x128xf32>
    %670 = math.tanh %669 : vector<8x128xf32>
    %671 = arith.mulf %666, %670 : vector<8x128xf32>
    %c29_i32 = arith.constant 29 : i32
    %c0_207 = arith.constant 0 : index
    %c0_208 = arith.constant 0 : index
    %672 = vector.load %arg2[%c0_207, %c0_208] : memref<128x256xf32, #tpu.memory_space<vmem>>, vector<128x256xf32>
    %cst_209 = arith.constant dense<0.000000e+00> : vector<8x256xf32>
    %673 = tpu.matmul %671, %672, %cst_209 {dimension_numbers = #tpu.dot_dimension_numbers<[1], [0], [0], [1], [0, 0, 1, 1], [], []>} : vector<8x128xf32>, vector<128x256xf32>, vector<8x256xf32> -> vector<8x256xf32>
    %674 = arith.index_cast %c29_i32 : i32 to index
    %c0_210 = arith.constant 0 : index
    %c0_211 = arith.constant 0 : index
    %675 = vector.load %arg1[%674, %c0_210, %c0_211] : memref<30x8x256xf32, #tpu.memory_space<vmem>>, vector<1x8x256xf32>
    %676 = vector.shape_cast %675 : vector<1x8x256xf32> to vector<8x256xf32>
    %677 = arith.addf %673, %676 : vector<8x256xf32>
    %678 = vector.extract_strided_slice %677 {offsets = [0, 0], sizes = [8, 128], strides = [1, 1]} : vector<8x256xf32> to vector<8x128xf32>
    %679 = arith.negf %678 : vector<8x128xf32>
    %680 = math.exp %679 : vector<8x128xf32>
    %cst_212 = arith.constant 1.000000e+00 : f32
    %681 = vector.broadcast %cst_212 : f32 to vector<8x128xf32>
    %682 = arith.addf %681, %680 : vector<8x128xf32>
    %683 = arith.divf %681, %682 : vector<8x128xf32>
    %684 = vector.extract_strided_slice %677 {offsets = [0, 128], sizes = [8, 128], strides = [1, 1]} : vector<8x256xf32> to vector<8x128xf32>
    %685 = arith.negf %684 : vector<8x128xf32>
    %686 = math.exp %685 : vector<8x128xf32>
    %cst_213 = arith.constant 1.000000e+00 : f32
    %687 = vector.broadcast %cst_213 : f32 to vector<8x128xf32>
    %688 = arith.addf %687, %686 : vector<8x128xf32>
    %689 = arith.divf %687, %688 : vector<8x128xf32>
    %690 = arith.mulf %683, %669 : vector<8x128xf32>
    %691 = arith.mulf %689, %689 : vector<8x128xf32>
    %692 = arith.addf %690, %691 : vector<8x128xf32>
    %693 = math.tanh %692 : vector<8x128xf32>
    %694 = arith.mulf %689, %693 : vector<8x128xf32>
    %c30_i32 = arith.constant 30 : i32
    %c0_214 = arith.constant 0 : index
    %c0_215 = arith.constant 0 : index
    %695 = vector.load %arg5[%c0_214, %c0_215] : memref<8x128xf32, #tpu.memory_space<vmem>>, vector<8x128xf32>
    tpu.vector_store %arg5[%c0_214, %c0_215], %694 {strides = array<i32>} : memref<8x128xf32, #tpu.memory_space<vmem>>, vector<8x128xf32>,
    %c0_216 = arith.constant 0 : index
    %c0_217 = arith.constant 0 : index
    %696 = vector.load %arg6[%c0_216, %c0_217] : memref<8x128xf32, #tpu.memory_space<vmem>>, vector<8x128xf32>
    tpu.vector_store %arg6[%c0_216, %c0_217], %692 {strides = array<i32>} : memref<8x128xf32, #tpu.memory_space<vmem>>, vector<8x128xf32>,
    %c0_218 = arith.constant 0 : index
    %c0_219 = arith.constant 0 : index
    %697 = vector.load %arg5[%c0_218, %c0_219] : memref<8x128xf32, #tpu.memory_space<vmem>>, vector<8x128xf32>
    %c0_220 = arith.constant 0 : index
    %c0_221 = arith.constant 0 : index
    %698 = vector.load %arg3[%c0_220, %c0_221] : memref<8x128xf32, #tpu.memory_space<vmem>>, vector<8x128xf32>
    tpu.vector_store %arg3[%c0_220, %c0_221], %697 {strides = array<i32>} : memref<8x128xf32, #tpu.memory_space<vmem>>, vector<8x128xf32>,
    %c0_222 = arith.constant 0 : index
    %c0_223 = arith.constant 0 : index
    %699 = vector.load %arg6[%c0_222, %c0_223] : memref<8x128xf32, #tpu.memory_space<vmem>>, vector<8x128xf32>
    %c0_224 = arith.constant 0 : index
    %c0_225 = arith.constant 0 : index
    %700 = vector.load %arg4[%c0_224, %c0_225] : memref<8x128xf32, #tpu.memory_space<vmem>>, vector<8x128xf32>
    tpu.vector_store %arg4[%c0_224, %c0_225], %699 {strides = array<i32>} : memref<8x128xf32, #tpu.memory_space<vmem>>, vector<8x128xf32>,
    return
  }
  func.func @transform_0(%arg0: i32) -> (i32, i32, i32) {
    %c0_i32 = arith.constant 0 : i32
    %c0_i32_0 = arith.constant 0 : i32
    %c0_i32_1 = arith.constant 0 : i32
    return %arg0, %c0_i32, %c0_i32_0 : i32, i32, i32
  }
  func.func @transform_1(%arg0: i32) -> (i32, i32) {
    %c0_i32 = arith.constant 0 : i32
    %c0_i32_0 = arith.constant 0 : i32
    %c0_i32_1 = arith.constant 0 : i32
    return %c0_i32, %c0_i32_0 : i32, i32
  }
  func.func @transform_2(%arg0: i32) -> (i32, i32) {
    %c0_i32 = arith.constant 0 : i32
    %c0_i32_0 = arith.constant 0 : i32
    %c0_i32_1 = arith.constant 0 : i32
    return %c0_i32, %c0_i32_0 : i32, i32
  }
  func.func @transform_3(%arg0: i32) -> (i32, i32) {
    %c0_i32 = arith.constant 0 : i32
    %c0_i32_0 = arith.constant 0 : i32
    %c0_i32_1 = arith.constant 0 : i32
    return %c0_i32, %c0_i32_0 : i32, i32
  }
}

</mosaic_0001>

<bundles_post_ra>
// kernel: tpu_custom_call.1
= control target key start
LH: loop header
LB: loop body
LE: loop exit
PB: predicated region body
PF: predicated region fallthrough
CT: control target
= control target key end

     0   :  { %9 = vsyncpa [#allocation5], 0  ;;  %s4889_s0 = inlined_call_operand.hbm [shape: f32[30,8,256], index: 0, kind: input, shape index: {}]   ;;  %s4890_s1 = inlined_call_operand.hbm [shape: f32[128,256], index: 1, kind: input, shape index: {}]   ;;  %s4891_s2 = inlined_call_operand.hbm [shape: f32[8,128], index: 2, kind: output, shape index: {0}]   ;;  %s4892_s3 = inlined_call_operand.hbm [shape: f32[8,128], index: 3, kind: output, shape index: {1}]  }
   0x1   :  { %10 = vsyncpa [#allocation8], 0 }
   0x2   :  { %11 = vsyncpa [#allocation6], 0 }
   0x3   :  { %12 = vsyncpa [#allocation11], 0  ;;  %s4271_s12 = smov [#allocation4]   ;;  %s4175_s16 = scalar_lea.hbm %s4889_s0, 7680 }
   0x4   :  { %s18_s13 = sshll.u32 %s4271_s12, 4  ;;  %p4176_p0 = scmp.ne.s32.totalorder %s4889_s0, %s4175_s16  ;;  %s19_s13 = int_to_ptr.vmem [resolvable:$true] %s18_s13 }
   0x5   :  { %p4179_p1 = scmp.lt.u32.totalorder %s4175_s16, %s4889_s0 }
   0x7   :  { %p4181_p2 = pnand %p4179_p1, %p4176_p0 }
   0x9   :  { %4184 = shalt.err (!%p4181_p2)
}
   0xa   :  { %s4185_s21 = scalar_lea.vmem %s19_s13, 7680  ;;  %p4190_p4 = scmp.lt.s32.totalorder %s19_s13, %s19_s13 }
   0xb   :  { %p4186_p3 = scmp.ne.s32.totalorder %s19_s13, %s4185_s21  ;;  %p4191_p5 = scmp.lt.s32.totalorder %s4185_s21, %s4185_s21 }
   0xd   :  { %p4192_p6 = por %p4191_p5, %p4190_p4 }
   0xf   :  { %p4193_p7 = pnand %p4192_p6, %p4186_p3 }
  0x11   :  { %4196 = shalt.err (!%p4193_p7)
}
  0x12   :  { %s4272_s22 = smov 256   ;;  %s4273_s23 = smov 16  }
  0x13   :  { %24 = dma.hbm_to_vmem [thread:$0]  %s4889_s0, 7680, %s19_s13, [#allocation5], %s4272_s22, %s4272_s22, %s4273_s23  }
  0x14   :  { %s4274_s26 = smov [#allocation7]   ;;  %s4197_s30 = scalar_lea.hbm %s4890_s1, 4096 }
  0x15   :  { %s30_s27 = sshll.u32 %s4274_s26, 4  ;;  %p4198_p8 = scmp.ne.s32.totalorder %s4890_s1, %s4197_s30  ;;  %s31_s27 = int_to_ptr.vmem [resolvable:$true] %s30_s27 }
  0x16   :  { %p4201_p9 = scmp.lt.u32.totalorder %s4197_s30, %s4890_s1 }
  0x18   :  { %p4203_p10 = pnand %p4201_p9, %p4198_p8 }
  0x1a   :  { %4206 = shalt.err (!%p4203_p10)
}
  0x1b   :  { %s4207_s8 = scalar_lea.vmem %s31_s27, 4096  ;;  %p4212_p12 = scmp.lt.s32.totalorder %s31_s27, %s31_s27 }
  0x1c   :  { %p4208_p11 = scmp.ne.s32.totalorder %s31_s27, %s4207_s8  ;;  %p4213_p13 = scmp.lt.s32.totalorder %s4207_s8, %s4207_s8 }
  0x1e   :  { %p4214_p0 = por %p4213_p13, %p4212_p12 }
  0x20   :  { %p4215_p1 = pnand %p4214_p0, %p4208_p11 }
  0x22   :  { %4218 = shalt.err (!%p4215_p1)
}
  0x23   :  { %36 = dma.hbm_to_vmem [thread:$0]  %s4890_s1, 4096, %s31_s27, [#allocation8], %s4272_s22, %s4272_s22, %s4273_s23  }
  0x24   :  { %4263 = dma.done.wait [#allocation5], 7680  }
  0x25   :  { %4264 = vsyncadd [#allocation5], 4294959616 }
  0x26   :  { %4265 = dma.done.wait [#allocation8], 4096  }
  0x27   :  { %4266 = vsyncadd [#allocation8], 4294963200  ;;  %v4275_v0 = vmov 0.0   ;;  %v52_v1 = vld [vmem:[#allocation7 + $0x8] sm:$0xff]  ;;  %v54_v2 = vld [vmem:[#allocation7 + $0x18] sm:$0xff]  ;;  %s4276_s1 = smov [#allocation10]  }
  0x28   :  { %149 = vmatprep.mubr.f32.mxu0 %v4275_v0  ;;  %240 = vmatprep.mubr.f32.mxu1 %v4275_v0  ;;  %v51_v3 = vld [vmem:[#allocation7] sm:$0xff]  ;;  %v4324_v4 = vpack.c.bf16 %v54_v2, %v52_v1  ;;  %v53_v5 = vld [vmem:[#allocation7 + $0x10] sm:$0xff]  ;;  %v56_v6 = vld [vmem:[#allocation7 + $0x28] sm:$0xff]  ;;  %s2834_s10 = sshll.u32 %s4276_s1, 4  ;;  %s2835_s10 = int_to_ptr.vmem [resolvable:$true] %s2834_s10 }
  0x29   :  { %v58_v7 = vld [vmem:[#allocation7 + $0x38] sm:$0xff]  ;;  %v4326_v8 = vpack.c.bf16 %v53_v5, %v51_v3  ;;  %v55_v10 = vld [vmem:[#allocation7 + $0x20] sm:$0xff]  ;;  %v57_v11 = vld [vmem:[#allocation7 + $0x30] sm:$0xff]  ;;  %s4219_s11 = scalar_lea.vmem %s2835_s10, 128  ;;  %p4224_p3 = scmp.lt.s32.totalorder %s2835_s10, %s2835_s10 }
  0x2a   :  { %v4328_v9 = vpack.c.bf16 %v58_v7, %v56_v6  ;;  %v60_v12 = vld [vmem:[#allocation7 + $0x48] sm:$0xff]  ;;  %2909 = vmatprep.subr.bf16.mxu0 %v4324_v4  ;;  %v62_v13 = vld [vmem:[#allocation7 + $0x58] sm:$0xff]  ;;  %2941 = vmatprep.subr.bf16.mxu1 %v4324_v4  ;;  %v4333_v14 = vpack.c.bf16 %v57_v11, %v55_v10  ;;  %v59_v16 = vld [vmem:[#allocation7 + $0x40] sm:$0xff]  ;;  %p4220_p2 = scmp.ne.s32.totalorder %s2835_s10, %s4219_s11  ;;  %p4225_p4 = scmp.lt.s32.totalorder %s4219_s11, %s4219_s11 }
  0x2b   :  { %2911 = vmatpush1.bf16.msra.mxu0 %v4326_v8  ;;  %2943 = vmatpush1.bf16.msra.mxu1 %v4326_v8  ;;  %v4337_v15 = vpack.c.bf16 %v62_v13, %v60_v12  ;;  %v61_v17 = vld [vmem:[#allocation7 + $0x50] sm:$0xff]  ;;  %v64_v18 = vld [vmem:[#allocation7 + $0x68] sm:$0xff]  ;;  %v66_v19 = vld [vmem:[#allocation7 + $0x78] sm:$0xff] }
  0x2c   :  { %2913 = vmatprep.subr.bf16.mxu0 %v4328_v9  ;;  %2945 = vmatprep.subr.bf16.mxu1 %v4328_v9  ;;  %v4341_v20 = vpack.c.bf16 %v61_v17, %v59_v16  ;;  %v4345_v21 = vpack.c.bf16 %v66_v19, %v64_v18  ;;  %v63_v22 = vld [vmem:[#allocation7 + $0x60] sm:$0xff]  ;;  %v65_v23 = vld [vmem:[#allocation7 + $0x70] sm:$0xff]  ;;  %v68_v24 = vld [vmem:[#allocation7 + $0x88] sm:$0xff]  ;;  %p4226_p5 = por %p4225_p4, %p4224_p3 }
  0x2d   :  { %v70_v25 = vld [vmem:[#allocation7 + $0x98] sm:$0xff]  ;;  %v4349_v26 = vpack.c.bf16 %v65_v23, %v63_v22  ;;  %v67_v28 = vld [vmem:[#allocation7 + $0x80] sm:$0xff]  ;;  %v69_v29 = vld [vmem:[#allocation7 + $0x90] sm:$0xff] }
  0x2e   :  { %v4353_v27 = vpack.c.bf16 %v70_v25, %v68_v24  ;;  %v72_v30 = vld [vmem:[#allocation7 + $0xa8] sm:$0xff]  ;;  %v74_v31 = vld [vmem:[#allocation7 + $0xb8] sm:$0xff]  ;;  %v4357_v32 = vpack.c.bf16 %v69_v29, %v67_v28  ;;  %v71_v34 = vld [vmem:[#allocation7 + $0xa0] sm:$0xff]  ;;  %p4227_p6 = pnand %p4226_p5, %p4220_p2 }
  0x2f   :  { %2915 = vmatpush1.bf16.msra.mxu0 %v4333_v14  ;;  %2947 = vmatpush1.bf16.msra.mxu1 %v4333_v14  ;;  %v4361_v33 = vpack.c.bf16 %v74_v31, %v72_v30  ;;  %v73_v35 = vld [vmem:[#allocation7 + $0xb0] sm:$0xff]  ;;  %v76_v36 = vld [vmem:[#allocation7 + $0xc8] sm:$0xff]  ;;  %v78_v37 = vld [vmem:[#allocation7 + $0xd8] sm:$0xff] }
  0x30   :  { %2917 = vmatprep.subr.bf16.mxu0 %v4337_v15  ;;  %2949 = vmatprep.subr.bf16.mxu1 %v4337_v15  ;;  %v4365_v38 = vpack.c.bf16 %v73_v35, %v71_v34  ;;  %v4369_v39 = vpack.c.bf16 %v78_v37, %v76_v36  ;;  %v75_v40 = vld [vmem:[#allocation7 + $0xc0] sm:$0xff]  ;;  %v77_v41 = vld [vmem:[#allocation7 + $0xd0] sm:$0xff]  ;;  %v80_v42 = vld [vmem:[#allocation7 + $0xe8] sm:$0xff] }
  0x31   :  { %v82_v43 = vld [vmem:[#allocation7 + $0xf8] sm:$0xff]  ;;  %v4373_v44 = vpack.c.bf16 %v77_v41, %v75_v40  ;;  %v79_v46 = vld [vmem:[#allocation7 + $0xe0] sm:$0xff]  ;;  %v81_v47 = vld [vmem:[#allocation7 + $0xf0] sm:$0xff] }
  0x32   :  { %v4377_v45 = vpack.c.bf16 %v82_v43, %v80_v42  ;;  %v4381_v48 = vpack.c.bf16 %v81_v47, %v79_v46  ;;  %v83_v49 = vld [vmem:[#allocation4] sm:$0xff]  ;;  %v84_v50 = vld [vmem:[#allocation4 + $0x8] sm:$0xff]  ;;  %v174_v6 = vld [vmem:[#allocation4 + $0x10] sm:$0xff] }
  0x33   :  { %2919 = vmatpush1.bf16.msra.mxu0 %v4341_v20  ;;  %2951 = vmatpush1.bf16.msra.mxu1 %v4341_v20  ;;  %v175_v7 = vld [vmem:[#allocation4 + $0x18] sm:$0xff]  ;;  %v265_v35 = vld [vmem:[#allocation4 + $0x20] sm:$0xff]  ;;  %v266_v36 = vld [vmem:[#allocation4 + $0x28] sm:$0xff] }
  0x34   :  { %2921 = vmatprep.subr.bf16.mxu0 %v4345_v21  ;;  %2953 = vmatprep.subr.bf16.mxu1 %v4345_v21 }
  0x37   :  { %2923 = vmatpush1.bf16.msra.mxu0 %v4349_v26  ;;  %2955 = vmatpush1.bf16.msra.mxu1 %v4349_v26 }
  0x38   :  { %2925 = vmatprep.subr.bf16.mxu0 %v4353_v27  ;;  %2957 = vmatprep.subr.bf16.mxu1 %v4353_v27 }
  0x3b   :  { %2927 = vmatpush1.bf16.msra.mxu0 %v4357_v32  ;;  %2959 = vmatpush1.bf16.msra.mxu1 %v4357_v32 }
  0x3c   :  { %2929 = vmatprep.subr.bf16.mxu0 %v4361_v33  ;;  %2961 = vmatprep.subr.bf16.mxu1 %v4361_v33 }
  0x3f   :  { %2931 = vmatpush1.bf16.msra.mxu0 %v4365_v38  ;;  %2963 = vmatpush1.bf16.msra.mxu1 %v4365_v38 }
  0x40   :  { %2933 = vmatprep.subr.bf16.mxu0 %v4369_v39  ;;  %2965 = vmatprep.subr.bf16.mxu1 %v4369_v39 }
  0x43   :  { %2935 = vmatpush1.bf16.msra.mxu0 %v4373_v44  ;;  %2967 = vmatpush1.bf16.msra.mxu1 %v4373_v44 }
  0x44   :  { %2937 = vmatprep.subr.bf16.mxu0 %v4377_v45  ;;  %2969 = vmatprep.subr.bf16.mxu1 %v4377_v45 }
  0x47   :  { %2939 = vmatpush1.bf16.msra.mxu0 %v4381_v48  ;;  %2971 = vmatpush1.bf16.msra.mxu1 %v4381_v48 }
  0x48   :  { %2973 = vmatprep.subr.bf16.mxu0 %v4324_v4  ;;  %3005 = vmatprep.subr.bf16.mxu1 %v4324_v4 }
  0x4a   :  { %150 = vmatmul.mubr.f32.vlgmr.msra.gmra.mrb[0].mxu0 %v4275_v0 }
  0x4b   :  { %2975 = vmatpush1.bf16.msra.mxu0 %v4326_v8  ;;  %331 = vmatprep.mubr.f32.mxu0 %v4275_v0 }
  0x4c   :  { %2977 = vmatprep.subr.bf16.mxu0 %v4328_v9 }
  0x4f   :  { %2979 = vmatpush1.bf16.msra.mxu0 %v4333_v14 }
  0x50   :  { %2981 = vmatprep.subr.bf16.mxu0 %v4337_v15 }
  0x53   :  { %2983 = vmatpush1.bf16.msra.mxu0 %v4341_v20 }
  0x54   :  { %2985 = vmatprep.subr.bf16.mxu0 %v4345_v21 }
  0x57   :  { %2987 = vmatpush1.bf16.msra.mxu0 %v4349_v26 }
  0x58   :  { %2989 = vmatprep.subr.bf16.mxu0 %v4353_v27 }
  0x5b   :  { %2991 = vmatpush1.bf16.msra.mxu0 %v4357_v32 }
  0x5c   :  { %2993 = vmatprep.subr.bf16.mxu0 %v4361_v33 }
  0x5f   :  { %2995 = vmatpush1.bf16.msra.mxu0 %v4365_v38 }
  0x60   :  { %2997 = vmatprep.subr.bf16.mxu0 %v4369_v39 }
  0x63   :  { %2999 = vmatpush1.bf16.msra.mxu0 %v4373_v44 }
  0x64   :  { %3001 = vmatprep.subr.bf16.mxu0 %v4377_v45 }
  0x67   :  { %3003 = vmatpush1.bf16.msra.mxu0 %v4381_v48 }
  0x68   :  { %3037 = vmatprep.subr.bf16.mxu0 %v4324_v4 }
 0x11d   :  { %v151_v51 = vpop.f32.mrb[0].mxu0 }
 0x11e   :  { %v152_v52 = vadd.f32 %v151_v51, %v83_v49  ;;  %v153_v53 = vpop.f32.mrb[1].mxu0 }
 0x11f   :  { %v154_v54 = vadd.f32 %v153_v53, %v84_v50 }
 0x120   :  { %v2848_v55 = vmul.f32 -1.442695, %v152_v52 }
 0x121   :  { %v2849_v56 = vmul.f32 -1.442695, %v154_v54 }
 0x122   :  { %3875 = vpow2.f32 %v2848_v55 }
 0x123   :  { %3877 = vpow2.f32 %v2849_v56 }
 0x12c   :  { %v3876_v57 = vpop.eup %3875 }
 0x12d   :  { %v3878_v58 = vpop.eup %3877  ;;  %v159_v59 = vadd.f32 1.0, %v3876_v57 }
 0x12e   :  { %v165_v60 = vadd.f32 1.0, %v3878_v58 }
 0x12f   :  { %3879 = vrcp.f32 %v159_v59  ;;  %v356_v59 = vld [vmem:[#allocation4 + $0x30] sm:$0xff] }
 0x130   :  { %3881 = vrcp.f32 %v165_v60  ;;  %v357_v60 = vld [vmem:[#allocation4 + $0x38] sm:$0xff] }
 0x139   :  { %v3880_v61 = vpop.eup %3879 }
 0x13a   :  { %v3882_v62 = vpop.eup %3881  ;;  %v168_v63 = vmul.f32 0.0, %v3880_v61 }
 0x13b   :  { %v169_v1 = vmul.f32 %v3882_v62, %v3882_v62 }
 0x13d   :  { %v170_v2 = vadd.f32 %v169_v1, %v168_v63 }
 0x13f   :  { %3883 = vtanh.f32 %v170_v2 }
 0x149   :  { %v3884_v3 = vpop.eup %3883 }
 0x14a   :  { %v172_v5 = vmul.f32 %v3884_v3, %v3882_v62 }
 0x14c   :  { %241 = vmatmul.mubr.f32.vlgmr.msra.gmra.mrb[0].mxu1 %v172_v5 }
 0x14d   :  { %3007 = vmatpush1.bf16.msra.mxu1 %v4326_v8  ;;  %422 = vmatprep.mubr.f32.mxu1 %v4275_v0 }
 0x14e   :  { %3009 = vmatprep.subr.bf16.mxu1 %v4328_v9 }
 0x151   :  { %3011 = vmatpush1.bf16.msra.mxu1 %v4333_v14 }
 0x152   :  { %3013 = vmatprep.subr.bf16.mxu1 %v4337_v15 }
 0x155   :  { %3015 = vmatpush1.bf16.msra.mxu1 %v4341_v20 }
 0x156   :  { %3017 = vmatprep.subr.bf16.mxu1 %v4345_v21 }
 0x159   :  { %3019 = vmatpush1.bf16.msra.mxu1 %v4349_v26 }
 0x15a   :  { %3021 = vmatprep.subr.bf16.mxu1 %v4353_v27 }
 0x15d   :  { %3023 = vmatpush1.bf16.msra.mxu1 %v4357_v32 }
 0x15e   :  { %3025 = vmatprep.subr.bf16.mxu1 %v4361_v33 }
 0x161   :  { %3027 = vmatpush1.bf16.msra.mxu1 %v4365_v38 }
 0x162   :  { %3029 = vmatprep.subr.bf16.mxu1 %v4369_v39 }
 0x165   :  { %3031 = vmatpush1.bf16.msra.mxu1 %v4373_v44 }
 0x166   :  { %3033 = vmatprep.subr.bf16.mxu1 %v4377_v45 }
 0x169   :  { %3035 = vmatpush1.bf16.msra.mxu1 %v4381_v48 }
 0x16a   :  { %3069 = vmatprep.subr.bf16.mxu1 %v4324_v4 }
 0x21f   :  { %v242_v10 = vpop.f32.mrb[0].mxu1 }
 0x220   :  { %v243_v11 = vadd.f32 %v242_v10, %v174_v6  ;;  %v244_v12 = vpop.f32.mrb[1].mxu1 }
 0x221   :  { %v245_v13 = vadd.f32 %v244_v12, %v175_v7 }
 0x222   :  { %v2850_v16 = vmul.f32 -1.442695, %v243_v11 }
 0x223   :  { %v2851_v17 = vmul.f32 -1.442695, %v245_v13 }
 0x224   :  { %3885 = vpow2.f32 %v2850_v16 }
 0x225   :  { %3887 = vpow2.f32 %v2851_v17 }
 0x22e   :  { %v3886_v18 = vpop.eup %3885 }
 0x22f   :  { %v3888_v19 = vpop.eup %3887  ;;  %v250_v22 = vadd.f32 1.0, %v3886_v18 }
 0x230   :  { %v256_v23 = vadd.f32 1.0, %v3888_v19 }
 0x231   :  { %3889 = vrcp.f32 %v250_v22  ;;  %v447_v22 = vld [vmem:[#allocation4 + $0x40] sm:$0xff] }
 0x232   :  { %3891 = vrcp.f32 %v256_v23  ;;  %v448_v23 = vld [vmem:[#allocation4 + $0x48] sm:$0xff] }
 0x23b   :  { %v3890_v24 = vpop.eup %3889 }
 0x23c   :  { %v3892_v25 = vpop.eup %3891  ;;  %v259_v28 = vmul.f32 %v3890_v24, %v170_v2 }
 0x23d   :  { %v260_v29 = vmul.f32 %v3892_v25, %v3892_v25 }
 0x23f   :  { %v261_v30 = vadd.f32 %v260_v29, %v259_v28 }
 0x241   :  { %3893 = vtanh.f32 %v261_v30 }
 0x24b   :  { %v3894_v31 = vpop.eup %3893 }
 0x24c   :  { %v263_v34 = vmul.f32 %v3894_v31, %v3892_v25 }
 0x24e   :  { %332 = vmatmul.mubr.f32.vlgmr.msra.gmra.mrb[2].mxu0 %v263_v34 }
 0x24f   :  { %3039 = vmatpush1.bf16.msra.mxu0 %v4326_v8  ;;  %513 = vmatprep.mubr.f32.mxu0 %v4275_v0 }
 0x250   :  { %3041 = vmatprep.subr.bf16.mxu0 %v4328_v9 }
 0x253   :  { %3043 = vmatpush1.bf16.msra.mxu0 %v4333_v14 }
 0x254   :  { %3045 = vmatprep.subr.bf16.mxu0 %v4337_v15 }
 0x257   :  { %3047 = vmatpush1.bf16.msra.mxu0 %v4341_v20 }
 0x258   :  { %3049 = vmatprep.subr.bf16.mxu0 %v4345_v21 }
 0x25b   :  { %3051 = vmatpush1.bf16.msra.mxu0 %v4349_v26 }
 0x25c   :  { %3053 = vmatprep.subr.bf16.mxu0 %v4353_v27 }
 0x25f   :  { %3055 = vmatpush1.bf16.msra.mxu0 %v4357_v32 }
 0x260   :  { %3057 = vmatprep.subr.bf16.mxu0 %v4361_v33 }
 0x263   :  { %3059 = vmatpush1.bf16.msra.mxu0 %v4365_v38 }
 0x264   :  { %3061 = vmatprep.subr.bf16.mxu0 %v4369_v39 }
 0x267   :  { %3063 = vmatpush1.bf16.msra.mxu0 %v4373_v44 }
 0x268   :  { %3065 = vmatprep.subr.bf16.mxu0 %v4377_v45 }
 0x26b   :  { %3067 = vmatpush1.bf16.msra.mxu0 %v4381_v48 }
 0x26c   :  { %3101 = vmatprep.subr.bf16.mxu0 %v4324_v4 }
 0x321   :  { %v333_v37 = vpop.f32.mrb[2].mxu0 }
 0x322   :  { %v334_v40 = vadd.f32 %v333_v37, %v265_v35  ;;  %v335_v41 = vpop.f32.mrb[3].mxu0 }
 0x323   :  { %v336_v42 = vadd.f32 %v335_v41, %v266_v36 }
 0x324   :  { %v2852_v43 = vmul.f32 -1.442695, %v334_v40 }
 0x325   :  { %v2853_v46 = vmul.f32 -1.442695, %v336_v42 }
 0x326   :  { %3895 = vpow2.f32 %v2852_v43 }
 0x327   :  { %3897 = vpow2.f32 %v2853_v46 }
 0x330   :  { %v3896_v47 = vpop.eup %3895 }
 0x331   :  { %v3898_v49 = vpop.eup %3897  ;;  %v341_v50 = vadd.f32 1.0, %v3896_v47 }
 0x332   :  { %v347_v51 = vadd.f32 1.0, %v3898_v49 }
 0x333   :  { %3899 = vrcp.f32 %v341_v50  ;;  %v538_v50 = vld [vmem:[#allocation4 + $0x50] sm:$0xff] }
 0x334   :  { %3901 = vrcp.f32 %v347_v51  ;;  %v539_v51 = vld [vmem:[#allocation4 + $0x58] sm:$0xff] }
 0x33d   :  { %v3900_v52 = vpop.eup %3899 }
 0x33e   :  { %v3902_v53 = vpop.eup %3901  ;;  %v350_v54 = vmul.f32 %v3900_v52, %v261_v30 }
 0x33f   :  { %v351_v55 = vmul.f32 %v3902_v53, %v3902_v53 }
 0x341   :  { %v352_v56 = vadd.f32 %v351_v55, %v350_v54 }
 0x343   :  { %3903 = vtanh.f32 %v352_v56 }
 0x34d   :  { %v3904_v57 = vpop.eup %3903 }
 0x34e   :  { %v354_v58 = vmul.f32 %v3904_v57, %v3902_v53 }
 0x350   :  { %423 = vmatmul.mubr.f32.vlgmr.msra.gmra.mrb[2].mxu1 %v354_v58 }
 0x351   :  { %3071 = vmatpush1.bf16.msra.mxu1 %v4326_v8  ;;  %604 = vmatprep.mubr.f32.mxu1 %v4275_v0 }
 0x352   :  { %3073 = vmatprep.subr.bf16.mxu1 %v4328_v9 }
 0x355   :  { %3075 = vmatpush1.bf16.msra.mxu1 %v4333_v14 }
 0x356   :  { %3077 = vmatprep.subr.bf16.mxu1 %v4337_v15 }
 0x359   :  { %3079 = vmatpush1.bf16.msra.mxu1 %v4341_v20 }
 0x35a   :  { %3081 = vmatprep.subr.bf16.mxu1 %v4345_v21 }
 0x35d   :  { %3083 = vmatpush1.bf16.msra.mxu1 %v4349_v26 }
 0x35e   :  { %3085 = vmatprep.subr.bf16.mxu1 %v4353_v27 }
 0x361   :  { %3087 = vmatpush1.bf16.msra.mxu1 %v4357_v32 }
 0x362   :  { %3089 = vmatprep.subr.bf16.mxu1 %v4361_v33 }
 0x365   :  { %3091 = vmatpush1.bf16.msra.mxu1 %v4365_v38 }
 0x366   :  { %3093 = vmatprep.subr.bf16.mxu1 %v4369_v39 }
 0x369   :  { %3095 = vmatpush1.bf16.msra.mxu1 %v4373_v44 }
 0x36a   :  { %3097 = vmatprep.subr.bf16.mxu1 %v4377_v45 }
 0x36d   :  { %3099 = vmatpush1.bf16.msra.mxu1 %v4381_v48 }
 0x36e   :  { %3133 = vmatprep.subr.bf16.mxu1 %v4324_v4 }
 0x423   :  { %v424_v61 = vpop.f32.mrb[2].mxu1 }
 0x424   :  { %v425_v62 = vadd.f32 %v424_v61, %v356_v59  ;;  %v426_v63 = vpop.f32.mrb[3].mxu1 }
 0x425   :  { %v427_v1 = vadd.f32 %v426_v63, %v357_v60 }
 0x426   :  { %v2854_v2 = vmul.f32 -1.442695, %v425_v62 }
 0x427   :  { %v2855_v3 = vmul.f32 -1.442695, %v427_v1 }
 0x428   :  { %3905 = vpow2.f32 %v2854_v2 }
 0x429   :  { %3907 = vpow2.f32 %v2855_v3 }
 0x432   :  { %v3906_v5 = vpop.eup %3905 }
 0x433   :  { %v3908_v6 = vpop.eup %3907  ;;  %v432_v7 = vadd.f32 1.0, %v3906_v5 }
 0x434   :  { %v438_v10 = vadd.f32 1.0, %v3908_v6 }
 0x435   :  { %3909 = vrcp.f32 %v432_v7  ;;  %v629_v7 = vld [vmem:[#allocation4 + $0x60] sm:$0xff] }
 0x436   :  { %3911 = vrcp.f32 %v438_v10  ;;  %v630_v10 = vld [vmem:[#allocation4 + $0x68] sm:$0xff] }
 0x43f   :  { %v3910_v11 = vpop.eup %3909 }
 0x440   :  { %v3912_v12 = vpop.eup %3911  ;;  %v441_v13 = vmul.f32 %v3910_v11, %v352_v56 }
 0x441   :  { %v442_v16 = vmul.f32 %v3912_v12, %v3912_v12 }
 0x443   :  { %v443_v17 = vadd.f32 %v442_v16, %v441_v13 }
 0x445   :  { %3913 = vtanh.f32 %v443_v17 }
 0x44f   :  { %v3914_v18 = vpop.eup %3913 }
 0x450   :  { %v445_v19 = vmul.f32 %v3914_v18, %v3912_v12 }
 0x452   :  { %514 = vmatmul.mubr.f32.vlgmr.msra.gmra.mrb[4].mxu0 %v445_v19 }
 0x453   :  { %3103 = vmatpush1.bf16.msra.mxu0 %v4326_v8  ;;  %695 = vmatprep.mubr.f32.mxu0 %v4275_v0 }
 0x454   :  { %3105 = vmatprep.subr.bf16.mxu0 %v4328_v9 }
 0x457   :  { %3107 = vmatpush1.bf16.msra.mxu0 %v4333_v14 }
 0x458   :  { %3109 = vmatprep.subr.bf16.mxu0 %v4337_v15 }
 0x45b   :  { %3111 = vmatpush1.bf16.msra.mxu0 %v4341_v20 }
 0x45c   :  { %3113 = vmatprep.subr.bf16.mxu0 %v4345_v21 }
 0x45f   :  { %3115 = vmatpush1.bf16.msra.mxu0 %v4349_v26 }
 0x460   :  { %3117 = vmatprep.subr.bf16.mxu0 %v4353_v27 }
 0x463   :  { %3119 = vmatpush1.bf16.msra.mxu0 %v4357_v32 }
 0x464   :  { %3121 = vmatprep.subr.bf16.mxu0 %v4361_v33 }
 0x467   :  { %3123 = vmatpush1.bf16.msra.mxu0 %v4365_v38 }
 0x468   :  { %3125 = vmatprep.subr.bf16.mxu0 %v4369_v39 }
 0x46b   :  { %3127 = vmatpush1.bf16.msra.mxu0 %v4373_v44 }
 0x46c   :  { %3129 = vmatprep.subr.bf16.mxu0 %v4377_v45 }
 0x46f   :  { %3131 = vmatpush1.bf16.msra.mxu0 %v4381_v48 }
 0x470   :  { %3165 = vmatprep.subr.bf16.mxu0 %v4324_v4 }
 0x525   :  { %v515_v24 = vpop.f32.mrb[4].mxu0 }
 0x526   :  { %v516_v25 = vadd.f32 %v515_v24, %v447_v22  ;;  %v517_v28 = vpop.f32.mrb[5].mxu0 }
 0x527   :  { %v518_v29 = vadd.f32 %v517_v28, %v448_v23 }
 0x528   :  { %v2856_v30 = vmul.f32 -1.442695, %v516_v25 }
 0x529   :  { %v2857_v31 = vmul.f32 -1.442695, %v518_v29 }
 0x52a   :  { %3915 = vpow2.f32 %v2856_v30 }
 0x52b   :  { %3917 = vpow2.f32 %v2857_v31 }
 0x534   :  { %v3916_v34 = vpop.eup %3915 }
 0x535   :  { %v3918_v35 = vpop.eup %3917  ;;  %v523_v36 = vadd.f32 1.0, %v3916_v34 }
 0x536   :  { %v529_v37 = vadd.f32 1.0, %v3918_v35 }
 0x537   :  { %3919 = vrcp.f32 %v523_v36  ;;  %v720_v36 = vld [vmem:[#allocation4 + $0x70] sm:$0xff] }
 0x538   :  { %3921 = vrcp.f32 %v529_v37  ;;  %v721_v37 = vld [vmem:[#allocation4 + $0x78] sm:$0xff] }
 0x541   :  { %v3920_v40 = vpop.eup %3919 }
 0x542   :  { %v3922_v41 = vpop.eup %3921  ;;  %v532_v42 = vmul.f32 %v3920_v40, %v443_v17 }
 0x543   :  { %v533_v43 = vmul.f32 %v3922_v41, %v3922_v41 }
 0x545   :  { %v534_v46 = vadd.f32 %v533_v43, %v532_v42 }
 0x547   :  { %3923 = vtanh.f32 %v534_v46 }
 0x551   :  { %v3924_v47 = vpop.eup %3923 }
 0x552   :  { %v536_v49 = vmul.f32 %v3924_v47, %v3922_v41 }
 0x554   :  { %605 = vmatmul.mubr.f32.vlgmr.msra.gmra.mrb[4].mxu1 %v536_v49 }
 0x555   :  { %3135 = vmatpush1.bf16.msra.mxu1 %v4326_v8  ;;  %786 = vmatprep.mubr.f32.mxu1 %v4275_v0 }
 0x556   :  { %3137 = vmatprep.subr.bf16.mxu1 %v4328_v9 }
 0x559   :  { %3139 = vmatpush1.bf16.msra.mxu1 %v4333_v14 }
 0x55a   :  { %3141 = vmatprep.subr.bf16.mxu1 %v4337_v15 }
 0x55d   :  { %3143 = vmatpush1.bf16.msra.mxu1 %v4341_v20 }
 0x55e   :  { %3145 = vmatprep.subr.bf16.mxu1 %v4345_v21 }
 0x561   :  { %3147 = vmatpush1.bf16.msra.mxu1 %v4349_v26 }
 0x562   :  { %3149 = vmatprep.subr.bf16.mxu1 %v4353_v27 }
 0x565   :  { %3151 = vmatpush1.bf16.msra.mxu1 %v4357_v32 }
 0x566   :  { %3153 = vmatprep.subr.bf16.mxu1 %v4361_v33 }
 0x569   :  { %3155 = vmatpush1.bf16.msra.mxu1 %v4365_v38 }
 0x56a   :  { %3157 = vmatprep.subr.bf16.mxu1 %v4369_v39 }
 0x56d   :  { %3159 = vmatpush1.bf16.msra.mxu1 %v4373_v44 }
 0x56e   :  { %3161 = vmatprep.subr.bf16.mxu1 %v4377_v45 }
 0x571   :  { %3163 = vmatpush1.bf16.msra.mxu1 %v4381_v48 }
 0x572   :  { %3197 = vmatprep.subr.bf16.mxu1 %v4324_v4 }
 0x627   :  { %v606_v52 = vpop.f32.mrb[4].mxu1 }
 0x628   :  { %v607_v53 = vadd.f32 %v606_v52, %v538_v50  ;;  %v608_v54 = vpop.f32.mrb[5].mxu1 }
 0x629   :  { %v609_v55 = vadd.f32 %v608_v54, %v539_v51 }
 0x62a   :  { %v2858_v56 = vmul.f32 -1.442695, %v607_v53 }
 0x62b   :  { %v2859_v57 = vmul.f32 -1.442695, %v609_v55 }
 0x62c   :  { %3925 = vpow2.f32 %v2858_v56 }
 0x62d   :  { %3927 = vpow2.f32 %v2859_v57 }
 0x636   :  { %v3926_v58 = vpop.eup %3925 }
 0x637   :  { %v3928_v59 = vpop.eup %3927  ;;  %v614_v60 = vadd.f32 1.0, %v3926_v58 }
 0x638   :  { %v620_v61 = vadd.f32 1.0, %v3928_v59 }
 0x639   :  { %3929 = vrcp.f32 %v614_v60  ;;  %v811_v60 = vld [vmem:[#allocation4 + $0x80] sm:$0xff] }
 0x63a   :  { %3931 = vrcp.f32 %v620_v61  ;;  %v812_v61 = vld [vmem:[#allocation4 + $0x88] sm:$0xff] }
 0x643   :  { %v3930_v62 = vpop.eup %3929 }
 0x644   :  { %v3932_v63 = vpop.eup %3931  ;;  %v623_v1 = vmul.f32 %v3930_v62, %v534_v46 }
 0x645   :  { %v624_v2 = vmul.f32 %v3932_v63, %v3932_v63 }
 0x647   :  { %v625_v3 = vadd.f32 %v624_v2, %v623_v1 }
 0x649   :  { %3933 = vtanh.f32 %v625_v3 }
 0x653   :  { %v3934_v5 = vpop.eup %3933 }
 0x654   :  { %v627_v6 = vmul.f32 %v3934_v5, %v3932_v63 }
 0x656   :  { %696 = vmatmul.mubr.f32.vlgmr.msra.gmra.mrb[6].mxu0 %v627_v6 }
 0x657   :  { %3167 = vmatpush1.bf16.msra.mxu0 %v4326_v8  ;;  %877 = vmatprep.mubr.f32.mxu0 %v4275_v0 }
 0x658   :  { %3169 = vmatprep.subr.bf16.mxu0 %v4328_v9 }
 0x65b   :  { %3171 = vmatpush1.bf16.msra.mxu0 %v4333_v14 }
 0x65c   :  { %3173 = vmatprep.subr.bf16.mxu0 %v4337_v15 }
 0x65f   :  { %3175 = vmatpush1.bf16.msra.mxu0 %v4341_v20 }
 0x660   :  { %3177 = vmatprep.subr.bf16.mxu0 %v4345_v21 }
 0x663   :  { %3179 = vmatpush1.bf16.msra.mxu0 %v4349_v26 }
 0x664   :  { %3181 = vmatprep.subr.bf16.mxu0 %v4353_v27 }
 0x667   :  { %3183 = vmatpush1.bf16.msra.mxu0 %v4357_v32 }
 0x668   :  { %3185 = vmatprep.subr.bf16.mxu0 %v4361_v33 }
 0x66b   :  { %3187 = vmatpush1.bf16.msra.mxu0 %v4365_v38 }
 0x66c   :  { %3189 = vmatprep.subr.bf16.mxu0 %v4369_v39 }
 0x66f   :  { %3191 = vmatpush1.bf16.msra.mxu0 %v4373_v44 }
 0x670   :  { %3193 = vmatprep.subr.bf16.mxu0 %v4377_v45 }
 0x673   :  { %3195 = vmatpush1.bf16.msra.mxu0 %v4381_v48 }
 0x674   :  { %3229 = vmatprep.subr.bf16.mxu0 %v4324_v4 }
 0x729   :  { %v697_v11 = vpop.f32.mrb[6].mxu0 }
 0x72a   :  { %v698_v12 = vadd.f32 %v697_v11, %v629_v7  ;;  %v699_v13 = vpop.f32.mrb[7].mxu0 }
 0x72b   :  { %v700_v16 = vadd.f32 %v699_v13, %v630_v10 }
 0x72c   :  { %v2860_v17 = vmul.f32 -1.442695, %v698_v12 }
 0x72d   :  { %v2861_v18 = vmul.f32 -1.442695, %v700_v16 }
 0x72e   :  { %3935 = vpow2.f32 %v2860_v17 }
 0x72f   :  { %3937 = vpow2.f32 %v2861_v18 }
 0x738   :  { %v3936_v19 = vpop.eup %3935 }
 0x739   :  { %v3938_v22 = vpop.eup %3937  ;;  %v705_v23 = vadd.f32 1.0, %v3936_v19 }
 0x73a   :  { %v711_v24 = vadd.f32 1.0, %v3938_v22 }
 0x73b   :  { %3939 = vrcp.f32 %v705_v23  ;;  %v902_v23 = vld [vmem:[#allocation4 + $0x90] sm:$0xff] }
 0x73c   :  { %3941 = vrcp.f32 %v711_v24  ;;  %v903_v24 = vld [vmem:[#allocation4 + $0x98] sm:$0xff] }
 0x745   :  { %v3940_v25 = vpop.eup %3939 }
 0x746   :  { %v3942_v28 = vpop.eup %3941  ;;  %v714_v29 = vmul.f32 %v3940_v25, %v625_v3 }
 0x747   :  { %v715_v30 = vmul.f32 %v3942_v28, %v3942_v28 }
 0x749   :  { %v716_v31 = vadd.f32 %v715_v30, %v714_v29 }
 0x74b   :  { %3943 = vtanh.f32 %v716_v31 }
 0x755   :  { %v3944_v34 = vpop.eup %3943 }
 0x756   :  { %v718_v35 = vmul.f32 %v3944_v34, %v3942_v28 }
 0x758   :  { %787 = vmatmul.mubr.f32.vlgmr.msra.gmra.mrb[6].mxu1 %v718_v35 }
 0x759   :  { %3199 = vmatpush1.bf16.msra.mxu1 %v4326_v8  ;;  %968 = vmatprep.mubr.f32.mxu1 %v4275_v0 }
 0x75a   :  { %3201 = vmatprep.subr.bf16.mxu1 %v4328_v9 }
 0x75d   :  { %3203 = vmatpush1.bf16.msra.mxu1 %v4333_v14 }
 0x75e   :  { %3205 = vmatprep.subr.bf16.mxu1 %v4337_v15 }
 0x761   :  { %3207 = vmatpush1.bf16.msra.mxu1 %v4341_v20 }
 0x762   :  { %3209 = vmatprep.subr.bf16.mxu1 %v4345_v21 }
 0x765   :  { %3211 = vmatpush1.bf16.msra.mxu1 %v4349_v26 }
 0x766   :  { %3213 = vmatprep.subr.bf16.mxu1 %v4353_v27 }
 0x769   :  { %3215 = vmatpush1.bf16.msra.mxu1 %v4357_v32 }
 0x76a   :  { %3217 = vmatprep.subr.bf16.mxu1 %v4361_v33 }
 0x76d   :  { %3219 = vmatpush1.bf16.msra.mxu1 %v4365_v38 }
 0x76e   :  { %3221 = vmatprep.subr.bf16.mxu1 %v4369_v39 }
 0x771   :  { %3223 = vmatpush1.bf16.msra.mxu1 %v4373_v44 }
 0x772   :  { %3225 = vmatprep.subr.bf16.mxu1 %v4377_v45 }
 0x775   :  { %3227 = vmatpush1.bf16.msra.mxu1 %v4381_v48 }
 0x776   :  { %3261 = vmatprep.subr.bf16.mxu1 %v4324_v4 }
 0x82b   :  { %v788_v40 = vpop.f32.mrb[6].mxu1 }
 0x82c   :  { %v789_v41 = vadd.f32 %v788_v40, %v720_v36  ;;  %v790_v42 = vpop.f32.mrb[7].mxu1 }
 0x82d   :  { %v791_v43 = vadd.f32 %v790_v42, %v721_v37 }
 0x82e   :  { %v2862_v46 = vmul.f32 -1.442695, %v789_v41 }
 0x82f   :  { %v2863_v47 = vmul.f32 -1.442695, %v791_v43 }
 0x830   :  { %3945 = vpow2.f32 %v2862_v46 }
 0x831   :  { %3947 = vpow2.f32 %v2863_v47 }
 0x83a   :  { %v3946_v49 = vpop.eup %3945 }
 0x83b   :  { %v3948_v50 = vpop.eup %3947  ;;  %v796_v51 = vadd.f32 1.0, %v3946_v49 }
 0x83c   :  { %v802_v52 = vadd.f32 1.0, %v3948_v50 }
 0x83d   :  { %3949 = vrcp.f32 %v796_v51  ;;  %v993_v51 = vld [vmem:[#allocation4 + $0xa0] sm:$0xff] }
 0x83e   :  { %3951 = vrcp.f32 %v802_v52  ;;  %v994_v52 = vld [vmem:[#allocation4 + $0xa8] sm:$0xff] }
 0x847   :  { %v3950_v53 = vpop.eup %3949 }
 0x848   :  { %v3952_v54 = vpop.eup %3951  ;;  %v805_v55 = vmul.f32 %v3950_v53, %v716_v31 }
 0x849   :  { %v806_v56 = vmul.f32 %v3952_v54, %v3952_v54 }
 0x84b   :  { %v807_v57 = vadd.f32 %v806_v56, %v805_v55 }
 0x84d   :  { %3953 = vtanh.f32 %v807_v57 }
 0x857   :  { %v3954_v58 = vpop.eup %3953 }
 0x858   :  { %v809_v59 = vmul.f32 %v3954_v58, %v3952_v54 }
 0x85a   :  { %878 = vmatmul.mubr.f32.vlgmr.msra.gmra.mrb[8].mxu0 %v809_v59 }
 0x85b   :  { %3231 = vmatpush1.bf16.msra.mxu0 %v4326_v8  ;;  %1059 = vmatprep.mubr.f32.mxu0 %v4275_v0 }
 0x85c   :  { %3233 = vmatprep.subr.bf16.mxu0 %v4328_v9 }
 0x85f   :  { %3235 = vmatpush1.bf16.msra.mxu0 %v4333_v14 }
 0x860   :  { %3237 = vmatprep.subr.bf16.mxu0 %v4337_v15 }
 0x863   :  { %3239 = vmatpush1.bf16.msra.mxu0 %v4341_v20 }
 0x864   :  { %3241 = vmatprep.subr.bf16.mxu0 %v4345_v21 }
 0x867   :  { %3243 = vmatpush1.bf16.msra.mxu0 %v4349_v26 }
 0x868   :  { %3245 = vmatprep.subr.bf16.mxu0 %v4353_v27 }
 0x86b   :  { %3247 = vmatpush1.bf16.msra.mxu0 %v4357_v32 }
 0x86c   :  { %3249 = vmatprep.subr.bf16.mxu0 %v4361_v33 }
 0x86f   :  { %3251 = vmatpush1.bf16.msra.mxu0 %v4365_v38 }
 0x870   :  { %3253 = vmatprep.subr.bf16.mxu0 %v4369_v39 }
 0x873   :  { %3255 = vmatpush1.bf16.msra.mxu0 %v4373_v44 }
 0x874   :  { %3257 = vmatprep.subr.bf16.mxu0 %v4377_v45 }
 0x877   :  { %3259 = vmatpush1.bf16.msra.mxu0 %v4381_v48 }
 0x878   :  { %3293 = vmatprep.subr.bf16.mxu0 %v4324_v4 }
 0x92d   :  { %v879_v62 = vpop.f32.mrb[8].mxu0 }
 0x92e   :  { %v880_v63 = vadd.f32 %v879_v62, %v811_v60  ;;  %v881_v1 = vpop.f32.mrb[9].mxu0 }
 0x92f   :  { %v882_v2 = vadd.f32 %v881_v1, %v812_v61 }
 0x930   :  { %v2864_v3 = vmul.f32 -1.442695, %v880_v63 }
 0x931   :  { %v2865_v5 = vmul.f32 -1.442695, %v882_v2 }
 0x932   :  { %3955 = vpow2.f32 %v2864_v3 }
 0x933   :  { %3957 = vpow2.f32 %v2865_v5 }
 0x93c   :  { %v3956_v6 = vpop.eup %3955 }
 0x93d   :  { %v3958_v7 = vpop.eup %3957  ;;  %v887_v10 = vadd.f32 1.0, %v3956_v6 }
 0x93e   :  { %v893_v11 = vadd.f32 1.0, %v3958_v7 }
 0x93f   :  { %3959 = vrcp.f32 %v887_v10  ;;  %v1084_v10 = vld [vmem:[#allocation4 + $0xb0] sm:$0xff] }
 0x940   :  { %3961 = vrcp.f32 %v893_v11  ;;  %v1085_v11 = vld [vmem:[#allocation4 + $0xb8] sm:$0xff] }
 0x949   :  { %v3960_v12 = vpop.eup %3959 }
 0x94a   :  { %v3962_v13 = vpop.eup %3961  ;;  %v896_v16 = vmul.f32 %v3960_v12, %v807_v57 }
 0x94b   :  { %v897_v17 = vmul.f32 %v3962_v13, %v3962_v13 }
 0x94d   :  { %v898_v18 = vadd.f32 %v897_v17, %v896_v16 }
 0x94f   :  { %3963 = vtanh.f32 %v898_v18 }
 0x959   :  { %v3964_v19 = vpop.eup %3963 }
 0x95a   :  { %v900_v22 = vmul.f32 %v3964_v19, %v3962_v13 }
 0x95c   :  { %969 = vmatmul.mubr.f32.vlgmr.msra.gmra.mrb[8].mxu1 %v900_v22 }
 0x95d   :  { %3263 = vmatpush1.bf16.msra.mxu1 %v4326_v8  ;;  %1150 = vmatprep.mubr.f32.mxu1 %v4275_v0 }
 0x95e   :  { %3265 = vmatprep.subr.bf16.mxu1 %v4328_v9 }
 0x961   :  { %3267 = vmatpush1.bf16.msra.mxu1 %v4333_v14 }
 0x962   :  { %3269 = vmatprep.subr.bf16.mxu1 %v4337_v15 }
 0x965   :  { %3271 = vmatpush1.bf16.msra.mxu1 %v4341_v20 }
 0x966   :  { %3273 = vmatprep.subr.bf16.mxu1 %v4345_v21 }
 0x969   :  { %3275 = vmatpush1.bf16.msra.mxu1 %v4349_v26 }
 0x96a   :  { %3277 = vmatprep.subr.bf16.mxu1 %v4353_v27 }
 0x96d   :  { %3279 = vmatpush1.bf16.msra.mxu1 %v4357_v32 }
 0x96e   :  { %3281 = vmatprep.subr.bf16.mxu1 %v4361_v33 }
 0x971   :  { %3283 = vmatpush1.bf16.msra.mxu1 %v4365_v38 }
 0x972   :  { %3285 = vmatprep.subr.bf16.mxu1 %v4369_v39 }
 0x975   :  { %3287 = vmatpush1.bf16.msra.mxu1 %v4373_v44 }
 0x976   :  { %3289 = vmatprep.subr.bf16.mxu1 %v4377_v45 }
 0x979   :  { %3291 = vmatpush1.bf16.msra.mxu1 %v4381_v48 }
 0x97a   :  { %3325 = vmatprep.subr.bf16.mxu1 %v4324_v4 }
 0xa2f   :  { %v970_v25 = vpop.f32.mrb[8].mxu1 }
 0xa30   :  { %v971_v28 = vadd.f32 %v970_v25, %v902_v23  ;;  %v972_v29 = vpop.f32.mrb[9].mxu1 }
 0xa31   :  { %v973_v30 = vadd.f32 %v972_v29, %v903_v24 }
 0xa32   :  { %v2866_v31 = vmul.f32 -1.442695, %v971_v28 }
 0xa33   :  { %v2867_v34 = vmul.f32 -1.442695, %v973_v30 }
 0xa34   :  { %3965 = vpow2.f32 %v2866_v31 }
 0xa35   :  { %3967 = vpow2.f32 %v2867_v34 }
 0xa3e   :  { %v3966_v35 = vpop.eup %3965 }
 0xa3f   :  { %v3968_v36 = vpop.eup %3967  ;;  %v978_v37 = vadd.f32 1.0, %v3966_v35 }
 0xa40   :  { %v984_v40 = vadd.f32 1.0, %v3968_v36 }
 0xa41   :  { %3969 = vrcp.f32 %v978_v37  ;;  %v1175_v37 = vld [vmem:[#allocation4 + $0xc0] sm:$0xff] }
 0xa42   :  { %3971 = vrcp.f32 %v984_v40  ;;  %v1176_v40 = vld [vmem:[#allocation4 + $0xc8] sm:$0xff] }
 0xa4b   :  { %v3970_v41 = vpop.eup %3969 }
 0xa4c   :  { %v3972_v42 = vpop.eup %3971  ;;  %v987_v43 = vmul.f32 %v3970_v41, %v898_v18 }
 0xa4d   :  { %v988_v46 = vmul.f32 %v3972_v42, %v3972_v42 }
 0xa4f   :  { %v989_v47 = vadd.f32 %v988_v46, %v987_v43 }
 0xa51   :  { %3973 = vtanh.f32 %v989_v47 }
 0xa5b   :  { %v3974_v49 = vpop.eup %3973 }
 0xa5c   :  { %v991_v50 = vmul.f32 %v3974_v49, %v3972_v42 }
 0xa5e   :  { %1060 = vmatmul.mubr.f32.vlgmr.msra.gmra.mrb[10].mxu0 %v991_v50 }
 0xa5f   :  { %3295 = vmatpush1.bf16.msra.mxu0 %v4326_v8  ;;  %1241 = vmatprep.mubr.f32.mxu0 %v4275_v0 }
 0xa60   :  { %3297 = vmatprep.subr.bf16.mxu0 %v4328_v9 }
 0xa63   :  { %3299 = vmatpush1.bf16.msra.mxu0 %v4333_v14 }
 0xa64   :  { %3301 = vmatprep.subr.bf16.mxu0 %v4337_v15 }
 0xa67   :  { %3303 = vmatpush1.bf16.msra.mxu0 %v4341_v20 }
 0xa68   :  { %3305 = vmatprep.subr.bf16.mxu0 %v4345_v21 }
 0xa6b   :  { %3307 = vmatpush1.bf16.msra.mxu0 %v4349_v26 }
 0xa6c   :  { %3309 = vmatprep.subr.bf16.mxu0 %v4353_v27 }
 0xa6f   :  { %3311 = vmatpush1.bf16.msra.mxu0 %v4357_v32 }
 0xa70   :  { %3313 = vmatprep.subr.bf16.mxu0 %v4361_v33 }
 0xa73   :  { %3315 = vmatpush1.bf16.msra.mxu0 %v4365_v38 }
 0xa74   :  { %3317 = vmatprep.subr.bf16.mxu0 %v4369_v39 }
 0xa77   :  { %3319 = vmatpush1.bf16.msra.mxu0 %v4373_v44 }
 0xa78   :  { %3321 = vmatprep.subr.bf16.mxu0 %v4377_v45 }
 0xa7b   :  { %3323 = vmatpush1.bf16.msra.mxu0 %v4381_v48 }
 0xa7c   :  { %3357 = vmatprep.subr.bf16.mxu0 %v4324_v4 }
 0xb31   :  { %v1061_v53 = vpop.f32.mrb[10].mxu0 }
 0xb32   :  { %v1062_v54 = vadd.f32 %v1061_v53, %v993_v51  ;;  %v1063_v55 = vpop.f32.mrb[11].mxu0 }
 0xb33   :  { %v1064_v56 = vadd.f32 %v1063_v55, %v994_v52 }
 0xb34   :  { %v2868_v57 = vmul.f32 -1.442695, %v1062_v54 }
 0xb35   :  { %v2869_v58 = vmul.f32 -1.442695, %v1064_v56 }
 0xb36   :  { %3975 = vpow2.f32 %v2868_v57 }
 0xb37   :  { %3977 = vpow2.f32 %v2869_v58 }
 0xb40   :  { %v3976_v59 = vpop.eup %3975 }
 0xb41   :  { %v3978_v60 = vpop.eup %3977  ;;  %v1069_v61 = vadd.f32 1.0, %v3976_v59 }
 0xb42   :  { %v1075_v62 = vadd.f32 1.0, %v3978_v60 }
 0xb43   :  { %3979 = vrcp.f32 %v1069_v61  ;;  %v1266_v61 = vld [vmem:[#allocation4 + $0xd0] sm:$0xff] }
 0xb44   :  { %3981 = vrcp.f32 %v1075_v62  ;;  %v1267_v62 = vld [vmem:[#allocation4 + $0xd8] sm:$0xff] }
 0xb4d   :  { %v3980_v63 = vpop.eup %3979 }
 0xb4e   :  { %v3982_v1 = vpop.eup %3981  ;;  %v1078_v2 = vmul.f32 %v3980_v63, %v989_v47 }
 0xb4f   :  { %v1079_v3 = vmul.f32 %v3982_v1, %v3982_v1 }
 0xb51   :  { %v1080_v5 = vadd.f32 %v1079_v3, %v1078_v2 }
 0xb53   :  { %3983 = vtanh.f32 %v1080_v5 }
 0xb5d   :  { %v3984_v6 = vpop.eup %3983 }
 0xb5e   :  { %v1082_v7 = vmul.f32 %v3984_v6, %v3982_v1 }
 0xb60   :  { %1151 = vmatmul.mubr.f32.vlgmr.msra.gmra.mrb[10].mxu1 %v1082_v7 }
 0xb61   :  { %3327 = vmatpush1.bf16.msra.mxu1 %v4326_v8  ;;  %1332 = vmatprep.mubr.f32.mxu1 %v4275_v0 }
 0xb62   :  { %3329 = vmatprep.subr.bf16.mxu1 %v4328_v9 }
 0xb65   :  { %3331 = vmatpush1.bf16.msra.mxu1 %v4333_v14 }
 0xb66   :  { %3333 = vmatprep.subr.bf16.mxu1 %v4337_v15 }
 0xb69   :  { %3335 = vmatpush1.bf16.msra.mxu1 %v4341_v20 }
 0xb6a   :  { %3337 = vmatprep.subr.bf16.mxu1 %v4345_v21 }
 0xb6d   :  { %3339 = vmatpush1.bf16.msra.mxu1 %v4349_v26 }
 0xb6e   :  { %3341 = vmatprep.subr.bf16.mxu1 %v4353_v27 }
 0xb71   :  { %3343 = vmatpush1.bf16.msra.mxu1 %v4357_v32 }
 0xb72   :  { %3345 = vmatprep.subr.bf16.mxu1 %v4361_v33 }
 0xb75   :  { %3347 = vmatpush1.bf16.msra.mxu1 %v4365_v38 }
 0xb76   :  { %3349 = vmatprep.subr.bf16.mxu1 %v4369_v39 }
 0xb79   :  { %3351 = vmatpush1.bf16.msra.mxu1 %v4373_v44 }
 0xb7a   :  { %3353 = vmatprep.subr.bf16.mxu1 %v4377_v45 }
 0xb7d   :  { %3355 = vmatpush1.bf16.msra.mxu1 %v4381_v48 }
 0xb7e   :  { %3389 = vmatprep.subr.bf16.mxu1 %v4324_v4 }
 0xc33   :  { %v1152_v12 = vpop.f32.mrb[10].mxu1 }
 0xc34   :  { %v1153_v13 = vadd.f32 %v1152_v12, %v1084_v10  ;;  %v1154_v16 = vpop.f32.mrb[11].mxu1 }
 0xc35   :  { %v1155_v17 = vadd.f32 %v1154_v16, %v1085_v11 }
 0xc36   :  { %v2870_v18 = vmul.f32 -1.442695, %v1153_v13 }
 0xc37   :  { %v2871_v19 = vmul.f32 -1.442695, %v1155_v17 }
 0xc38   :  { %3985 = vpow2.f32 %v2870_v18 }
 0xc39   :  { %3987 = vpow2.f32 %v2871_v19 }
 0xc42   :  { %v3986_v22 = vpop.eup %3985 }
 0xc43   :  { %v3988_v23 = vpop.eup %3987  ;;  %v1160_v24 = vadd.f32 1.0, %v3986_v22 }
 0xc44   :  { %v1166_v25 = vadd.f32 1.0, %v3988_v23 }
 0xc45   :  { %3989 = vrcp.f32 %v1160_v24  ;;  %v1357_v24 = vld [vmem:[#allocation4 + $0xe0] sm:$0xff] }
 0xc46   :  { %3991 = vrcp.f32 %v1166_v25  ;;  %v1358_v25 = vld [vmem:[#allocation4 + $0xe8] sm:$0xff] }
 0xc4f   :  { %v3990_v28 = vpop.eup %3989 }
 0xc50   :  { %v3992_v29 = vpop.eup %3991  ;;  %v1169_v30 = vmul.f32 %v3990_v28, %v1080_v5 }
 0xc51   :  { %v1170_v31 = vmul.f32 %v3992_v29, %v3992_v29 }
 0xc53   :  { %v1171_v34 = vadd.f32 %v1170_v31, %v1169_v30 }
 0xc55   :  { %3993 = vtanh.f32 %v1171_v34 }
 0xc5f   :  { %v3994_v35 = vpop.eup %3993 }
 0xc60   :  { %v1173_v36 = vmul.f32 %v3994_v35, %v3992_v29 }
 0xc62   :  { %1242 = vmatmul.mubr.f32.vlgmr.msra.gmra.mrb[12].mxu0 %v1173_v36 }
 0xc63   :  { %3359 = vmatpush1.bf16.msra.mxu0 %v4326_v8  ;;  %1423 = vmatprep.mubr.f32.mxu0 %v4275_v0 }
 0xc64   :  { %3361 = vmatprep.subr.bf16.mxu0 %v4328_v9 }
 0xc67   :  { %3363 = vmatpush1.bf16.msra.mxu0 %v4333_v14 }
 0xc68   :  { %3365 = vmatprep.subr.bf16.mxu0 %v4337_v15 }
 0xc6b   :  { %3367 = vmatpush1.bf16.msra.mxu0 %v4341_v20 }
 0xc6c   :  { %3369 = vmatprep.subr.bf16.mxu0 %v4345_v21 }
 0xc6f   :  { %3371 = vmatpush1.bf16.msra.mxu0 %v4349_v26 }
 0xc70   :  { %3373 = vmatprep.subr.bf16.mxu0 %v4353_v27 }
 0xc73   :  { %3375 = vmatpush1.bf16.msra.mxu0 %v4357_v32 }
 0xc74   :  { %3377 = vmatprep.subr.bf16.mxu0 %v4361_v33 }
 0xc77   :  { %3379 = vmatpush1.bf16.msra.mxu0 %v4365_v38 }
 0xc78   :  { %3381 = vmatprep.subr.bf16.mxu0 %v4369_v39 }
 0xc7b   :  { %3383 = vmatpush1.bf16.msra.mxu0 %v4373_v44 }
 0xc7c   :  { %3385 = vmatprep.subr.bf16.mxu0 %v4377_v45 }
 0xc7f   :  { %3387 = vmatpush1.bf16.msra.mxu0 %v4381_v48 }
 0xc80   :  { %3421 = vmatprep.subr.bf16.mxu0 %v4324_v4 }
 0xd35   :  { %v1243_v41 = vpop.f32.mrb[12].mxu0 }
 0xd36   :  { %v1244_v42 = vadd.f32 %v1243_v41, %v1175_v37  ;;  %v1245_v43 = vpop.f32.mrb[13].mxu0 }
 0xd37   :  { %v1246_v46 = vadd.f32 %v1245_v43, %v1176_v40 }
 0xd38   :  { %v2872_v47 = vmul.f32 -1.442695, %v1244_v42 }
 0xd39   :  { %v2873_v49 = vmul.f32 -1.442695, %v1246_v46 }
 0xd3a   :  { %3995 = vpow2.f32 %v2872_v47 }
 0xd3b   :  { %3997 = vpow2.f32 %v2873_v49 }
 0xd44   :  { %v3996_v50 = vpop.eup %3995 }
 0xd45   :  { %v3998_v51 = vpop.eup %3997  ;;  %v1251_v52 = vadd.f32 1.0, %v3996_v50 }
 0xd46   :  { %v1257_v53 = vadd.f32 1.0, %v3998_v51 }
 0xd47   :  { %3999 = vrcp.f32 %v1251_v52  ;;  %v1448_v52 = vld [vmem:[#allocation4 + $0xf0] sm:$0xff] }
 0xd48   :  { %4001 = vrcp.f32 %v1257_v53  ;;  %v1449_v53 = vld [vmem:[#allocation4 + $0xf8] sm:$0xff] }
 0xd51   :  { %v4000_v54 = vpop.eup %3999 }
 0xd52   :  { %v4002_v55 = vpop.eup %4001  ;;  %v1260_v56 = vmul.f32 %v4000_v54, %v1171_v34 }
 0xd53   :  { %v1261_v57 = vmul.f32 %v4002_v55, %v4002_v55 }
 0xd55   :  { %v1262_v58 = vadd.f32 %v1261_v57, %v1260_v56 }
 0xd57   :  { %4003 = vtanh.f32 %v1262_v58 }
 0xd61   :  { %v4004_v59 = vpop.eup %4003 }
 0xd62   :  { %v1264_v60 = vmul.f32 %v4004_v59, %v4002_v55 }
 0xd64   :  { %1333 = vmatmul.mubr.f32.vlgmr.msra.gmra.mrb[12].mxu1 %v1264_v60 }
 0xd65   :  { %3391 = vmatpush1.bf16.msra.mxu1 %v4326_v8  ;;  %1514 = vmatprep.mubr.f32.mxu1 %v4275_v0 }
 0xd66   :  { %3393 = vmatprep.subr.bf16.mxu1 %v4328_v9 }
 0xd69   :  { %3395 = vmatpush1.bf16.msra.mxu1 %v4333_v14 }
 0xd6a   :  { %3397 = vmatprep.subr.bf16.mxu1 %v4337_v15 }
 0xd6d   :  { %3399 = vmatpush1.bf16.msra.mxu1 %v4341_v20 }
 0xd6e   :  { %3401 = vmatprep.subr.bf16.mxu1 %v4345_v21 }
 0xd71   :  { %3403 = vmatpush1.bf16.msra.mxu1 %v4349_v26 }
 0xd72   :  { %3405 = vmatprep.subr.bf16.mxu1 %v4353_v27 }
 0xd75   :  { %3407 = vmatpush1.bf16.msra.mxu1 %v4357_v32 }
 0xd76   :  { %3409 = vmatprep.subr.bf16.mxu1 %v4361_v33 }
 0xd79   :  { %3411 = vmatpush1.bf16.msra.mxu1 %v4365_v38 }
 0xd7a   :  { %3413 = vmatprep.subr.bf16.mxu1 %v4369_v39 }
 0xd7d   :  { %3415 = vmatpush1.bf16.msra.mxu1 %v4373_v44 }
 0xd7e   :  { %3417 = vmatprep.subr.bf16.mxu1 %v4377_v45 }
 0xd81   :  { %3419 = vmatpush1.bf16.msra.mxu1 %v4381_v48 }
 0xd82   :  { %3453 = vmatprep.subr.bf16.mxu1 %v4324_v4 }
 0xe37   :  { %v1334_v63 = vpop.f32.mrb[12].mxu1 }
 0xe38   :  { %v1335_v1 = vadd.f32 %v1334_v63, %v1266_v61  ;;  %v1336_v2 = vpop.f32.mrb[13].mxu1 }
 0xe39   :  { %v1337_v3 = vadd.f32 %v1336_v2, %v1267_v62 }
 0xe3a   :  { %v2874_v5 = vmul.f32 -1.442695, %v1335_v1 }
 0xe3b   :  { %v2875_v6 = vmul.f32 -1.442695, %v1337_v3 }
 0xe3c   :  { %4005 = vpow2.f32 %v2874_v5 }
 0xe3d   :  { %4007 = vpow2.f32 %v2875_v6 }
 0xe46   :  { %v4006_v7 = vpop.eup %4005 }
 0xe47   :  { %v4008_v10 = vpop.eup %4007  ;;  %v1342_v11 = vadd.f32 1.0, %v4006_v7 }
 0xe48   :  { %v1348_v12 = vadd.f32 1.0, %v4008_v10 }
 0xe49   :  { %4009 = vrcp.f32 %v1342_v11  ;;  %v1539_v11 = vld [vmem:[#allocation4 + $0x100] sm:$0xff] }
 0xe4a   :  { %4011 = vrcp.f32 %v1348_v12  ;;  %v1540_v12 = vld [vmem:[#allocation4 + $0x108] sm:$0xff] }
 0xe53   :  { %v4010_v13 = vpop.eup %4009 }
 0xe54   :  { %v4012_v16 = vpop.eup %4011  ;;  %v1351_v17 = vmul.f32 %v4010_v13, %v1262_v58 }
 0xe55   :  { %v1352_v18 = vmul.f32 %v4012_v16, %v4012_v16 }
 0xe57   :  { %v1353_v19 = vadd.f32 %v1352_v18, %v1351_v17 }
 0xe59   :  { %4013 = vtanh.f32 %v1353_v19 }
 0xe63   :  { %v4014_v22 = vpop.eup %4013 }
 0xe64   :  { %v1355_v23 = vmul.f32 %v4014_v22, %v4012_v16 }
 0xe66   :  { %1424 = vmatmul.mubr.f32.vlgmr.msra.gmra.mrb[14].mxu0 %v1355_v23 }
 0xe67   :  { %3423 = vmatpush1.bf16.msra.mxu0 %v4326_v8  ;;  %1605 = vmatprep.mubr.f32.mxu0 %v4275_v0 }
 0xe68   :  { %3425 = vmatprep.subr.bf16.mxu0 %v4328_v9 }
 0xe6b   :  { %3427 = vmatpush1.bf16.msra.mxu0 %v4333_v14 }
 0xe6c   :  { %3429 = vmatprep.subr.bf16.mxu0 %v4337_v15 }
 0xe6f   :  { %3431 = vmatpush1.bf16.msra.mxu0 %v4341_v20 }
 0xe70   :  { %3433 = vmatprep.subr.bf16.mxu0 %v4345_v21 }
 0xe73   :  { %3435 = vmatpush1.bf16.msra.mxu0 %v4349_v26 }
 0xe74   :  { %3437 = vmatprep.subr.bf16.mxu0 %v4353_v27 }
 0xe77   :  { %3439 = vmatpush1.bf16.msra.mxu0 %v4357_v32 }
 0xe78   :  { %3441 = vmatprep.subr.bf16.mxu0 %v4361_v33 }
 0xe7b   :  { %3443 = vmatpush1.bf16.msra.mxu0 %v4365_v38 }
 0xe7c   :  { %3445 = vmatprep.subr.bf16.mxu0 %v4369_v39 }
 0xe7f   :  { %3447 = vmatpush1.bf16.msra.mxu0 %v4373_v44 }
 0xe80   :  { %3449 = vmatprep.subr.bf16.mxu0 %v4377_v45 }
 0xe83   :  { %3451 = vmatpush1.bf16.msra.mxu0 %v4381_v48 }
 0xe84   :  { %3485 = vmatprep.subr.bf16.mxu0 %v4324_v4 }
 0xf39   :  { %v1425_v28 = vpop.f32.mrb[14].mxu0 }
 0xf3a   :  { %v1426_v29 = vadd.f32 %v1425_v28, %v1357_v24  ;;  %v1427_v30 = vpop.f32.mrb[15].mxu0 }
 0xf3b   :  { %v1428_v31 = vadd.f32 %v1427_v30, %v1358_v25 }
 0xf3c   :  { %v2876_v34 = vmul.f32 -1.442695, %v1426_v29 }
 0xf3d   :  { %v2877_v35 = vmul.f32 -1.442695, %v1428_v31 }
 0xf3e   :  { %4015 = vpow2.f32 %v2876_v34 }
 0xf3f   :  { %4017 = vpow2.f32 %v2877_v35 }
 0xf48   :  { %v4016_v36 = vpop.eup %4015 }
 0xf49   :  { %v4018_v37 = vpop.eup %4017  ;;  %v1433_v40 = vadd.f32 1.0, %v4016_v36 }
 0xf4a   :  { %v1439_v41 = vadd.f32 1.0, %v4018_v37 }
 0xf4b   :  { %4019 = vrcp.f32 %v1433_v40  ;;  %v1630_v40 = vld [vmem:[#allocation4 + $0x110] sm:$0xff] }
 0xf4c   :  { %4021 = vrcp.f32 %v1439_v41  ;;  %v1631_v41 = vld [vmem:[#allocation4 + $0x118] sm:$0xff] }
 0xf55   :  { %v4020_v42 = vpop.eup %4019 }
 0xf56   :  { %v4022_v43 = vpop.eup %4021  ;;  %v1442_v46 = vmul.f32 %v4020_v42, %v1353_v19 }
 0xf57   :  { %v1443_v47 = vmul.f32 %v4022_v43, %v4022_v43 }
 0xf59   :  { %v1444_v49 = vadd.f32 %v1443_v47, %v1442_v46 }
 0xf5b   :  { %4023 = vtanh.f32 %v1444_v49 }
 0xf65   :  { %v4024_v50 = vpop.eup %4023 }
 0xf66   :  { %v1446_v51 = vmul.f32 %v4024_v50, %v4022_v43 }
 0xf68   :  { %1515 = vmatmul.mubr.f32.vlgmr.msra.gmra.mrb[14].mxu1 %v1446_v51 }
 0xf69   :  { %3455 = vmatpush1.bf16.msra.mxu1 %v4326_v8  ;;  %1696 = vmatprep.mubr.f32.mxu1 %v4275_v0 }
 0xf6a   :  { %3457 = vmatprep.subr.bf16.mxu1 %v4328_v9 }
 0xf6d   :  { %3459 = vmatpush1.bf16.msra.mxu1 %v4333_v14 }
 0xf6e   :  { %3461 = vmatprep.subr.bf16.mxu1 %v4337_v15 }
 0xf71   :  { %3463 = vmatpush1.bf16.msra.mxu1 %v4341_v20 }
 0xf72   :  { %3465 = vmatprep.subr.bf16.mxu1 %v4345_v21 }
 0xf75   :  { %3467 = vmatpush1.bf16.msra.mxu1 %v4349_v26 }
 0xf76   :  { %3469 = vmatprep.subr.bf16.mxu1 %v4353_v27 }
 0xf79   :  { %3471 = vmatpush1.bf16.msra.mxu1 %v4357_v32 }
 0xf7a   :  { %3473 = vmatprep.subr.bf16.mxu1 %v4361_v33 }
 0xf7d   :  { %3475 = vmatpush1.bf16.msra.mxu1 %v4365_v38 }
 0xf7e   :  { %3477 = vmatprep.subr.bf16.mxu1 %v4369_v39 }
 0xf81   :  { %3479 = vmatpush1.bf16.msra.mxu1 %v4373_v44 }
 0xf82   :  { %3481 = vmatprep.subr.bf16.mxu1 %v4377_v45 }
 0xf85   :  { %3483 = vmatpush1.bf16.msra.mxu1 %v4381_v48 }
 0xf86   :  { %3517 = vmatprep.subr.bf16.mxu1 %v4324_v4 }
0x103b   :  { %v1516_v54 = vpop.f32.mrb[14].mxu1 }
0x103c   :  { %v1517_v55 = vadd.f32 %v1516_v54, %v1448_v52  ;;  %v1518_v56 = vpop.f32.mrb[15].mxu1 }
0x103d   :  { %v1519_v57 = vadd.f32 %v1518_v56, %v1449_v53 }
0x103e   :  { %v2878_v58 = vmul.f32 -1.442695, %v1517_v55 }
0x103f   :  { %v2879_v59 = vmul.f32 -1.442695, %v1519_v57 }
0x1040   :  { %4025 = vpow2.f32 %v2878_v58 }
0x1041   :  { %4027 = vpow2.f32 %v2879_v59 }
0x104a   :  { %v4026_v60 = vpop.eup %4025 }
0x104b   :  { %v4028_v61 = vpop.eup %4027  ;;  %v1524_v62 = vadd.f32 1.0, %v4026_v60 }
0x104c   :  { %v1530_v63 = vadd.f32 1.0, %v4028_v61 }
0x104d   :  { %4029 = vrcp.f32 %v1524_v62  ;;  %v1721_v62 = vld [vmem:[#allocation4 + $0x120] sm:$0xff] }
0x104e   :  { %4031 = vrcp.f32 %v1530_v63  ;;  %v1722_v63 = vld [vmem:[#allocation4 + $0x128] sm:$0xff] }
0x1057   :  { %v4030_v1 = vpop.eup %4029 }
0x1058   :  { %v4032_v2 = vpop.eup %4031  ;;  %v1533_v3 = vmul.f32 %v4030_v1, %v1444_v49 }
0x1059   :  { %v1534_v5 = vmul.f32 %v4032_v2, %v4032_v2 }
0x105b   :  { %v1535_v6 = vadd.f32 %v1534_v5, %v1533_v3 }
0x105d   :  { %4033 = vtanh.f32 %v1535_v6 }
0x1067   :  { %v4034_v7 = vpop.eup %4033 }
0x1068   :  { %v1537_v10 = vmul.f32 %v4034_v7, %v4032_v2 }
0x106a   :  { %1606 = vmatmul.mubr.f32.vlgmr.msra.gmra.mrb[16].mxu0 %v1537_v10 }
0x106b   :  { %3487 = vmatpush1.bf16.msra.mxu0 %v4326_v8  ;;  %1787 = vmatprep.mubr.f32.mxu0 %v4275_v0 }
0x106c   :  { %3489 = vmatprep.subr.bf16.mxu0 %v4328_v9 }
0x106f   :  { %3491 = vmatpush1.bf16.msra.mxu0 %v4333_v14 }
0x1070   :  { %3493 = vmatprep.subr.bf16.mxu0 %v4337_v15 }
0x1073   :  { %3495 = vmatpush1.bf16.msra.mxu0 %v4341_v20 }
0x1074   :  { %3497 = vmatprep.subr.bf16.mxu0 %v4345_v21 }
0x1077   :  { %3499 = vmatpush1.bf16.msra.mxu0 %v4349_v26 }
0x1078   :  { %3501 = vmatprep.subr.bf16.mxu0 %v4353_v27 }
0x107b   :  { %3503 = vmatpush1.bf16.msra.mxu0 %v4357_v32 }
0x107c   :  { %3505 = vmatprep.subr.bf16.mxu0 %v4361_v33 }
0x107f   :  { %3507 = vmatpush1.bf16.msra.mxu0 %v4365_v38 }
0x1080   :  { %3509 = vmatprep.subr.bf16.mxu0 %v4369_v39 }
0x1083   :  { %3511 = vmatpush1.bf16.msra.mxu0 %v4373_v44 }
0x1084   :  { %3513 = vmatprep.subr.bf16.mxu0 %v4377_v45 }
0x1087   :  { %3515 = vmatpush1.bf16.msra.mxu0 %v4381_v48 }
0x1088   :  { %3549 = vmatprep.subr.bf16.mxu0 %v4324_v4 }
0x113d   :  { %v1607_v13 = vpop.f32.mrb[16].mxu0 }
0x113e   :  { %v1608_v16 = vadd.f32 %v1607_v13, %v1539_v11  ;;  %v1609_v17 = vpop.f32.mrb[17].mxu0 }
0x113f   :  { %v1610_v18 = vadd.f32 %v1609_v17, %v1540_v12 }
0x1140   :  { %v2880_v19 = vmul.f32 -1.442695, %v1608_v16 }
0x1141   :  { %v2881_v22 = vmul.f32 -1.442695, %v1610_v18 }
0x1142   :  { %4035 = vpow2.f32 %v2880_v19 }
0x1143   :  { %4037 = vpow2.f32 %v2881_v22 }
0x114c   :  { %v4036_v23 = vpop.eup %4035 }
0x114d   :  { %v4038_v24 = vpop.eup %4037  ;;  %v1615_v25 = vadd.f32 1.0, %v4036_v23 }
0x114e   :  { %v1621_v28 = vadd.f32 1.0, %v4038_v24 }
0x114f   :  { %4039 = vrcp.f32 %v1615_v25  ;;  %v1812_v25 = vld [vmem:[#allocation4 + $0x130] sm:$0xff] }
0x1150   :  { %4041 = vrcp.f32 %v1621_v28  ;;  %v1813_v28 = vld [vmem:[#allocation4 + $0x138] sm:$0xff] }
0x1159   :  { %v4040_v29 = vpop.eup %4039 }
0x115a   :  { %v4042_v30 = vpop.eup %4041  ;;  %v1624_v31 = vmul.f32 %v4040_v29, %v1535_v6 }
0x115b   :  { %v1625_v34 = vmul.f32 %v4042_v30, %v4042_v30 }
0x115d   :  { %v1626_v35 = vadd.f32 %v1625_v34, %v1624_v31 }
0x115f   :  { %4043 = vtanh.f32 %v1626_v35 }
0x1169   :  { %v4044_v36 = vpop.eup %4043 }
0x116a   :  { %v1628_v37 = vmul.f32 %v4044_v36, %v4042_v30 }
0x116c   :  { %1697 = vmatmul.mubr.f32.vlgmr.msra.gmra.mrb[16].mxu1 %v1628_v37 }
0x116d   :  { %3519 = vmatpush1.bf16.msra.mxu1 %v4326_v8  ;;  %1878 = vmatprep.mubr.f32.mxu1 %v4275_v0 }
0x116e   :  { %3521 = vmatprep.subr.bf16.mxu1 %v4328_v9 }
0x1171   :  { %3523 = vmatpush1.bf16.msra.mxu1 %v4333_v14 }
0x1172   :  { %3525 = vmatprep.subr.bf16.mxu1 %v4337_v15 }
0x1175   :  { %3527 = vmatpush1.bf16.msra.mxu1 %v4341_v20 }
0x1176   :  { %3529 = vmatprep.subr.bf16.mxu1 %v4345_v21 }
0x1179   :  { %3531 = vmatpush1.bf16.msra.mxu1 %v4349_v26 }
0x117a   :  { %3533 = vmatprep.subr.bf16.mxu1 %v4353_v27 }
0x117d   :  { %3535 = vmatpush1.bf16.msra.mxu1 %v4357_v32 }
0x117e   :  { %3537 = vmatprep.subr.bf16.mxu1 %v4361_v33 }
0x1181   :  { %3539 = vmatpush1.bf16.msra.mxu1 %v4365_v38 }
0x1182   :  { %3541 = vmatprep.subr.bf16.mxu1 %v4369_v39 }
0x1185   :  { %3543 = vmatpush1.bf16.msra.mxu1 %v4373_v44 }
0x1186   :  { %3545 = vmatprep.subr.bf16.mxu1 %v4377_v45 }
0x1189   :  { %3547 = vmatpush1.bf16.msra.mxu1 %v4381_v48 }
0x118a   :  { %3581 = vmatprep.subr.bf16.mxu1 %v4324_v4 }
0x123f   :  { %v1698_v42 = vpop.f32.mrb[16].mxu1 }
0x1240   :  { %v1699_v43 = vadd.f32 %v1698_v42, %v1630_v40  ;;  %v1700_v46 = vpop.f32.mrb[17].mxu1 }
0x1241   :  { %v1701_v47 = vadd.f32 %v1700_v46, %v1631_v41 }
0x1242   :  { %v2882_v49 = vmul.f32 -1.442695, %v1699_v43 }
0x1243   :  { %v2883_v50 = vmul.f32 -1.442695, %v1701_v47 }
0x1244   :  { %4045 = vpow2.f32 %v2882_v49 }
0x1245   :  { %4047 = vpow2.f32 %v2883_v50 }
0x124e   :  { %v4046_v51 = vpop.eup %4045 }
0x124f   :  { %v4048_v52 = vpop.eup %4047  ;;  %v1706_v53 = vadd.f32 1.0, %v4046_v51 }
0x1250   :  { %v1712_v54 = vadd.f32 1.0, %v4048_v52 }
0x1251   :  { %4049 = vrcp.f32 %v1706_v53  ;;  %v1903_v53 = vld [vmem:[#allocation4 + $0x140] sm:$0xff] }
0x1252   :  { %4051 = vrcp.f32 %v1712_v54  ;;  %v1904_v54 = vld [vmem:[#allocation4 + $0x148] sm:$0xff] }
0x125b   :  { %v4050_v55 = vpop.eup %4049 }
0x125c   :  { %v4052_v56 = vpop.eup %4051  ;;  %v1715_v57 = vmul.f32 %v4050_v55, %v1626_v35 }
0x125d   :  { %v1716_v58 = vmul.f32 %v4052_v56, %v4052_v56 }
0x125f   :  { %v1717_v59 = vadd.f32 %v1716_v58, %v1715_v57 }
0x1261   :  { %4053 = vtanh.f32 %v1717_v59 }
0x126b   :  { %v4054_v60 = vpop.eup %4053 }
0x126c   :  { %v1719_v61 = vmul.f32 %v4054_v60, %v4052_v56 }
0x126e   :  { %1788 = vmatmul.mubr.f32.vlgmr.msra.gmra.mrb[18].mxu0 %v1719_v61 }
0x126f   :  { %3551 = vmatpush1.bf16.msra.mxu0 %v4326_v8  ;;  %1969 = vmatprep.mubr.f32.mxu0 %v4275_v0 }
0x1270   :  { %3553 = vmatprep.subr.bf16.mxu0 %v4328_v9 }
0x1273   :  { %3555 = vmatpush1.bf16.msra.mxu0 %v4333_v14 }
0x1274   :  { %3557 = vmatprep.subr.bf16.mxu0 %v4337_v15 }
0x1277   :  { %3559 = vmatpush1.bf16.msra.mxu0 %v4341_v20 }
0x1278   :  { %3561 = vmatprep.subr.bf16.mxu0 %v4345_v21 }
0x127b   :  { %3563 = vmatpush1.bf16.msra.mxu0 %v4349_v26 }
0x127c   :  { %3565 = vmatprep.subr.bf16.mxu0 %v4353_v27 }
0x127f   :  { %3567 = vmatpush1.bf16.msra.mxu0 %v4357_v32 }
0x1280   :  { %3569 = vmatprep.subr.bf16.mxu0 %v4361_v33 }
0x1283   :  { %3571 = vmatpush1.bf16.msra.mxu0 %v4365_v38 }
0x1284   :  { %3573 = vmatprep.subr.bf16.mxu0 %v4369_v39 }
0x1287   :  { %3575 = vmatpush1.bf16.msra.mxu0 %v4373_v44 }
0x1288   :  { %3577 = vmatprep.subr.bf16.mxu0 %v4377_v45 }
0x128b   :  { %3579 = vmatpush1.bf16.msra.mxu0 %v4381_v48 }
0x128c   :  { %3613 = vmatprep.subr.bf16.mxu0 %v4324_v4 }
0x1341   :  { %v1789_v1 = vpop.f32.mrb[18].mxu0 }
0x1342   :  { %v1790_v2 = vadd.f32 %v1789_v1, %v1721_v62  ;;  %v1791_v3 = vpop.f32.mrb[19].mxu0 }
0x1343   :  { %v1792_v5 = vadd.f32 %v1791_v3, %v1722_v63 }
0x1344   :  { %v2884_v6 = vmul.f32 -1.442695, %v1790_v2 }
0x1345   :  { %v2885_v7 = vmul.f32 -1.442695, %v1792_v5 }
0x1346   :  { %4055 = vpow2.f32 %v2884_v6 }
0x1347   :  { %4057 = vpow2.f32 %v2885_v7 }
0x1350   :  { %v4056_v10 = vpop.eup %4055 }
0x1351   :  { %v4058_v11 = vpop.eup %4057  ;;  %v1797_v12 = vadd.f32 1.0, %v4056_v10 }
0x1352   :  { %v1803_v13 = vadd.f32 1.0, %v4058_v11 }
0x1353   :  { %4059 = vrcp.f32 %v1797_v12  ;;  %v1994_v12 = vld [vmem:[#allocation4 + $0x150] sm:$0xff] }
0x1354   :  { %4061 = vrcp.f32 %v1803_v13  ;;  %v1995_v13 = vld [vmem:[#allocation4 + $0x158] sm:$0xff] }
0x135d   :  { %v4060_v16 = vpop.eup %4059 }
0x135e   :  { %v4062_v17 = vpop.eup %4061  ;;  %v1806_v18 = vmul.f32 %v4060_v16, %v1717_v59 }
0x135f   :  { %v1807_v19 = vmul.f32 %v4062_v17, %v4062_v17 }
0x1361   :  { %v1808_v22 = vadd.f32 %v1807_v19, %v1806_v18 }
0x1363   :  { %4063 = vtanh.f32 %v1808_v22 }
0x136d   :  { %v4064_v23 = vpop.eup %4063 }
0x136e   :  { %v1810_v24 = vmul.f32 %v4064_v23, %v4062_v17 }
0x1370   :  { %1879 = vmatmul.mubr.f32.vlgmr.msra.gmra.mrb[18].mxu1 %v1810_v24 }
0x1371   :  { %3583 = vmatpush1.bf16.msra.mxu1 %v4326_v8  ;;  %2060 = vmatprep.mubr.f32.mxu1 %v4275_v0 }
0x1372   :  { %3585 = vmatprep.subr.bf16.mxu1 %v4328_v9 }
0x1375   :  { %3587 = vmatpush1.bf16.msra.mxu1 %v4333_v14 }
0x1376   :  { %3589 = vmatprep.subr.bf16.mxu1 %v4337_v15 }
0x1379   :  { %3591 = vmatpush1.bf16.msra.mxu1 %v4341_v20 }
0x137a   :  { %3593 = vmatprep.subr.bf16.mxu1 %v4345_v21 }
0x137d   :  { %3595 = vmatpush1.bf16.msra.mxu1 %v4349_v26 }
0x137e   :  { %3597 = vmatprep.subr.bf16.mxu1 %v4353_v27 }
0x1381   :  { %3599 = vmatpush1.bf16.msra.mxu1 %v4357_v32 }
0x1382   :  { %3601 = vmatprep.subr.bf16.mxu1 %v4361_v33 }
0x1385   :  { %3603 = vmatpush1.bf16.msra.mxu1 %v4365_v38 }
0x1386   :  { %3605 = vmatprep.subr.bf16.mxu1 %v4369_v39 }
0x1389   :  { %3607 = vmatpush1.bf16.msra.mxu1 %v4373_v44 }
0x138a   :  { %3609 = vmatprep.subr.bf16.mxu1 %v4377_v45 }
0x138d   :  { %3611 = vmatpush1.bf16.msra.mxu1 %v4381_v48 }
0x138e   :  { %3645 = vmatprep.subr.bf16.mxu1 %v4324_v4 }
0x1443   :  { %v1880_v29 = vpop.f32.mrb[18].mxu1 }
0x1444   :  { %v1881_v30 = vadd.f32 %v1880_v29, %v1812_v25  ;;  %v1882_v31 = vpop.f32.mrb[19].mxu1 }
0x1445   :  { %v1883_v34 = vadd.f32 %v1882_v31, %v1813_v28 }
0x1446   :  { %v2886_v35 = vmul.f32 -1.442695, %v1881_v30 }
0x1447   :  { %v2887_v36 = vmul.f32 -1.442695, %v1883_v34 }
0x1448   :  { %4065 = vpow2.f32 %v2886_v35 }
0x1449   :  { %4067 = vpow2.f32 %v2887_v36 }
0x1452   :  { %v4066_v37 = vpop.eup %4065 }
0x1453   :  { %v4068_v40 = vpop.eup %4067  ;;  %v1888_v41 = vadd.f32 1.0, %v4066_v37 }
0x1454   :  { %v1894_v42 = vadd.f32 1.0, %v4068_v40 }
0x1455   :  { %4069 = vrcp.f32 %v1888_v41  ;;  %v2085_v41 = vld [vmem:[#allocation4 + $0x160] sm:$0xff] }
0x1456   :  { %4071 = vrcp.f32 %v1894_v42  ;;  %v2086_v42 = vld [vmem:[#allocation4 + $0x168] sm:$0xff] }
0x145f   :  { %v4070_v43 = vpop.eup %4069 }
0x1460   :  { %v4072_v46 = vpop.eup %4071  ;;  %v1897_v47 = vmul.f32 %v4070_v43, %v1808_v22 }
0x1461   :  { %v1898_v49 = vmul.f32 %v4072_v46, %v4072_v46 }
0x1463   :  { %v1899_v50 = vadd.f32 %v1898_v49, %v1897_v47 }
0x1465   :  { %4073 = vtanh.f32 %v1899_v50 }
0x146f   :  { %v4074_v51 = vpop.eup %4073 }
0x1470   :  { %v1901_v52 = vmul.f32 %v4074_v51, %v4072_v46 }
0x1472   :  { %1970 = vmatmul.mubr.f32.vlgmr.msra.gmra.mrb[20].mxu0 %v1901_v52 }
0x1473   :  { %3615 = vmatpush1.bf16.msra.mxu0 %v4326_v8  ;;  %2151 = vmatprep.mubr.f32.mxu0 %v4275_v0 }
0x1474   :  { %3617 = vmatprep.subr.bf16.mxu0 %v4328_v9 }
0x1477   :  { %3619 = vmatpush1.bf16.msra.mxu0 %v4333_v14 }
0x1478   :  { %3621 = vmatprep.subr.bf16.mxu0 %v4337_v15 }
0x147b   :  { %3623 = vmatpush1.bf16.msra.mxu0 %v4341_v20 }
0x147c   :  { %3625 = vmatprep.subr.bf16.mxu0 %v4345_v21 }
0x147f   :  { %3627 = vmatpush1.bf16.msra.mxu0 %v4349_v26 }
0x1480   :  { %3629 = vmatprep.subr.bf16.mxu0 %v4353_v27 }
0x1483   :  { %3631 = vmatpush1.bf16.msra.mxu0 %v4357_v32 }
0x1484   :  { %3633 = vmatprep.subr.bf16.mxu0 %v4361_v33 }
0x1487   :  { %3635 = vmatpush1.bf16.msra.mxu0 %v4365_v38 }
0x1488   :  { %3637 = vmatprep.subr.bf16.mxu0 %v4369_v39 }
0x148b   :  { %3639 = vmatpush1.bf16.msra.mxu0 %v4373_v44 }
0x148c   :  { %3641 = vmatprep.subr.bf16.mxu0 %v4377_v45 }
0x148f   :  { %3643 = vmatpush1.bf16.msra.mxu0 %v4381_v48 }
0x1490   :  { %3677 = vmatprep.subr.bf16.mxu0 %v4324_v4 }
0x1545   :  { %v1971_v55 = vpop.f32.mrb[20].mxu0 }
0x1546   :  { %v1972_v56 = vadd.f32 %v1971_v55, %v1903_v53  ;;  %v1973_v57 = vpop.f32.mrb[21].mxu0 }
0x1547   :  { %v1974_v58 = vadd.f32 %v1973_v57, %v1904_v54 }
0x1548   :  { %v2888_v59 = vmul.f32 -1.442695, %v1972_v56 }
0x1549   :  { %v2889_v60 = vmul.f32 -1.442695, %v1974_v58 }
0x154a   :  { %4075 = vpow2.f32 %v2888_v59 }
0x154b   :  { %4077 = vpow2.f32 %v2889_v60 }
0x1554   :  { %v4076_v61 = vpop.eup %4075 }
0x1555   :  { %v4078_v62 = vpop.eup %4077  ;;  %v1979_v63 = vadd.f32 1.0, %v4076_v61 }
0x1556   :  { %v1985_v1 = vadd.f32 1.0, %v4078_v62 }
0x1557   :  { %4079 = vrcp.f32 %v1979_v63  ;;  %v2176_v63 = vld [vmem:[#allocation4 + $0x170] sm:$0xff] }
0x1558   :  { %4081 = vrcp.f32 %v1985_v1  ;;  %v2177_v1 = vld [vmem:[#allocation4 + $0x178] sm:$0xff] }
0x1561   :  { %v4080_v2 = vpop.eup %4079 }
0x1562   :  { %v4082_v3 = vpop.eup %4081  ;;  %v1988_v5 = vmul.f32 %v4080_v2, %v1899_v50 }
0x1563   :  { %v1989_v6 = vmul.f32 %v4082_v3, %v4082_v3 }
0x1565   :  { %v1990_v7 = vadd.f32 %v1989_v6, %v1988_v5 }
0x1567   :  { %4083 = vtanh.f32 %v1990_v7 }
0x1571   :  { %v4084_v10 = vpop.eup %4083 }
0x1572   :  { %v1992_v11 = vmul.f32 %v4084_v10, %v4082_v3 }
0x1574   :  { %2061 = vmatmul.mubr.f32.vlgmr.msra.gmra.mrb[20].mxu1 %v1992_v11 }
0x1575   :  { %3647 = vmatpush1.bf16.msra.mxu1 %v4326_v8  ;;  %2242 = vmatprep.mubr.f32.mxu1 %v4275_v0 }
0x1576   :  { %3649 = vmatprep.subr.bf16.mxu1 %v4328_v9 }
0x1579   :  { %3651 = vmatpush1.bf16.msra.mxu1 %v4333_v14 }
0x157a   :  { %3653 = vmatprep.subr.bf16.mxu1 %v4337_v15 }
0x157d   :  { %3655 = vmatpush1.bf16.msra.mxu1 %v4341_v20 }
0x157e   :  { %3657 = vmatprep.subr.bf16.mxu1 %v4345_v21 }
0x1581   :  { %3659 = vmatpush1.bf16.msra.mxu1 %v4349_v26 }
0x1582   :  { %3661 = vmatprep.subr.bf16.mxu1 %v4353_v27 }
0x1585   :  { %3663 = vmatpush1.bf16.msra.mxu1 %v4357_v32 }
0x1586   :  { %3665 = vmatprep.subr.bf16.mxu1 %v4361_v33 }
0x1589   :  { %3667 = vmatpush1.bf16.msra.mxu1 %v4365_v38 }
0x158a   :  { %3669 = vmatprep.subr.bf16.mxu1 %v4369_v39 }
0x158d   :  { %3671 = vmatpush1.bf16.msra.mxu1 %v4373_v44 }
0x158e   :  { %3673 = vmatprep.subr.bf16.mxu1 %v4377_v45 }
0x1591   :  { %3675 = vmatpush1.bf16.msra.mxu1 %v4381_v48 }
0x1592   :  { %3709 = vmatprep.subr.bf16.mxu1 %v4324_v4 }
0x1647   :  { %v2062_v16 = vpop.f32.mrb[20].mxu1 }
0x1648   :  { %v2063_v17 = vadd.f32 %v2062_v16, %v1994_v12  ;;  %v2064_v18 = vpop.f32.mrb[21].mxu1 }
0x1649   :  { %v2065_v19 = vadd.f32 %v2064_v18, %v1995_v13 }
0x164a   :  { %v2890_v22 = vmul.f32 -1.442695, %v2063_v17 }
0x164b   :  { %v2891_v23 = vmul.f32 -1.442695, %v2065_v19 }
0x164c   :  { %4085 = vpow2.f32 %v2890_v22 }
0x164d   :  { %4087 = vpow2.f32 %v2891_v23 }
0x1656   :  { %v4086_v24 = vpop.eup %4085 }
0x1657   :  { %v4088_v25 = vpop.eup %4087  ;;  %v2070_v28 = vadd.f32 1.0, %v4086_v24 }
0x1658   :  { %v2076_v29 = vadd.f32 1.0, %v4088_v25 }
0x1659   :  { %4089 = vrcp.f32 %v2070_v28  ;;  %v2267_v28 = vld [vmem:[#allocation4 + $0x180] sm:$0xff] }
0x165a   :  { %4091 = vrcp.f32 %v2076_v29  ;;  %v2268_v29 = vld [vmem:[#allocation4 + $0x188] sm:$0xff] }
0x1663   :  { %v4090_v30 = vpop.eup %4089 }
0x1664   :  { %v4092_v31 = vpop.eup %4091  ;;  %v2079_v34 = vmul.f32 %v4090_v30, %v1990_v7 }
0x1665   :  { %v2080_v35 = vmul.f32 %v4092_v31, %v4092_v31 }
0x1667   :  { %v2081_v36 = vadd.f32 %v2080_v35, %v2079_v34 }
0x1669   :  { %4093 = vtanh.f32 %v2081_v36 }
0x1673   :  { %v4094_v37 = vpop.eup %4093 }
0x1674   :  { %v2083_v40 = vmul.f32 %v4094_v37, %v4092_v31 }
0x1676   :  { %2152 = vmatmul.mubr.f32.vlgmr.msra.gmra.mrb[22].mxu0 %v2083_v40 }
0x1677   :  { %3679 = vmatpush1.bf16.msra.mxu0 %v4326_v8  ;;  %2333 = vmatprep.mubr.f32.mxu0 %v4275_v0 }
0x1678   :  { %3681 = vmatprep.subr.bf16.mxu0 %v4328_v9 }
0x167b   :  { %3683 = vmatpush1.bf16.msra.mxu0 %v4333_v14 }
0x167c   :  { %3685 = vmatprep.subr.bf16.mxu0 %v4337_v15 }
0x167f   :  { %3687 = vmatpush1.bf16.msra.mxu0 %v4341_v20 }
0x1680   :  { %3689 = vmatprep.subr.bf16.mxu0 %v4345_v21 }
0x1683   :  { %3691 = vmatpush1.bf16.msra.mxu0 %v4349_v26 }
0x1684   :  { %3693 = vmatprep.subr.bf16.mxu0 %v4353_v27 }
0x1687   :  { %3695 = vmatpush1.bf16.msra.mxu0 %v4357_v32 }
0x1688   :  { %3697 = vmatprep.subr.bf16.mxu0 %v4361_v33 }
0x168b   :  { %3699 = vmatpush1.bf16.msra.mxu0 %v4365_v38 }
0x168c   :  { %3701 = vmatprep.subr.bf16.mxu0 %v4369_v39 }
0x168f   :  { %3703 = vmatpush1.bf16.msra.mxu0 %v4373_v44 }
0x1690   :  { %3705 = vmatprep.subr.bf16.mxu0 %v4377_v45 }
0x1693   :  { %3707 = vmatpush1.bf16.msra.mxu0 %v4381_v48 }
0x1694   :  { %3741 = vmatprep.subr.bf16.mxu0 %v4324_v4 }
0x1749   :  { %v2153_v43 = vpop.f32.mrb[22].mxu0 }
0x174a   :  { %v2154_v46 = vadd.f32 %v2153_v43, %v2085_v41  ;;  %v2155_v47 = vpop.f32.mrb[23].mxu0 }
0x174b   :  { %v2156_v49 = vadd.f32 %v2155_v47, %v2086_v42 }
0x174c   :  { %v2892_v50 = vmul.f32 -1.442695, %v2154_v46 }
0x174d   :  { %v2893_v51 = vmul.f32 -1.442695, %v2156_v49 }
0x174e   :  { %4095 = vpow2.f32 %v2892_v50 }
0x174f   :  { %4097 = vpow2.f32 %v2893_v51 }
0x1758   :  { %v4096_v52 = vpop.eup %4095 }
0x1759   :  { %v4098_v53 = vpop.eup %4097  ;;  %v2161_v54 = vadd.f32 1.0, %v4096_v52 }
0x175a   :  { %v2167_v55 = vadd.f32 1.0, %v4098_v53 }
0x175b   :  { %4099 = vrcp.f32 %v2161_v54  ;;  %v2358_v54 = vld [vmem:[#allocation4 + $0x190] sm:$0xff] }
0x175c   :  { %4101 = vrcp.f32 %v2167_v55  ;;  %v2359_v55 = vld [vmem:[#allocation4 + $0x198] sm:$0xff] }
0x1765   :  { %v4100_v56 = vpop.eup %4099 }
0x1766   :  { %v4102_v57 = vpop.eup %4101  ;;  %v2170_v58 = vmul.f32 %v4100_v56, %v2081_v36 }
0x1767   :  { %v2171_v59 = vmul.f32 %v4102_v57, %v4102_v57 }
0x1769   :  { %v2172_v60 = vadd.f32 %v2171_v59, %v2170_v58 }
0x176b   :  { %4103 = vtanh.f32 %v2172_v60 }
0x1775   :  { %v4104_v61 = vpop.eup %4103 }
0x1776   :  { %v2174_v62 = vmul.f32 %v4104_v61, %v4102_v57 }
0x1778   :  { %2243 = vmatmul.mubr.f32.vlgmr.msra.gmra.mrb[22].mxu1 %v2174_v62 }
0x1779   :  { %3711 = vmatpush1.bf16.msra.mxu1 %v4326_v8  ;;  %2424 = vmatprep.mubr.f32.mxu1 %v4275_v0 }
0x177a   :  { %3713 = vmatprep.subr.bf16.mxu1 %v4328_v9 }
0x177d   :  { %3715 = vmatpush1.bf16.msra.mxu1 %v4333_v14 }
0x177e   :  { %3717 = vmatprep.subr.bf16.mxu1 %v4337_v15 }
0x1781   :  { %3719 = vmatpush1.bf16.msra.mxu1 %v4341_v20 }
0x1782   :  { %3721 = vmatprep.subr.bf16.mxu1 %v4345_v21 }
0x1785   :  { %3723 = vmatpush1.bf16.msra.mxu1 %v4349_v26 }
0x1786   :  { %3725 = vmatprep.subr.bf16.mxu1 %v4353_v27 }
0x1789   :  { %3727 = vmatpush1.bf16.msra.mxu1 %v4357_v32 }
0x178a   :  { %3729 = vmatprep.subr.bf16.mxu1 %v4361_v33 }
0x178d   :  { %3731 = vmatpush1.bf16.msra.mxu1 %v4365_v38 }
0x178e   :  { %3733 = vmatprep.subr.bf16.mxu1 %v4369_v39 }
0x1791   :  { %3735 = vmatpush1.bf16.msra.mxu1 %v4373_v44 }
0x1792   :  { %3737 = vmatprep.subr.bf16.mxu1 %v4377_v45 }
0x1795   :  { %3739 = vmatpush1.bf16.msra.mxu1 %v4381_v48 }
0x1796   :  { %3773 = vmatprep.subr.bf16.mxu1 %v4324_v4 }
0x184b   :  { %v2244_v2 = vpop.f32.mrb[22].mxu1 }
0x184c   :  { %v2245_v3 = vadd.f32 %v2244_v2, %v2176_v63  ;;  %v2246_v5 = vpop.f32.mrb[23].mxu1 }
0x184d   :  { %v2247_v6 = vadd.f32 %v2246_v5, %v2177_v1 }
0x184e   :  { %v2894_v7 = vmul.f32 -1.442695, %v2245_v3 }
0x184f   :  { %v2895_v10 = vmul.f32 -1.442695, %v2247_v6 }
0x1850   :  { %4105 = vpow2.f32 %v2894_v7 }
0x1851   :  { %4107 = vpow2.f32 %v2895_v10 }
0x185a   :  { %v4106_v11 = vpop.eup %4105 }
0x185b   :  { %v4108_v12 = vpop.eup %4107  ;;  %v2252_v13 = vadd.f32 1.0, %v4106_v11 }
0x185c   :  { %v2258_v16 = vadd.f32 1.0, %v4108_v12  ;;  %v2449_v12 = vld [vmem:[#allocation4 + $0x1a0] sm:$0xff] }
0x185d   :  { %4109 = vrcp.f32 %v2252_v13  ;;  %v2450_v13 = vld [vmem:[#allocation4 + $0x1a8] sm:$0xff] }
0x185e   :  { %4111 = vrcp.f32 %v2258_v16 }
0x1867   :  { %v4110_v17 = vpop.eup %4109 }
0x1868   :  { %v4112_v18 = vpop.eup %4111  ;;  %v2261_v19 = vmul.f32 %v4110_v17, %v2172_v60 }
0x1869   :  { %v2262_v22 = vmul.f32 %v4112_v18, %v4112_v18 }
0x186b   :  { %v2263_v23 = vadd.f32 %v2262_v22, %v2261_v19 }
0x186d   :  { %4113 = vtanh.f32 %v2263_v23 }
0x1877   :  { %v4114_v24 = vpop.eup %4113 }
0x1878   :  { %v2265_v25 = vmul.f32 %v4114_v24, %v4112_v18 }
0x187a   :  { %2334 = vmatmul.mubr.f32.vlgmr.msra.gmra.mrb[24].mxu0 %v2265_v25 }
0x187b   :  { %3743 = vmatpush1.bf16.msra.mxu0 %v4326_v8  ;;  %2515 = vmatprep.mubr.f32.mxu0 %v4275_v0 }
0x187c   :  { %3745 = vmatprep.subr.bf16.mxu0 %v4328_v9 }
0x187f   :  { %3747 = vmatpush1.bf16.msra.mxu0 %v4333_v14 }
0x1880   :  { %3749 = vmatprep.subr.bf16.mxu0 %v4337_v15 }
0x1883   :  { %3751 = vmatpush1.bf16.msra.mxu0 %v4341_v20 }
0x1884   :  { %3753 = vmatprep.subr.bf16.mxu0 %v4345_v21 }
0x1887   :  { %3755 = vmatpush1.bf16.msra.mxu0 %v4349_v26 }
0x1888   :  { %3757 = vmatprep.subr.bf16.mxu0 %v4353_v27 }
0x188b   :  { %3759 = vmatpush1.bf16.msra.mxu0 %v4357_v32 }
0x188c   :  { %3761 = vmatprep.subr.bf16.mxu0 %v4361_v33 }
0x188f   :  { %3763 = vmatpush1.bf16.msra.mxu0 %v4365_v38 }
0x1890   :  { %3765 = vmatprep.subr.bf16.mxu0 %v4369_v39 }
0x1893   :  { %3767 = vmatpush1.bf16.msra.mxu0 %v4373_v44 }
0x1894   :  { %3769 = vmatprep.subr.bf16.mxu0 %v4377_v45 }
0x1897   :  { %3771 = vmatpush1.bf16.msra.mxu0 %v4381_v48 }
0x1898   :  { %3805 = vmatprep.subr.bf16.mxu0 %v4324_v4 }
0x194d   :  { %v2335_v30 = vpop.f32.mrb[24].mxu0 }
0x194e   :  { %v2336_v31 = vadd.f32 %v2335_v30, %v2267_v28  ;;  %v2337_v34 = vpop.f32.mrb[25].mxu0 }
0x194f   :  { %v2338_v35 = vadd.f32 %v2337_v34, %v2268_v29 }
0x1950   :  { %v2896_v36 = vmul.f32 -1.442695, %v2336_v31 }
0x1951   :  { %v2897_v37 = vmul.f32 -1.442695, %v2338_v35 }
0x1952   :  { %4115 = vpow2.f32 %v2896_v36 }
0x1953   :  { %4117 = vpow2.f32 %v2897_v37 }
0x195c   :  { %v4116_v40 = vpop.eup %4115 }
0x195d   :  { %v4118_v41 = vpop.eup %4117  ;;  %v2343_v42 = vadd.f32 1.0, %v4116_v40 }
0x195e   :  { %v2349_v43 = vadd.f32 1.0, %v4118_v41 }
0x195f   :  { %4119 = vrcp.f32 %v2343_v42 }
0x1960   :  { %4121 = vrcp.f32 %v2349_v43 }
0x1969   :  { %v4120_v46 = vpop.eup %4119 }
0x196a   :  { %v4122_v47 = vpop.eup %4121  ;;  %v2352_v49 = vmul.f32 %v4120_v46, %v2263_v23  ;;  %v2631_v46 = vld [vmem:[#allocation4 + $0x1c0] sm:$0xff] }
0x196b   :  { %v2353_v50 = vmul.f32 %v4122_v47, %v4122_v47 }
0x196d   :  { %v2354_v51 = vadd.f32 %v2353_v50, %v2352_v49 }
0x196f   :  { %4123 = vtanh.f32 %v2354_v51 }
0x1979   :  { %v4124_v52 = vpop.eup %4123 }
0x197a   :  { %v2356_v53 = vmul.f32 %v4124_v52, %v4122_v47  ;;  %v2632_v47 = vld [vmem:[#allocation4 + $0x1c8] sm:$0xff] }
0x197c   :  { %2425 = vmatmul.mubr.f32.vlgmr.msra.gmra.mrb[24].mxu1 %v2356_v53 }
0x197d   :  { %3775 = vmatpush1.bf16.msra.mxu1 %v4326_v8  ;;  %2606 = vmatprep.mubr.f32.mxu1 %v4275_v0 }
0x197e   :  { %3777 = vmatprep.subr.bf16.mxu1 %v4328_v9 }
0x1981   :  { %3779 = vmatpush1.bf16.msra.mxu1 %v4333_v14 }
0x1982   :  { %3781 = vmatprep.subr.bf16.mxu1 %v4337_v15 }
0x1985   :  { %3783 = vmatpush1.bf16.msra.mxu1 %v4341_v20 }
0x1986   :  { %3785 = vmatprep.subr.bf16.mxu1 %v4345_v21 }
0x1989   :  { %3787 = vmatpush1.bf16.msra.mxu1 %v4349_v26 }
0x198a   :  { %3789 = vmatprep.subr.bf16.mxu1 %v4353_v27 }
0x198d   :  { %3791 = vmatpush1.bf16.msra.mxu1 %v4357_v32 }
0x198e   :  { %3793 = vmatprep.subr.bf16.mxu1 %v4361_v33 }
0x1991   :  { %3795 = vmatpush1.bf16.msra.mxu1 %v4365_v38 }
0x1992   :  { %3797 = vmatprep.subr.bf16.mxu1 %v4369_v39 }
0x1995   :  { %3799 = vmatpush1.bf16.msra.mxu1 %v4373_v44 }
0x1996   :  { %3801 = vmatprep.subr.bf16.mxu1 %v4377_v45 }
0x1999   :  { %3803 = vmatpush1.bf16.msra.mxu1 %v4381_v48 }
0x199a   :  { %3837 = vmatprep.subr.bf16.mxu1 %v4324_v4 }
0x1a4f   :  { %v2426_v56 = vpop.f32.mrb[24].mxu1 }
0x1a50   :  { %v2427_v57 = vadd.f32 %v2426_v56, %v2358_v54  ;;  %v2428_v58 = vpop.f32.mrb[25].mxu1 }
0x1a51   :  { %v2429_v59 = vadd.f32 %v2428_v58, %v2359_v55 }
0x1a52   :  { %v2898_v60 = vmul.f32 -1.442695, %v2427_v57 }
0x1a53   :  { %v2899_v61 = vmul.f32 -1.442695, %v2429_v59 }
0x1a54   :  { %4125 = vpow2.f32 %v2898_v60 }
0x1a55   :  { %4127 = vpow2.f32 %v2899_v61 }
0x1a5e   :  { %v4126_v62 = vpop.eup %4125 }
0x1a5f   :  { %v4128_v63 = vpop.eup %4127  ;;  %v2434_v1 = vadd.f32 1.0, %v4126_v62 }
0x1a60   :  { %v2440_v2 = vadd.f32 1.0, %v4128_v63 }
0x1a61   :  { %4129 = vrcp.f32 %v2434_v1 }
0x1a62   :  { %4131 = vrcp.f32 %v2440_v2 }
0x1a6b   :  { %v4130_v3 = vpop.eup %4129 }
0x1a6c   :  { %v4132_v5 = vpop.eup %4131  ;;  %v2443_v6 = vmul.f32 %v4130_v3, %v2354_v51  ;;  %v2722_v3 = vld [vmem:[#allocation4 + $0x1d0] sm:$0xff] }
0x1a6d   :  { %v2444_v4 = vmul.f32 %v4132_v5, %v4132_v5 }
0x1a6f   :  { %v2445_v7 = vadd.f32 %v2444_v4, %v2443_v6 }
0x1a71   :  { %4133 = vtanh.f32 %v2445_v7 }
0x1a7b   :  { %v4134_v10 = vpop.eup %4133 }
0x1a7c   :  { %v2447_v11 = vmul.f32 %v4134_v10, %v4132_v5  ;;  %v2723_v5 = vld [vmem:[#allocation4 + $0x1d8] sm:$0xff] }
0x1a7e   :  { %2516 = vmatmul.mubr.f32.vlgmr.msra.gmra.mrb[26].mxu0 %v2447_v11 }
0x1a7f   :  { %3807 = vmatpush1.bf16.msra.mxu0 %v4326_v8  ;;  %2697 = vmatprep.mubr.f32.mxu0 %v4275_v0 }
0x1a80   :  { %3809 = vmatprep.subr.bf16.mxu0 %v4328_v9 }
0x1a83   :  { %3811 = vmatpush1.bf16.msra.mxu0 %v4333_v14 }
0x1a84   :  { %3813 = vmatprep.subr.bf16.mxu0 %v4337_v15 }
0x1a87   :  { %3815 = vmatpush1.bf16.msra.mxu0 %v4341_v20 }
0x1a88   :  { %3817 = vmatprep.subr.bf16.mxu0 %v4345_v21 }
0x1a8b   :  { %3819 = vmatpush1.bf16.msra.mxu0 %v4349_v26 }
0x1a8c   :  { %3821 = vmatprep.subr.bf16.mxu0 %v4353_v27 }
0x1a8f   :  { %3823 = vmatpush1.bf16.msra.mxu0 %v4357_v32 }
0x1a90   :  { %3825 = vmatprep.subr.bf16.mxu0 %v4361_v33 }
0x1a93   :  { %3827 = vmatpush1.bf16.msra.mxu0 %v4365_v38 }
0x1a94   :  { %3829 = vmatprep.subr.bf16.mxu0 %v4369_v39 }
0x1a97   :  { %3831 = vmatpush1.bf16.msra.mxu0 %v4373_v44 }
0x1a98   :  { %3833 = vmatprep.subr.bf16.mxu0 %v4377_v45 }
0x1a9b   :  { %3835 = vmatpush1.bf16.msra.mxu0 %v4381_v48 }
0x1b51   :  { %v2517_v16 = vpop.f32.mrb[26].mxu0 }
0x1b52   :  { %v2518_v17 = vadd.f32 %v2517_v16, %v2449_v12  ;;  %v2519_v18 = vpop.f32.mrb[27].mxu0 }
0x1b53   :  { %v2520_v19 = vadd.f32 %v2519_v18, %v2450_v13 }
0x1b54   :  { %v2900_v22 = vmul.f32 -1.442695, %v2518_v17 }
0x1b55   :  { %v2901_v23 = vmul.f32 -1.442695, %v2520_v19 }
0x1b56   :  { %4135 = vpow2.f32 %v2900_v22 }
0x1b57   :  { %4137 = vpow2.f32 %v2901_v23 }
0x1b60   :  { %v4136_v24 = vpop.eup %4135 }
0x1b61   :  { %v4138_v25 = vpop.eup %4137  ;;  %v2525_v28 = vadd.f32 1.0, %v4136_v24 }
0x1b62   :  { %v2531_v29 = vadd.f32 1.0, %v4138_v25 }
0x1b63   :  { %4139 = vrcp.f32 %v2525_v28 }
0x1b64   :  { %4141 = vrcp.f32 %v2531_v29 }
0x1b6d   :  { %v4140_v30 = vpop.eup %4139 }
0x1b6e   :  { %v4142_v31 = vpop.eup %4141  ;;  %v2534_v34 = vmul.f32 %v4140_v30, %v2445_v7 }
0x1b6f   :  { %v2535_v35 = vmul.f32 %v4142_v31, %v4142_v31 }
0x1b71   :  { %v2536_v36 = vadd.f32 %v2535_v35, %v2534_v34 }
0x1b73   :  { %4143 = vtanh.f32 %v2536_v36 }
0x1b7d   :  { %v4144_v37 = vpop.eup %4143 }
0x1b7e   :  { %v2538_v40 = vmul.f32 %v4144_v37, %v4142_v31 }
0x1b80   :  { %2607 = vmatmul.mubr.f32.vlgmr.msra.gmra.mrb[26].mxu1 %v2538_v40 }
0x1b81   :  { %3839 = vmatpush1.bf16.msra.mxu1 %v4326_v8  ;;  %2788 = vmatprep.mubr.f32.mxu1 %v4275_v0  ;;  %v2540_v0 = vld [vmem:[#allocation4 + $0x1b0] sm:$0xff]  ;;  %v2541_v8 = vld [vmem:[#allocation4 + $0x1b8] sm:$0xff] }
0x1b82   :  { %3841 = vmatprep.subr.bf16.mxu1 %v4328_v9 }
0x1b85   :  { %3843 = vmatpush1.bf16.msra.mxu1 %v4333_v14 }
0x1b86   :  { %3845 = vmatprep.subr.bf16.mxu1 %v4337_v15 }
0x1b89   :  { %3847 = vmatpush1.bf16.msra.mxu1 %v4341_v20 }
0x1b8a   :  { %3849 = vmatprep.subr.bf16.mxu1 %v4345_v21 }
0x1b8d   :  { %3851 = vmatpush1.bf16.msra.mxu1 %v4349_v26 }
0x1b8e   :  { %3853 = vmatprep.subr.bf16.mxu1 %v4353_v27 }
0x1b91   :  { %3855 = vmatpush1.bf16.msra.mxu1 %v4357_v32 }
0x1b92   :  { %3857 = vmatprep.subr.bf16.mxu1 %v4361_v33 }
0x1b95   :  { %3859 = vmatpush1.bf16.msra.mxu1 %v4365_v38 }
0x1b96   :  { %3861 = vmatprep.subr.bf16.mxu1 %v4369_v39 }
0x1b99   :  { %3863 = vmatpush1.bf16.msra.mxu1 %v4373_v44 }
0x1b9a   :  { %3865 = vmatprep.subr.bf16.mxu1 %v4377_v45 }
0x1b9d   :  { %3867 = vmatpush1.bf16.msra.mxu1 %v4381_v48 }
0x1c53   :  { %v2608_v9 = vpop.f32.mrb[26].mxu1 }
0x1c54   :  { %v2609_v14 = vadd.f32 %v2608_v9, %v2540_v0  ;;  %v2610_v15 = vpop.f32.mrb[27].mxu1 }
0x1c55   :  { %v2611_v20 = vadd.f32 %v2610_v15, %v2541_v8 }
0x1c56   :  { %v2902_v21 = vmul.f32 -1.442695, %v2609_v14 }
0x1c57   :  { %v2903_v26 = vmul.f32 -1.442695, %v2611_v20 }
0x1c58   :  { %4145 = vpow2.f32 %v2902_v21 }
0x1c59   :  { %4147 = vpow2.f32 %v2903_v26 }
0x1c62   :  { %v4146_v27 = vpop.eup %4145 }
0x1c63   :  { %v4148_v32 = vpop.eup %4147  ;;  %v2616_v33 = vadd.f32 1.0, %v4146_v27 }
0x1c64   :  { %v2622_v38 = vadd.f32 1.0, %v4148_v32 }
0x1c65   :  { %4149 = vrcp.f32 %v2616_v33 }
0x1c66   :  { %4151 = vrcp.f32 %v2622_v38 }
0x1c6f   :  { %v4150_v39 = vpop.eup %4149 }
0x1c70   :  { %v4152_v44 = vpop.eup %4151  ;;  %v2625_v45 = vmul.f32 %v4150_v39, %v2536_v36 }
0x1c71   :  { %v2626_v48 = vmul.f32 %v4152_v44, %v4152_v44 }
0x1c73   :  { %v2627_v41 = vadd.f32 %v2626_v48, %v2625_v45 }
0x1c75   :  { %4153 = vtanh.f32 %v2627_v41 }
0x1c7f   :  { %v4154_v42 = vpop.eup %4153 }
0x1c80   :  { %v2629_v43 = vmul.f32 %v4154_v42, %v4152_v44 }
0x1c82   :  { %2698 = vmatmul.mubr.f32.vlgmr.msra.gmra.mrb[28].mxu0 %v2629_v43 }
0x1d55   :  { %v2699_v49 = vpop.f32.mrb[28].mxu0 }
0x1d56   :  { %v2700_v50 = vadd.f32 %v2699_v49, %v2631_v46  ;;  %v2701_v51 = vpop.f32.mrb[29].mxu0 }
0x1d57   :  { %v2702_v52 = vadd.f32 %v2701_v51, %v2632_v47 }
0x1d58   :  { %v2904_v53 = vmul.f32 -1.442695, %v2700_v50 }
0x1d59   :  { %v2905_v54 = vmul.f32 -1.442695, %v2702_v52 }
0x1d5a   :  { %4155 = vpow2.f32 %v2904_v53 }
0x1d5b   :  { %4157 = vpow2.f32 %v2905_v54 }
0x1d64   :  { %v4156_v55 = vpop.eup %4155 }
0x1d65   :  { %v4158_v56 = vpop.eup %4157  ;;  %v2707_v57 = vadd.f32 1.0, %v4156_v55 }
0x1d66   :  { %v2713_v58 = vadd.f32 1.0, %v4158_v56 }
0x1d67   :  { %4159 = vrcp.f32 %v2707_v57 }
0x1d68   :  { %4161 = vrcp.f32 %v2713_v58 }
0x1d71   :  { %v4160_v59 = vpop.eup %4159 }
0x1d72   :  { %v4162_v60 = vpop.eup %4161  ;;  %v2716_v61 = vmul.f32 %v4160_v59, %v2627_v41 }
0x1d73   :  { %v2717_v62 = vmul.f32 %v4162_v60, %v4162_v60 }
0x1d75   :  { %v2718_v63 = vadd.f32 %v2717_v62, %v2716_v61 }
0x1d77   :  { %4163 = vtanh.f32 %v2718_v63 }
0x1d81   :  { %v4164_v1 = vpop.eup %4163 }
0x1d82   :  { %v2720_v2 = vmul.f32 %v4164_v1, %v4162_v60 }
0x1d84   :  { %2789 = vmatmul.mubr.f32.vlgmr.msra.gmra.mrb[28].mxu1 %v2720_v2 }
0x1e57   :  { %v2790_v6 = vpop.f32.mrb[28].mxu1 }
0x1e58   :  { %v2791_v4 = vadd.f32 %v2790_v6, %v2722_v3  ;;  %v2792_v7 = vpop.f32.mrb[29].mxu1 }
0x1e59   :  { %v2793_v10 = vadd.f32 %v2792_v7, %v2723_v5 }
0x1e5a   :  { %v2906_v11 = vmul.f32 -1.442695, %v2791_v4 }
0x1e5b   :  { %v2907_v12 = vmul.f32 -1.442695, %v2793_v10 }
0x1e5c   :  { %4165 = vpow2.f32 %v2906_v11 }
0x1e5d   :  { %4167 = vpow2.f32 %v2907_v12 }
0x1e66   :  { %v4166_v13 = vpop.eup %4165 }
0x1e67   :  { %v4168_v16 = vpop.eup %4167  ;;  %v2798_v17 = vadd.f32 1.0, %v4166_v13 }
0x1e68   :  { %v2804_v18 = vadd.f32 1.0, %v4168_v16 }
0x1e69   :  { %4169 = vrcp.f32 %v2798_v17 }
0x1e6a   :  { %4171 = vrcp.f32 %v2804_v18 }
0x1e73   :  { %v4170_v19 = vpop.eup %4169 }
0x1e74   :  { %v4172_v22 = vpop.eup %4171  ;;  %v2807_v23 = vmul.f32 %v4170_v19, %v2718_v63 }
0x1e75   :  { %v2808_v24 = vmul.f32 %v4172_v22, %v4172_v22 }
0x1e77   :  { %v2809_v25 = vadd.f32 %v2808_v24, %v2807_v23 }
0x1e79   :  { %4173 = vtanh.f32 %v2809_v25  ;;  %2817 = vst [vmem:[#allocation10] sm:$0xff] %v2809_v25 }
0x1e7a   :  { %4230 = shalt.err (!%p4227_p6)
}
0x1e7b   :  { %s4231_s14 = scalar_lea.hbm %s4892_s3, 128 }
0x1e7c   :  { %p4232_p7 = scmp.ne.s32.totalorder %s4892_s3, %s4231_s14  ;;  %p4235_p8 = scmp.lt.u32.totalorder %s4231_s14, %s4892_s3 }
0x1e7e   :  { %p4237_p9 = pnand %p4235_p8, %p4232_p7 }
0x1e80   :  { %4240 = shalt.err (!%p4237_p9)
}
0x1e81   :  { %2837 = dma.vmem_to_hbm [thread:$0]  %s2835_s10, 128, %s4892_s3, [#allocation11]  }
0x1e82   :  { %s4277_s21 = smov [#allocation9]  }
0x1e83   :  { %s2824_s22 = sshll.u32 %s4277_s21, 4  ;;  %v4174_v28 = vpop.eup %4173  ;;  %s2825_s22 = int_to_ptr.vmem [resolvable:$true] %s2824_s22 }
0x1e84   :  { %v2811_v29 = vmul.f32 %v4174_v28, %v4172_v22  ;;  %s4241_s23 = scalar_lea.vmem %s2825_s22, 128  ;;  %p4246_p11 = scmp.lt.s32.totalorder %s2825_s22, %s2825_s22 }
0x1e85   :  { %p4242_p10 = scmp.ne.s32.totalorder %s2825_s22, %s4241_s23  ;;  %p4247_p12 = scmp.lt.s32.totalorder %s4241_s23, %s4241_s23 }
0x1e86   :  { %2815 = vst [vmem:[#allocation9] sm:$0xff] %v2811_v29 }
0x1e87   :  { %p4248_p13 = por %p4247_p12, %p4246_p11 }
0x1e89   :  { %p4249_p0 = pnand %p4248_p13, %p4242_p10 }
0x1e8b   :  { %4252 = shalt.err (!%p4249_p0)
}
0x1e8c   :  { %s4253_s26 = scalar_lea.hbm %s4891_s2, 128 }
0x1e8d   :  { %p4254_p1 = scmp.ne.s32.totalorder %s4891_s2, %s4253_s26  ;;  %p4257_p2 = scmp.lt.u32.totalorder %s4253_s26, %s4891_s2 }
0x1e8f   :  { %p4259_p3 = pnand %p4257_p2, %p4254_p1 }
0x1e91   :  { %4262 = shalt.err (!%p4259_p3)
}
0x1e92   :  { %2827 = dma.vmem_to_hbm [thread:$0]  %s2825_s22, 128, %s4891_s2, [#allocation6]  }
0x1e93   :  { %4267 = dma.done.wait [#allocation6], 128  }
0x1e94   :  { %4268 = vsyncadd [#allocation6], 4294967168 }
0x1e95   :  { %4269 = dma.done.wait [#allocation11], 128  }
0x1e96   :  { %4270 = vsyncadd [#allocation11], 4294967168 }
0x1e97   :  { %2844 = vsyncpa [#allocation5], 1 }
0x1e98   :  { %2845 = vsyncpa [#allocation8], 1 }
0x1e99   :  { %2846 = vsyncpa [#allocation6], 1 }
0x1e9a   :  { %2847 = vsyncpa [#allocation11], 1 }

</bundles_post_ra>
